<compile_context>
chip_gen: v6e
topology: v6e:2x2x1
jax: 0.10.0
libtpu: 0.0.40
codegen_flags: <defaults>
</compile_context>

<pallas_src>
import functools
import math

import jax
import jax.numpy as jnp
from jax.experimental import pallas as pl
from jax.experimental.pallas import tpu as pltpu


def _round_up(x, m):
    return ((x + m - 1) // m) * m


# ----------------------------------------------------------------------------- kernel


def _mtl_kernel(x_ref, w1_ref, b1_ref, w2_ref, b2_ref, w3_ref, b3_ref,
                wh_ref, bh_ref, out_ref, *, bf16_elem):
    """Shared trunk (3x Linear+ReLU, Dropout=identity) + fused task heads."""
    elem_dt = jnp.bfloat16 if bf16_elem else jnp.float32

    def layer(h, w_ref, b_ref):
        # MXU: bf16 operands, f32 accumulation.
        acc = jnp.dot(h.astype(jnp.bfloat16), w_ref[...],
                      preferred_element_type=jnp.float32)
        # Bias + ReLU on the VPU; bf16 on v6e/v7x (bf16 VALU), f32 on v5e.
        return jnp.maximum(acc.astype(elem_dt) + b_ref[...].astype(elem_dt), 0.0)

    h = layer(x_ref[...], w1_ref, b1_ref)     # (tb, 1024)
    h = layer(h, w2_ref, b2_ref)              # (tb, 512)
    h = layer(h, w3_ref, b3_ref)              # (tb, 256)

    # Fused heads: single lane-dense (256, P) matmul; output stays f32.
    o = jnp.dot(h.astype(jnp.bfloat16), wh_ref[...],
                preferred_element_type=jnp.float32) + bh_ref[...]
    out_ref[...] = o.astype(out_ref.dtype)


# ----------------------------------------------------------------------------- pallas_call


@functools.partial(
    jax.jit,
    static_argnames=("tb", "bf16_elem", "single_buffer_weights", "vmem_limit"))
def _mtl_forward(x, w1, b1, w2, b2, w3, b3, wh, bh, *,
                 tb, bf16_elem, single_buffer_weights, vmem_limit):
    B, F = x.shape
    P = wh.shape[1]
    grid = (pl.cdiv(B, tb),)   # non-divisible grid: edge block clipped by Pallas

    flops = 2 * B * (F * 1024 + 1024 * 512 + 512 * 256 + 256 * P)
    weight_bytes = (w1.size + w2.size + w3.size + wh.size) * 2   # bf16
    bias_bytes = (b1.size + b2.size + b3.size + bh.size) * 4     # f32
    bytes_accessed = (weight_bytes + bias_bytes
                      + B * F * x.dtype.itemsize + B * P * 4)
    cost = pl.CostEstimate(flops=flops, transcendentals=0,
                           bytes_accessed=bytes_accessed)

    # Weights/biases: constant block index -> resident across the batch grid.
    # Single-buffer them (a second buffer of a never-changing block is waste).
    if single_buffer_weights:
        const = lambda shape: pl.BlockSpec(shape, lambda i: (0, 0),
                                           pipeline_mode=pl.Buffered(1))
    else:
        const = lambda shape: pl.BlockSpec(shape, lambda i: (0, 0))

    return pl.pallas_call(
        functools.partial(_mtl_kernel, bf16_elem=bf16_elem),
        out_shape=jax.ShapeDtypeStruct((B, P), jnp.float32),
        grid_spec=pltpu.PrefetchScalarGridSpec(
            num_scalar_prefetch=0,
            grid=grid,
            in_specs=[
                pl.BlockSpec((tb, F), lambda i: (i, 0)),     # x (batch-tiled)
                const((F, 1024)), const((1, 1024)),          # W1, b1
                const((1024, 512)), const((1, 512)),         # W2, b2
                const((512, 256)), const((1, 256)),          # W3, b3
                const((256, P)), const((1, P)),              # fused heads
            ],
            out_specs=pl.BlockSpec((tb, P), lambda i: (i, 0)),
        ),
        compiler_params=pltpu.CompilerParams(
            dimension_semantics=("parallel",),
            vmem_limit_bytes=int(vmem_limit),
        ),
        cost_estimate=cost,
    )(x, w1, b1, w2, b2, w3, b3, wh, bh)


# ----------------------------------------------------------------------------- chip-aware config


@functools.lru_cache(maxsize=None)
def _vmem_budget():
    """Usable per-core VMEM bytes, leaving ~22% headroom for Mosaic scratch."""
    try:
        cap = int(pltpu.get_tpu_info().vmem_capacity_bytes)
    except Exception:
        cap = 64 << 20  # conservative default = v7x per-TensorCore VMEM
    return (cap * 25) // 32   # ~100 MiB on v5e/v6e (128 MiB), ~50 MiB on v7x (64 MiB)


@functools.lru_cache(maxsize=None)
def _has_bf16_vpu():
    """bf16 elementwise only where the VPU supports it (v6e / v7x)."""
    try:
        kind = jax.devices()[0].device_kind.lower()
    except Exception:
        return False
    return ("v6" in kind) or ("v7" in kind)


def _choose_tb(B, budget, F, P, x_itemsize):
    """Largest batch tile fitting VMEM, >=2 steps at B>=256, tail waste <= 8 rows/step."""
    if B < 8:
        return B  # block dim == full array dim is always a legal block shape
    weights = (F * 1024 + 1024 * 512 + 512 * 256 + 256 * P) * 2   # bf16, resident
    biases = (1024 + 512 + 256 + P) * 4
    fixed = weights + biases + (2 << 20)                          # + compiler slack
    max_tb = 8
    for cand in (2048, 1024, 512, 256, 128, 64, 32, 16, 8):
        io = 2 * cand * (F * x_itemsize + P * 4)                  # double-buffered x/out tiles
        acts = cand * (1024 + 512 + 256 + P) * 6                  # f32 acc + bf16 copy (upper bound)
        if fixed + io + acts <= budget:
            max_tb = cand
            break
    B8 = _round_up(B, 8)
    steps = pl.cdiv(B8, max_tb)
    if B8 >= 256:
        steps = max(steps, 2)   # feed both TensorCores on v7x; harmless on v5e/v6e
    return min(max_tb, _round_up(pl.cdiv(B8, steps), 8))


# ----------------------------------------------------------------------------- params & wrapper


def init_params(key, input_dim, task_output_dims):
    """nn.Linear-style init (uniform +-1/sqrt(fan_in)).

    Weights stored (in, out) in bf16; biases (1, out) f32. All task heads are
    fused into one (256, P) weight padded to a multiple of 128 lanes.
    """
    def linear(k, fan_in, fan_out):
        kw, kb = jax.random.split(k)
        bound = 1.0 / math.sqrt(fan_in)
        w = jax.random.uniform(kw, (fan_in, fan_out), jnp.float32, -bound, bound)
        b = jax.random.uniform(kb, (1, fan_out), jnp.float32, -bound, bound)
        return w, b

    tasks = sorted(task_output_dims.items())
    keys = jax.random.split(key, 3 + len(tasks))
    w1, b1 = linear(keys[0], input_dim, 1024)
    w2, b2 = linear(keys[1], 1024, 512)
    w3, b3 = linear(keys[2], 512, 256)

    head_ws, head_bs, head_slices = [], [], {}
    off = 0
    for i, (task, out_dim) in enumerate(tasks):
        w, b = linear(keys[3 + i], 256, out_dim)
        head_ws.append(w)
        head_bs.append(b)
        head_slices[task] = (off, out_dim)
        off += out_dim
    P = max(128, _round_up(off, 128))
    wh = jnp.zeros((256, P), jnp.float32).at[:, :off].set(
        jnp.concatenate(head_ws, axis=1))
    bh = jnp.zeros((1, P), jnp.float32).at[:, :off].set(
        jnp.concatenate(head_bs, axis=1))

    return {
        "w1": w1.astype(jnp.bfloat16), "b1": b1,
        "w2": w2.astype(jnp.bfloat16), "b2": b2,
        "w3": w3.astype(jnp.bfloat16), "b3": b3,
        "wh": wh.astype(jnp.bfloat16), "bh": bh,
        "head_slices": head_slices,
    }


_SINGLE_BUFFER_WEIGHTS = None  # resolved (True/False) on first call


def multitask_net(params, x, task):
    """Forward equivalent to MultiTaskNet.forward(x, task) in eval mode.

    x may be f32 or bf16 (no wrapper-side cast is added; the kernel consumes either).
    """
    global _SINGLE_BUFFER_WEIGHTS
    B, F = x.shape
    P = params["wh"].shape[1]
    budget = _vmem_budget()
    tb = _choose_tb(B, budget, F, P, x.dtype.itemsize)
    kwargs = dict(tb=tb, bf16_elem=_has_bf16_vpu(), vmem_limit=budget)
    args = (x, params["w1"], params["b1"], params["w2"], params["b2"],
            params["w3"], params["b3"], params["wh"], params["bh"])

    if _SINGLE_BUFFER_WEIGHTS is None:
        try:
            out = jax.block_until_ready(
                _mtl_forward(*args, single_buffer_weights=True, **kwargs))
            _SINGLE_BUFFER_WEIGHTS = True
        except Exception:
            # pl.Buffered(1) not accepted on this build: fall back to default
            # double buffering of the (small, ~1.4 MB) resident weights.
            _SINGLE_BUFFER_WEIGHTS = False
            out = _mtl_forward(*args, single_buffer_weights=False, **kwargs)
    else:
        out = _mtl_forward(*args,
                           single_buffer_weights=_SINGLE_BUFFER_WEIGHTS, **kwargs)

    off, dim = params["head_slices"][task]
    return out[:, off:off + dim]


# ----------------------------------------------------------------------------- reference


def _reference(params, x, task, bf16_elem):
    """Pure-JAX reference emulating the kernel's dtype/rounding choices."""
    hi = jax.lax.Precision.HIGHEST
    elem_dt = jnp.bfloat16 if bf16_elem else jnp.float32

    def layer(h, w, b):
        acc = jnp.dot(h.astype(jnp.bfloat16).astype(jnp.float32),
                      w.astype(jnp.float32), precision=hi)
        return jnp.maximum(acc.astype(elem_dt) + b.astype(elem_dt), 0.0)

    h = layer(x, params["w1"], params["b1"])
    h = layer(h, params["w2"], params["b2"])
    h = layer(h, params["w3"], params["b3"])
    o = jnp.dot(h.astype(jnp.bfloat16).astype(jnp.float32),
                params["wh"].astype(jnp.float32), precision=hi) + params["bh"]
    off, dim = params["head_slices"][task]
    return o[:, off:off + dim]


if __name__ == "__main__":
    key = jax.random.PRNGKey(0)
    k_param, k_x = jax.random.split(key)

    batch = 8
    input_dim = 32
    task_output_dims = {"classification": 16, "regression": 8}

    params = init_params(k_param, input_dim, task_output_dims)
    x = jax.random.normal(k_x, (batch, input_dim), jnp.float32)

    bf16_elem = _has_bf16_vpu()
    # bf16 elementwise intermediates (v6e/v7x) add one bf16 rounding per layer,
    # so tolerate slightly more divergence from the f32 reference there.
    tol = 1e-2 if bf16_elem else 2e-3

    for task in sorted(task_output_dims):
        out = multitask_net(params, x, task)
        out = jax.block_until_ready(out)
        ref = _reference(params, x, task, bf16_elem)
        assert out.shape == (batch, task_output_dims[task]), out.shape
        err = float(jnp.max(jnp.abs(out - ref)))
        assert jnp.allclose(out, ref, atol=tol, rtol=tol), (
            f"mismatch for task {task}: max abs err {err}")

    print("KERNEL_OK")
</pallas_src>

<mosaic_0001>
module attributes {stable_mosaic.version = 11 : i64} {
  func.func @_mtl_kernel(%arg0: i32, %arg1: memref<8x32xf32, #tpu.memory_space<vmem>>, %arg2: memref<32x1024xbf16, #tpu.memory_space<vmem>>, %arg3: memref<1x1024xf32, #tpu.memory_space<vmem>>, %arg4: memref<1024x512xbf16, #tpu.memory_space<vmem>>, %arg5: memref<1x512xf32, #tpu.memory_space<vmem>>, %arg6: memref<512x256xbf16, #tpu.memory_space<vmem>>, %arg7: memref<1x256xf32, #tpu.memory_space<vmem>>, %arg8: memref<256x128xbf16, #tpu.memory_space<vmem>>, %arg9: memref<1x128xf32, #tpu.memory_space<vmem>>, %arg10: memref<8x128xf32, #tpu.memory_space<vmem>>) attributes {dimension_semantics = [#tpu.dimension_semantics<parallel>], iteration_bounds = array<i64: 1>, scalar_prefetch = 0 : i64, scratch_operands = 0 : i64, tpu.core_type = #tpu.core_type<tc>, window_params = [{transform_indices = @transform_0, window_bounds = array<i64: 8, 32>}, {pipeline_mode = #tpu.pipeline_mode<synchronous>, transform_indices = @transform_1, window_bounds = array<i64: 32, 1024>}, {pipeline_mode = #tpu.pipeline_mode<synchronous>, transform_indices = @transform_2, window_bounds = array<i64: 1, 1024>}, {pipeline_mode = #tpu.pipeline_mode<synchronous>, transform_indices = @transform_3, window_bounds = array<i64: 1024, 512>}, {pipeline_mode = #tpu.pipeline_mode<synchronous>, transform_indices = @transform_4, window_bounds = array<i64: 1, 512>}, {pipeline_mode = #tpu.pipeline_mode<synchronous>, transform_indices = @transform_5, window_bounds = array<i64: 512, 256>}, {pipeline_mode = #tpu.pipeline_mode<synchronous>, transform_indices = @transform_6, window_bounds = array<i64: 1, 256>}, {pipeline_mode = #tpu.pipeline_mode<synchronous>, transform_indices = @transform_7, window_bounds = array<i64: 256, 128>}, {pipeline_mode = #tpu.pipeline_mode<synchronous>, transform_indices = @transform_8, window_bounds = array<i64: 1, 128>}, {transform_indices = @transform_9, window_bounds = array<i64: 8, 128>}]} {
    %c0 = arith.constant 0 : index
    %c0_0 = arith.constant 0 : index
    %0 = vector.load %arg1[%c0, %c0_0] : memref<8x32xf32, #tpu.memory_space<vmem>>, vector<8x32xf32>
    %1 = arith.truncf %0 : vector<8x32xf32> to vector<8x32xbf16>
    %c0_1 = arith.constant 0 : index
    %c0_2 = arith.constant 0 : index
    %2 = vector.load %arg2[%c0_1, %c0_2] : memref<32x1024xbf16, #tpu.memory_space<vmem>>, vector<32x1024xbf16>
    %cst = arith.constant dense<0.000000e+00> : vector<8x1024xf32>
    %3 = tpu.matmul %1, %2, %cst {dimension_numbers = #tpu.dot_dimension_numbers<[1], [0], [0], [1], [0, 0, 1, 1], [], []>} : vector<8x32xbf16>, vector<32x1024xbf16>, vector<8x1024xf32> -> vector<8x1024xf32>
    %c0_3 = arith.constant 0 : index
    %c0_4 = arith.constant 0 : index
    %4 = vector.load %arg3[%c0_3, %c0_4] : memref<1x1024xf32, #tpu.memory_space<vmem>>, vector<1x1024xf32>
    %5 = vector.broadcast %4 : vector<1x1024xf32> to vector<8x1024xf32>
    %6 = arith.addf %3, %5 : vector<8x1024xf32>
    %cst_5 = arith.constant 0.000000e+00 : f32
    %7 = vector.broadcast %cst_5 : f32 to vector<8x1024xf32>
    %8 = arith.maximumf %6, %7 : vector<8x1024xf32>
    %9 = arith.truncf %8 : vector<8x1024xf32> to vector<8x1024xbf16>
    %c0_6 = arith.constant 0 : index
    %c0_7 = arith.constant 0 : index
    %10 = vector.load %arg4[%c0_6, %c0_7] : memref<1024x512xbf16, #tpu.memory_space<vmem>>, vector<1024x512xbf16>
    %cst_8 = arith.constant dense<0.000000e+00> : vector<8x512xf32>
    %11 = tpu.matmul %9, %10, %cst_8 {dimension_numbers = #tpu.dot_dimension_numbers<[1], [0], [0], [1], [0, 0, 1, 1], [], []>} : vector<8x1024xbf16>, vector<1024x512xbf16>, vector<8x512xf32> -> vector<8x512xf32>
    %c0_9 = arith.constant 0 : index
    %c0_10 = arith.constant 0 : index
    %12 = vector.load %arg5[%c0_9, %c0_10] : memref<1x512xf32, #tpu.memory_space<vmem>>, vector<1x512xf32>
    %13 = vector.broadcast %12 : vector<1x512xf32> to vector<8x512xf32>
    %14 = arith.addf %11, %13 : vector<8x512xf32>
    %cst_11 = arith.constant 0.000000e+00 : f32
    %15 = vector.broadcast %cst_11 : f32 to vector<8x512xf32>
    %16 = arith.maximumf %14, %15 : vector<8x512xf32>
    %17 = arith.truncf %16 : vector<8x512xf32> to vector<8x512xbf16>
    %c0_12 = arith.constant 0 : index
    %c0_13 = arith.constant 0 : index
    %18 = vector.load %arg6[%c0_12, %c0_13] : memref<512x256xbf16, #tpu.memory_space<vmem>>, vector<512x256xbf16>
    %cst_14 = arith.constant dense<0.000000e+00> : vector<8x256xf32>
    %19 = tpu.matmul %17, %18, %cst_14 {dimension_numbers = #tpu.dot_dimension_numbers<[1], [0], [0], [1], [0, 0, 1, 1], [], []>} : vector<8x512xbf16>, vector<512x256xbf16>, vector<8x256xf32> -> vector<8x256xf32>
    %c0_15 = arith.constant 0 : index
    %c0_16 = arith.constant 0 : index
    %20 = vector.load %arg7[%c0_15, %c0_16] : memref<1x256xf32, #tpu.memory_space<vmem>>, vector<1x256xf32>
    %21 = vector.broadcast %20 : vector<1x256xf32> to vector<8x256xf32>
    %22 = arith.addf %19, %21 : vector<8x256xf32>
    %cst_17 = arith.constant 0.000000e+00 : f32
    %23 = vector.broadcast %cst_17 : f32 to vector<8x256xf32>
    %24 = arith.maximumf %22, %23 : vector<8x256xf32>
    %25 = arith.truncf %24 : vector<8x256xf32> to vector<8x256xbf16>
    %c0_18 = arith.constant 0 : index
    %c0_19 = arith.constant 0 : index
    %26 = vector.load %arg8[%c0_18, %c0_19] : memref<256x128xbf16, #tpu.memory_space<vmem>>, vector<256x128xbf16>
    %cst_20 = arith.constant dense<0.000000e+00> : vector<8x128xf32>
    %27 = tpu.matmul %25, %26, %cst_20 {dimension_numbers = #tpu.dot_dimension_numbers<[1], [0], [0], [1], [0, 0, 1, 1], [], []>} : vector<8x256xbf16>, vector<256x128xbf16>, vector<8x128xf32> -> vector<8x128xf32>
    %c0_21 = arith.constant 0 : index
    %c0_22 = arith.constant 0 : index
    %28 = vector.load %arg9[%c0_21, %c0_22] : memref<1x128xf32, #tpu.memory_space<vmem>>, vector<1x128xf32>
    %29 = vector.broadcast %28 : vector<1x128xf32> to vector<8x128xf32>
    %30 = arith.addf %27, %29 : vector<8x128xf32>
    %c0_23 = arith.constant 0 : index
    %c0_24 = arith.constant 0 : index
    %31 = vector.load %arg10[%c0_23, %c0_24] : memref<8x128xf32, #tpu.memory_space<vmem>>, vector<8x128xf32>
    tpu.vector_store %arg10[%c0_23, %c0_24], %30 {strides = array<i32>} : memref<8x128xf32, #tpu.memory_space<vmem>>, vector<8x128xf32>,
    return
  }
  func.func @transform_0(%arg0: i32) -> (i32, i32) {
    %c0_i32 = arith.constant 0 : i32
    %c0_i32_0 = arith.constant 0 : i32
    return %arg0, %c0_i32 : i32, i32
  }
  func.func @transform_1(%arg0: i32) -> (i32, i32) {
    %c0_i32 = arith.constant 0 : i32
    %c0_i32_0 = arith.constant 0 : i32
    %c0_i32_1 = arith.constant 0 : i32
    return %c0_i32, %c0_i32_0 : i32, i32
  }
  func.func @transform_2(%arg0: i32) -> (i32, i32) {
    %c0_i32 = arith.constant 0 : i32
    %c0_i32_0 = arith.constant 0 : i32
    %c0_i32_1 = arith.constant 0 : i32
    return %c0_i32, %c0_i32_0 : i32, i32
  }
  func.func @transform_3(%arg0: i32) -> (i32, i32) {
    %c0_i32 = arith.constant 0 : i32
    %c0_i32_0 = arith.constant 0 : i32
    %c0_i32_1 = arith.constant 0 : i32
    return %c0_i32, %c0_i32_0 : i32, i32
  }
  func.func @transform_4(%arg0: i32) -> (i32, i32) {
    %c0_i32 = arith.constant 0 : i32
    %c0_i32_0 = arith.constant 0 : i32
    %c0_i32_1 = arith.constant 0 : i32
    return %c0_i32, %c0_i32_0 : i32, i32
  }
  func.func @transform_5(%arg0: i32) -> (i32, i32) {
    %c0_i32 = arith.constant 0 : i32
    %c0_i32_0 = arith.constant 0 : i32
    %c0_i32_1 = arith.constant 0 : i32
    return %c0_i32, %c0_i32_0 : i32, i32
  }
  func.func @transform_6(%arg0: i32) -> (i32, i32) {
    %c0_i32 = arith.constant 0 : i32
    %c0_i32_0 = arith.constant 0 : i32
    %c0_i32_1 = arith.constant 0 : i32
    return %c0_i32, %c0_i32_0 : i32, i32
  }
  func.func @transform_7(%arg0: i32) -> (i32, i32) {
    %c0_i32 = arith.constant 0 : i32
    %c0_i32_0 = arith.constant 0 : i32
    %c0_i32_1 = arith.constant 0 : i32
    return %c0_i32, %c0_i32_0 : i32, i32
  }
  func.func @transform_8(%arg0: i32) -> (i32, i32) {
    %c0_i32 = arith.constant 0 : i32
    %c0_i32_0 = arith.constant 0 : i32
    %c0_i32_1 = arith.constant 0 : i32
    return %c0_i32, %c0_i32_0 : i32, i32
  }
  func.func @transform_9(%arg0: i32) -> (i32, i32) {
    %c0_i32 = arith.constant 0 : i32
    %c0_i32_0 = arith.constant 0 : i32
    return %arg0, %c0_i32 : i32, i32
  }
}

module attributes {stable_mosaic.version = 11 : i64} {
  func.func @_mtl_kernel(%arg0: i32, %arg1: memref<8x32xf32, #tpu.memory_space<vmem>>, %arg2: memref<32x1024xbf16, #tpu.memory_space<vmem>>, %arg3: memref<1x1024xf32, #tpu.memory_space<vmem>>, %arg4: memref<1024x512xbf16, #tpu.memory_space<vmem>>, %arg5: memref<1x512xf32, #tpu.memory_space<vmem>>, %arg6: memref<512x256xbf16, #tpu.memory_space<vmem>>, %arg7: memref<1x256xf32, #tpu.memory_space<vmem>>, %arg8: memref<256x128xbf16, #tpu.memory_space<vmem>>, %arg9: memref<1x128xf32, #tpu.memory_space<vmem>>, %arg10: memref<8x128xf32, #tpu.memory_space<vmem>>) attributes {dimension_semantics = [#tpu.dimension_semantics<parallel>], iteration_bounds = array<i64: 1>, scalar_prefetch = 0 : i64, scratch_operands = 0 : i64, tpu.core_type = #tpu.core_type<tc>, window_params = [{transform_indices = @transform_0, window_bounds = array<i64: 8, 32>}, {pipeline_mode = #tpu.pipeline_mode<synchronous>, transform_indices = @transform_1, window_bounds = array<i64: 32, 1024>}, {pipeline_mode = #tpu.pipeline_mode<synchronous>, transform_indices = @transform_2, window_bounds = array<i64: 1, 1024>}, {pipeline_mode = #tpu.pipeline_mode<synchronous>, transform_indices = @transform_3, window_bounds = array<i64: 1024, 512>}, {pipeline_mode = #tpu.pipeline_mode<synchronous>, transform_indices = @transform_4, window_bounds = array<i64: 1, 512>}, {pipeline_mode = #tpu.pipeline_mode<synchronous>, transform_indices = @transform_5, window_bounds = array<i64: 512, 256>}, {pipeline_mode = #tpu.pipeline_mode<synchronous>, transform_indices = @transform_6, window_bounds = array<i64: 1, 256>}, {pipeline_mode = #tpu.pipeline_mode<synchronous>, transform_indices = @transform_7, window_bounds = array<i64: 256, 128>}, {pipeline_mode = #tpu.pipeline_mode<synchronous>, transform_indices = @transform_8, window_bounds = array<i64: 1, 128>}, {transform_indices = @transform_9, window_bounds = array<i64: 8, 128>}]} {
    %c0 = arith.constant 0 : index
    %c0_0 = arith.constant 0 : index
    %0 = vector.load %arg1[%c0, %c0_0] : memref<8x32xf32, #tpu.memory_space<vmem>>, vector<8x32xf32>
    %1 = arith.truncf %0 : vector<8x32xf32> to vector<8x32xbf16>
    %c0_1 = arith.constant 0 : index
    %c0_2 = arith.constant 0 : index
    %2 = vector.load %arg2[%c0_1, %c0_2] : memref<32x1024xbf16, #tpu.memory_space<vmem>>, vector<32x1024xbf16>
    %cst = arith.constant dense<0.000000e+00> : vector<8x1024xf32>
    %3 = tpu.matmul %1, %2, %cst {dimension_numbers = #tpu.dot_dimension_numbers<[1], [0], [0], [1], [0, 0, 1, 1], [], []>} : vector<8x32xbf16>, vector<32x1024xbf16>, vector<8x1024xf32> -> vector<8x1024xf32>
    %c0_3 = arith.constant 0 : index
    %c0_4 = arith.constant 0 : index
    %4 = vector.load %arg3[%c0_3, %c0_4] : memref<1x1024xf32, #tpu.memory_space<vmem>>, vector<1x1024xf32>
    %5 = vector.broadcast %4 : vector<1x1024xf32> to vector<8x1024xf32>
    %6 = arith.addf %3, %5 : vector<8x1024xf32>
    %cst_5 = arith.constant 0.000000e+00 : f32
    %7 = vector.broadcast %cst_5 : f32 to vector<8x1024xf32>
    %8 = arith.maximumf %6, %7 : vector<8x1024xf32>
    %9 = arith.truncf %8 : vector<8x1024xf32> to vector<8x1024xbf16>
    %c0_6 = arith.constant 0 : index
    %c0_7 = arith.constant 0 : index
    %10 = vector.load %arg4[%c0_6, %c0_7] : memref<1024x512xbf16, #tpu.memory_space<vmem>>, vector<1024x512xbf16>
    %cst_8 = arith.constant dense<0.000000e+00> : vector<8x512xf32>
    %11 = tpu.matmul %9, %10, %cst_8 {dimension_numbers = #tpu.dot_dimension_numbers<[1], [0], [0], [1], [0, 0, 1, 1], [], []>} : vector<8x1024xbf16>, vector<1024x512xbf16>, vector<8x512xf32> -> vector<8x512xf32>
    %c0_9 = arith.constant 0 : index
    %c0_10 = arith.constant 0 : index
    %12 = vector.load %arg5[%c0_9, %c0_10] : memref<1x512xf32, #tpu.memory_space<vmem>>, vector<1x512xf32>
    %13 = vector.broadcast %12 : vector<1x512xf32> to vector<8x512xf32>
    %14 = arith.addf %11, %13 : vector<8x512xf32>
    %cst_11 = arith.constant 0.000000e+00 : f32
    %15 = vector.broadcast %cst_11 : f32 to vector<8x512xf32>
    %16 = arith.maximumf %14, %15 : vector<8x512xf32>
    %17 = arith.truncf %16 : vector<8x512xf32> to vector<8x512xbf16>
    %c0_12 = arith.constant 0 : index
    %c0_13 = arith.constant 0 : index
    %18 = vector.load %arg6[%c0_12, %c0_13] : memref<512x256xbf16, #tpu.memory_space<vmem>>, vector<512x256xbf16>
    %cst_14 = arith.constant dense<0.000000e+00> : vector<8x256xf32>
    %19 = tpu.matmul %17, %18, %cst_14 {dimension_numbers = #tpu.dot_dimension_numbers<[1], [0], [0], [1], [0, 0, 1, 1], [], []>} : vector<8x512xbf16>, vector<512x256xbf16>, vector<8x256xf32> -> vector<8x256xf32>
    %c0_15 = arith.constant 0 : index
    %c0_16 = arith.constant 0 : index
    %20 = vector.load %arg7[%c0_15, %c0_16] : memref<1x256xf32, #tpu.memory_space<vmem>>, vector<1x256xf32>
    %21 = vector.broadcast %20 : vector<1x256xf32> to vector<8x256xf32>
    %22 = arith.addf %19, %21 : vector<8x256xf32>
    %cst_17 = arith.constant 0.000000e+00 : f32
    %23 = vector.broadcast %cst_17 : f32 to vector<8x256xf32>
    %24 = arith.maximumf %22, %23 : vector<8x256xf32>
    %25 = arith.truncf %24 : vector<8x256xf32> to vector<8x256xbf16>
    %c0_18 = arith.constant 0 : index
    %c0_19 = arith.constant 0 : index
    %26 = vector.load %arg8[%c0_18, %c0_19] : memref<256x128xbf16, #tpu.memory_space<vmem>>, vector<256x128xbf16>
    %cst_20 = arith.constant dense<0.000000e+00> : vector<8x128xf32>
    %27 = tpu.matmul %25, %26, %cst_20 {dimension_numbers = #tpu.dot_dimension_numbers<[1], [0], [0], [1], [0, 0, 1, 1], [], []>} : vector<8x256xbf16>, vector<256x128xbf16>, vector<8x128xf32> -> vector<8x128xf32>
    %c0_21 = arith.constant 0 : index
    %c0_22 = arith.constant 0 : index
    %28 = vector.load %arg9[%c0_21, %c0_22] : memref<1x128xf32, #tpu.memory_space<vmem>>, vector<1x128xf32>
    %29 = vector.broadcast %28 : vector<1x128xf32> to vector<8x128xf32>
    %30 = arith.addf %27, %29 : vector<8x128xf32>
    %c0_23 = arith.constant 0 : index
    %c0_24 = arith.constant 0 : index
    %31 = vector.load %arg10[%c0_23, %c0_24] : memref<8x128xf32, #tpu.memory_space<vmem>>, vector<8x128xf32>
    tpu.vector_store %arg10[%c0_23, %c0_24], %30 {strides = array<i32>} : memref<8x128xf32, #tpu.memory_space<vmem>>, vector<8x128xf32>,
    return
  }
  func.func @transform_0(%arg0: i32) -> (i32, i32) {
    %c0_i32 = arith.constant 0 : i32
    %c0_i32_0 = arith.constant 0 : i32
    return %arg0, %c0_i32 : i32, i32
  }
  func.func @transform_1(%arg0: i32) -> (i32, i32) {
    %c0_i32 = arith.constant 0 : i32
    %c0_i32_0 = arith.constant 0 : i32
    %c0_i32_1 = arith.constant 0 : i32
    return %c0_i32, %c0_i32_0 : i32, i32
  }
  func.func @transform_2(%arg0: i32) -> (i32, i32) {
    %c0_i32 = arith.constant 0 : i32
    %c0_i32_0 = arith.constant 0 : i32
    %c0_i32_1 = arith.constant 0 : i32
    return %c0_i32, %c0_i32_0 : i32, i32
  }
  func.func @transform_3(%arg0: i32) -> (i32, i32) {
    %c0_i32 = arith.constant 0 : i32
    %c0_i32_0 = arith.constant 0 : i32
    %c0_i32_1 = arith.constant 0 : i32
    return %c0_i32, %c0_i32_0 : i32, i32
  }
  func.func @transform_4(%arg0: i32) -> (i32, i32) {
    %c0_i32 = arith.constant 0 : i32
    %c0_i32_0 = arith.constant 0 : i32
    %c0_i32_1 = arith.constant 0 : i32
    return %c0_i32, %c0_i32_0 : i32, i32
  }
  func.func @transform_5(%arg0: i32) -> (i32, i32) {
    %c0_i32 = arith.constant 0 : i32
    %c0_i32_0 = arith.constant 0 : i32
    %c0_i32_1 = arith.constant 0 : i32
    return %c0_i32, %c0_i32_0 : i32, i32
  }
  func.func @transform_6(%arg0: i32) -> (i32, i32) {
    %c0_i32 = arith.constant 0 : i32
    %c0_i32_0 = arith.constant 0 : i32
    %c0_i32_1 = arith.constant 0 : i32
    return %c0_i32, %c0_i32_0 : i32, i32
  }
  func.func @transform_7(%arg0: i32) -> (i32, i32) {
    %c0_i32 = arith.constant 0 : i32
    %c0_i32_0 = arith.constant 0 : i32
    %c0_i32_1 = arith.constant 0 : i32
    return %c0_i32, %c0_i32_0 : i32, i32
  }
  func.func @transform_8(%arg0: i32) -> (i32, i32) {
    %c0_i32 = arith.constant 0 : i32
    %c0_i32_0 = arith.constant 0 : i32
    %c0_i32_1 = arith.constant 0 : i32
    return %c0_i32, %c0_i32_0 : i32, i32
  }
  func.func @transform_9(%arg0: i32) -> (i32, i32) {
    %c0_i32 = arith.constant 0 : i32
    %c0_i32_0 = arith.constant 0 : i32
    return %arg0, %c0_i32 : i32, i32
  }
}

</mosaic_0001>

<bundles_post_ra>
// kernel: _mtl_forward.1
= control target key start
LH: loop header
LB: loop body
LE: loop exit
PB: predicated region body
PF: predicated region fallthrough
CT: control target
= control target key end

     0   :  { %14 = vsyncpa [#allocation3], 0  ;;  %s4251_s0 = inlined_call_operand.hbm [shape: f32[8,32], index: 0, kind: input, shape index: {}]   ;;  %s4252_s1 = inlined_call_operand.hbm [shape: bf16[32,1024], index: 1, kind: input, shape index: {}]   ;;  %s4253_s2 = inlined_call_operand.hbm [shape: f32[1,1024], index: 2, kind: input, shape index: {}]   ;;  %s4254_s3 = inlined_call_operand.hbm [shape: bf16[1024,512], index: 3, kind: input, shape index: {}]   ;;  %s4255_s4 = inlined_call_operand.vmem [shape: f32[1,512], index: 4, kind: input, shape index: {}]   ;;  %s4256_s5 = inlined_call_operand.hbm [shape: bf16[512,256], index: 5, kind: input, shape index: {}]   ;;  %s4257_s6 = inlined_call_operand.vmem [shape: f32[1,256], index: 6, kind: input, shape index: {}]   ;;  %s4258_s7 = inlined_call_operand.hbm [shape: bf16[256,128], index: 7, kind: input, shape index: {}]   ;;  %s4259_s8 = inlined_call_operand.vmem [shape: f32[1,128], index: 8, kind: input, shape index: {}]   ;;  %s4260_s9 = inlined_call_operand.hbm [shape: f32[8,128], index: 9, kind: output, shape index: {}]  }
   0x1   :  { %15 = vsyncpa [#allocation6], 0 }
   0x2   :  { %16 = vsyncpa [#allocation9], 0 }
   0x3   :  { %17 = vsyncpa [#allocation12], 0 }
   0x4   :  { %18 = vsyncpa [#allocation4], 0  ;;  %s4047_s30 = smov [#allocation5]  }
   0x5   :  { %s34_s10 = sshll.u32 %s4047_s30, 4  ;;  %s35_s10 = int_to_ptr.vmem [resolvable:$true] %s34_s10 }
   0x6   :  { %s3905_s11 = scalar_lea.vmem %s35_s10, 2048  ;;  %p3910_p1 = scmp.lt.s32.totalorder %s35_s10, %s35_s10 }
   0x7   :  { %p3906_p0 = scmp.ne.s32.totalorder %s35_s10, %s3905_s11  ;;  %p3911_p2 = scmp.lt.s32.totalorder %s3905_s11, %s3905_s11 }
   0x9   :  { %p3912_p3 = por %p3911_p2, %p3910_p1 }
   0xb   :  { %p3913_p4 = pnand %p3912_p3, %p3906_p0 }
   0xd   :  { %3916 = shalt.err (!%p3913_p4)
}
   0xe   :  { %s4048_s12 = smov 512   ;;  %s4049_s13 = smov 32  }
   0xf   :  { %40 = dma.hbm_to_vmem [thread:$0]  %s4252_s1, 2048, %s35_s10, [#allocation6], %s4048_s12, %s4048_s12, %s4049_s13  }
  0x10   :  { %s4050_s16 = smov [#allocation8]  }
  0x11   :  { %s56_s17 = sshll.u32 %s4050_s16, 4  ;;  %s57_s17 = int_to_ptr.vmem [resolvable:$true] %s56_s17 }
  0x12   :  { %s3925_s18 = scalar_lea.vmem %s57_s17, 32768  ;;  %p3930_p6 = scmp.lt.s32.totalorder %s57_s17, %s57_s17 }
  0x13   :  { %p3926_p5 = scmp.ne.s32.totalorder %s57_s17, %s3925_s18  ;;  %p3931_p7 = scmp.lt.s32.totalorder %s3925_s18, %s3925_s18 }
  0x15   :  { %p3932_p8 = por %p3931_p7, %p3930_p6 }
  0x17   :  { %p3933_p9 = pnand %p3932_p8, %p3926_p5 }
  0x19   :  { %3936 = shalt.err (!%p3933_p9)
}
  0x1a   :  { %s4051_s19 = smov 256   ;;  %s4052_s20 = smov 16  }
  0x1b   :  { %62 = dma.hbm_to_vmem [thread:$0]  %s4254_s3, 32768, %s57_s17, [#allocation9], %s4051_s19, %s4051_s19, %s4052_s20  }
  0x1c   :  { %s4053_s23 = smov [#allocation2]   ;;  %s4054_s25 = smov [#allocation7]  }
  0x1d   :  { %s25_s24 = sshll.u32 %s4053_s23, 4  ;;  %s47_s1 = sshll.u32 %s4054_s25, 4  ;;  %s26_s24 = int_to_ptr.vmem [resolvable:$true] %s25_s24  ;;  %s48_s1 = int_to_ptr.vmem [resolvable:$true] %s47_s1 }
  0x1e   :  { %s3945_s26 = scalar_lea.vmem %s26_s24, 128  ;;  %p3950_p11 = scmp.lt.s32.totalorder %s26_s24, %s26_s24 }
  0x1f   :  { %p3946_p10 = scmp.ne.s32.totalorder %s26_s24, %s3945_s26  ;;  %p3951_p12 = scmp.lt.s32.totalorder %s3945_s26, %s3945_s26 }
  0x21   :  { %p3952_p13 = por %p3951_p12, %p3950_p11 }
  0x23   :  { %p3953_p0 = pnand %p3952_p13, %p3946_p10 }
  0x25   :  { %3956 = shalt.err (!%p3953_p0)
}
  0x26   :  { %28 = dma.hbm_to_vmem [thread:$0]  %s4251_s0, 128, %s26_s24, [#allocation3]  }
  0x27   :  { %s3965_s29 = scalar_lea.vmem %s48_s1, 128  ;;  %p3970_p2 = scmp.lt.s32.totalorder %s48_s1, %s48_s1 }
  0x28   :  { %p3966_p1 = scmp.ne.s32.totalorder %s48_s1, %s3965_s29  ;;  %p3971_p3 = scmp.lt.s32.totalorder %s3965_s29, %s3965_s29 }
  0x2a   :  { %p3972_p4 = por %p3971_p3, %p3970_p2 }
  0x2c   :  { %p3973_p5 = pnand %p3972_p4, %p3966_p1 }
  0x2e   :  { %3976 = shalt.err (!%p3973_p5)
}
  0x2f   :  { %50 = dma.hbm_to_vmem [thread:$0]  %s4253_s2, 128, %s48_s1, [#allocation6]  }
  0x30   :  { %s4055_s10 = smov [#allocation10]  }
  0x31   :  { %s70_s11 = sshll.u32 %s4055_s10, 4  ;;  %s71_s11 = int_to_ptr.vmem [resolvable:$true] %s70_s11 }
  0x32   :  { %s3985_s12 = scalar_lea.vmem %s71_s11, 8192  ;;  %p3990_p7 = scmp.lt.s32.totalorder %s71_s11, %s71_s11 }
  0x33   :  { %p3986_p6 = scmp.ne.s32.totalorder %s71_s11, %s3985_s12  ;;  %p3991_p8 = scmp.lt.s32.totalorder %s3985_s12, %s3985_s12 }
  0x35   :  { %p3992_p9 = por %p3991_p8, %p3990_p7 }
  0x37   :  { %p3993_p10 = pnand %p3992_p9, %p3986_p6 }
  0x39   :  { %3996 = shalt.err (!%p3993_p10)
}
  0x3a   :  { %s4056_s0 = smov 128   ;;  %s4057_s13 = smov 8  }
  0x3b   :  { %76 = dma.hbm_to_vmem [thread:$0]  %s4256_s5, 8192, %s71_s11, [#allocation9], %s4056_s0, %s4056_s0, %s4057_s13  }
  0x3c   :  { %s4058_s16 = smov [#allocation11]  }
  0x3d   :  { %s84_s17 = sshll.u32 %s4058_s16, 4  ;;  %s85_s17 = int_to_ptr.vmem [resolvable:$true] %s84_s17 }
  0x3e   :  { %s4005_s2 = scalar_lea.vmem %s85_s17, 2048  ;;  %p4010_p12 = scmp.lt.s32.totalorder %s85_s17, %s85_s17 }
  0x3f   :  { %p4006_p11 = scmp.ne.s32.totalorder %s85_s17, %s4005_s2  ;;  %p4011_p13 = scmp.lt.s32.totalorder %s4005_s2, %s4005_s2 }
  0x41   :  { %p4012_p0 = por %p4011_p13, %p4010_p12 }
  0x43   :  { %p4013_p1 = pnand %p4012_p0, %p4006_p11 }
  0x45   :  { %4016 = shalt.err (!%p4013_p1)
}
  0x46   :  { %s4059_s18 = smov 64   ;;  %s4060_s19 = smov 4  }
  0x47   :  { %90 = dma.hbm_to_vmem [thread:$0]  %s4258_s7, 2048, %s85_s17, [#allocation12], %s4059_s18, %s4059_s18, %s4060_s19  }
  0x48   :  { %4037 = dma.done.wait [#allocation3], 128  }
  0x49   :  { %4038 = vsyncadd [#allocation3], 4294967168 }
  0x4a   :  { %4039 = dma.done.wait [#allocation6], 2176  }
  0x4b   :  { %4040 = vsyncadd [#allocation6], 4294965120 }
  0x4c   :  { %4041 = dma.done.wait [#allocation9], 40960  }
  0x4d   :  { %4042 = vsyncadd [#allocation9], 4294926336 }
  0x4e   :  { %4043 = dma.done.wait [#allocation12], 2048  }
  0x4f   :  { %4044 = vsyncadd [#allocation12], 4294965248  ;;  %v4061_v0 = vmov 0   ;;  %v122_v1 = vld [vmem:[#allocation5 + $0x40] sm:$0xff]  ;;  %v123_v8 = vld [vmem:[#allocation5 + $0x48] sm:$0xff]  ;;  %vm252_vm0 = vcmask 261120  }
  0x50   :  { %288 = vmatprep.mubr.bf16.mxu1 %v4061_v0  ;;  %v126_v2 = vld [vmem:[#allocation5 + $0x60] sm:$0xff]  ;;  %v127_v9 = vld [vmem:[#allocation5 + $0x68] sm:$0xff]  ;;  %v112_v11 = vld [vmem:[#allocation2] sm:$0xff]  ;;  %s4062_s24 = smov [#allocation13]  }
  0x51   :  { %v114_v3 = vld [vmem:[#allocation5] sm:$0xff]  ;;  %v3015_v4 = vcombine.high %v122_v1, %v126_v2  ;;  %v3014_v5 = vcombine.low %v122_v1, %v126_v2  ;;  %v3017_v12 = vcombine.high %v123_v8, %v127_v9  ;;  %v115_v13 = vld [vmem:[#allocation5 + $0x8] sm:$0xff]  ;;  %v4132_v17 = vpack.c.bf16 %v112_v11, %v112_v11  ;;  %v124_v22 = vld [vmem:[#allocation5 + $0x50] sm:$0xff]  ;;  %s2994_s25 = sshll.u32 %s4062_s24, 4  ;;  %s2995_s25 = int_to_ptr.vmem [resolvable:$true] %s2994_s25 }
  0x52   :  { %v118_v6 = vld [vmem:[#allocation5 + $0x20] sm:$0xff]  ;;  %v119_v14 = vld [vmem:[#allocation5 + $0x28] sm:$0xff]  ;;  %v3016_v19 = vcombine.low %v123_v8, %v127_v9  ;;  %v128_v23 = vld [vmem:[#allocation5 + $0x70] sm:$0xff]  ;;  %s4017_s1 = scalar_lea.vmem %s2995_s25, 128  ;;  %p4022_p3 = scmp.lt.s32.totalorder %s2995_s25, %s2995_s25 }
  0x53   :  { %v3007_v7 = vcombine.high %v114_v3, %v118_v6  ;;  %268 = vmatprep.subr.bf16.mxu1 %v3015_v4  ;;  %v3006_v10 = vcombine.low %v114_v3, %v118_v6  ;;  %v3401_v15 = vld [vmem:[#allocation8 + $0xe4] ss:$16 sps:$4 sm:$0xff]   ;;  %v3403_v16 = vld [vmem:[#allocation8 + $0xe0] ss:$16 sps:$4 sm:$0xff]   ;;  %v3009_v20 = vcombine.high %v115_v13, %v119_v14  ;;  %v3008_v25 = vcombine.low %v115_v13, %v119_v14  ;;  %v116_v26 = vld [vmem:[#allocation5 + $0x10] sm:$0xff]  ;;  %p4018_p2 = scmp.ne.s32.totalorder %s2995_s25, %s4017_s1  ;;  %p4023_p4 = scmp.lt.s32.totalorder %s4017_s1, %s4017_s1 }
  0x54   :  { %269 = vmatpush1.bf16.msra.mxu1 %v3014_v5  ;;  %v3404_v18 = vld [vmem:[#allocation8 + $0xc4] ss:$16 sps:$4 sm:$0xff]   ;;  %1994 = vmatprep.subr.bf16.mxu0 %v3401_v15  ;;  %v3406_v21 = vld [vmem:[#allocation8 + $0xc0] ss:$16 sps:$4 sm:$0xff]   ;;  %v3019_v27 = vcombine.high %v124_v22, %v128_v23  ;;  %v120_v28 = vld [vmem:[#allocation5 + $0x30] sm:$0xff]  ;;  %v3018_v31 = vcombine.low %v124_v22, %v128_v23 }
  0x55   :  { %270 = vmatprep.subr.bf16.mxu1 %v3007_v7  ;;  %1995 = vmatpush1.bf16.msra.mxu0 %v3403_v16  ;;  %v3407_v24 = vld [vmem:[#allocation8 + $0xa4] ss:$16 sps:$4 sm:$0xff]   ;;  %v3412_v29 = vld [vmem:[#allocation8 + $0xa0] ss:$16 sps:$4 sm:$0xff]   ;;  %v3011_v32 = vcombine.high %v116_v26, %v120_v28  ;;  %v3010_v37 = vcombine.low %v116_v26, %v120_v28  ;;  %p4024_p5 = por %p4023_p4, %p4022_p3 }
  0x56   :  { %1996 = vmatprep.subr.bf16.mxu0 %v3404_v18  ;;  %v3413_v30 = vld [vmem:[#allocation8 + $0x84] ss:$16 sps:$4 sm:$0xff]   ;;  %v3418_v33 = vld [vmem:[#allocation8 + $0x80] ss:$16 sps:$4 sm:$0xff]  }
  0x57   :  { %v125_v34 = vld [vmem:[#allocation5 + $0x58] sm:$0xff]  ;;  %p4025_p6 = pnand %p4024_p5, %p4018_p2 }
  0x58   :  { %271 = vmatpush1.bf16.msra.mxu1 %v3006_v10  ;;  %v129_v35 = vld [vmem:[#allocation5 + $0x78] sm:$0xff] }
  0x59   :  { %309 = vmatprep.subr.bf16.mxu1 %v3017_v12  ;;  %1997 = vmatpush1.bf16.msra.mxu0 %v3406_v21  ;;  %v3419_v36 = vld [vmem:[#allocation8 + $0x64] ss:$16 sps:$4 sm:$0xff]   ;;  %v3021_v39 = vcombine.high %v125_v34, %v129_v35  ;;  %v3424_v41 = vld [vmem:[#allocation8 + $0x60] ss:$16 sps:$4 sm:$0xff]   ;;  %v3020_v43 = vcombine.low %v125_v34, %v129_v35 }
  0x5a   :  { %1998 = vmatprep.subr.bf16.mxu0 %v3407_v24  ;;  %v117_v38 = vld [vmem:[#allocation5 + $0x18] sm:$0xff] }
  0x5b   :  { %3022 = vmatmul.mubr.msk.bf16.vlgmr.msra.gmra.mxu1 %vm252_vm0, %v4132_v17  ;;  %v121_v40 = vld [vmem:[#allocation5 + $0x38] sm:$0xff] }
  0x5c   :  { %310 = vmatpush1.bf16.msra.mxu1 %v3016_v19  ;;  %329 = vmatprep.mubr.bf16.mxu1 %v4061_v0  ;;  %v3425_v42 = vld [vmem:[#allocation8 + $0x44] ss:$16 sps:$4 sm:$0xff]   ;;  %v3013_v44 = vcombine.high %v117_v38, %v121_v40  ;;  %v3430_v45 = vld [vmem:[#allocation8 + $0x40] ss:$16 sps:$4 sm:$0xff]   ;;  %v3012_v47 = vcombine.low %v117_v38, %v121_v40  ;;  %v4150_v40 = vld [vmem:[#allocation7] sm:$0xff] }
  0x5d   :  { %311 = vmatprep.subr.bf16.mxu1 %v3009_v20  ;;  %1999 = vmatpush1.bf16.msra.mxu0 %v3412_v29  ;;  %v3431_v46 = vld [vmem:[#allocation8 + $0x24] ss:$16 sps:$4 sm:$0xff]   ;;  %v3436_v49 = vld [vmem:[#allocation8 + $0x20] ss:$16 sps:$4 sm:$0xff]  }
  0x5e   :  { %2000 = vmatprep.subr.bf16.mxu0 %v3413_v30  ;;  %v3411_v48 = vld [vmem:[#allocation8 + $0x2e4] ss:$16 sps:$4 sm:$0xff]   ;;  %v3409_v51 = vld [vmem:[#allocation8 + $0x2e0] ss:$16 sps:$4 sm:$0xff]  }
  0x5f   :  { %v3437_v50 = vld [vmem:[#allocation8 + $0x4] ss:$16 sps:$4 sm:$0xff]   ;;  %v3442_v53 = vld [vmem:[#allocation8] ss:$16 sps:$4 sm:$0xff]  }
  0x60   :  { %312 = vmatpush1.bf16.msra.mxu1 %v3008_v25  ;;  %v3417_v52 = vld [vmem:[#allocation8 + $0x2c4] ss:$16 sps:$4 sm:$0xff]   ;;  %v3415_v55 = vld [vmem:[#allocation8 + $0x2c0] ss:$16 sps:$4 sm:$0xff]  }
  0x61   :  { %350 = vmatprep.subr.bf16.mxu1 %v3019_v27  ;;  %2001 = vmatpush1.bf16.msra.mxu0 %v3418_v33  ;;  %v3443_v54 = vld [vmem:[#allocation8 + $0x1e4] ss:$16 sps:$4 sm:$0xff]   ;;  %v3448_v57 = vld [vmem:[#allocation8 + $0x1e0] ss:$16 sps:$4 sm:$0xff]  }
  0x62   :  { %2002 = vmatprep.subr.bf16.mxu0 %v3419_v36  ;;  %v3423_v56 = vld [vmem:[#allocation8 + $0x2a4] ss:$16 sps:$4 sm:$0xff]   ;;  %v3421_v59 = vld [vmem:[#allocation8 + $0x2a0] ss:$16 sps:$4 sm:$0xff]  }
  0x63   :  { %3023 = vmatmul.mubr.msk.bf16.vlgmr.msra.gmra.mxu1 %vm252_vm0, %v4132_v17  ;;  %v3449_v58 = vld [vmem:[#allocation8 + $0x1c4] ss:$16 sps:$4 sm:$0xff]   ;;  %v3454_v61 = vld [vmem:[#allocation8 + $0x1c0] ss:$16 sps:$4 sm:$0xff]  }
  0x64   :  { %351 = vmatpush1.bf16.msra.mxu1 %v3018_v31  ;;  %370 = vmatprep.mubr.bf16.mxu1 %v4061_v0  ;;  %v3429_v60 = vld [vmem:[#allocation8 + $0x284] ss:$16 sps:$4 sm:$0xff]   ;;  %v3427_v63 = vld [vmem:[#allocation8 + $0x280] ss:$16 sps:$4 sm:$0xff]  }
  0x65   :  { %352 = vmatprep.subr.bf16.mxu1 %v3011_v32  ;;  %2003 = vmatpush1.bf16.msra.mxu0 %v3424_v41  ;;  %v3455_v62 = vld [vmem:[#allocation8 + $0x1a4] ss:$16 sps:$4 sm:$0xff]   ;;  %v3460_v1 = vld [vmem:[#allocation8 + $0x1a0] ss:$16 sps:$4 sm:$0xff]  }
  0x66   :  { %2004 = vmatprep.subr.bf16.mxu0 %v3425_v42  ;;  %v3461_v2 = vld [vmem:[#allocation8 + $0x184] ss:$16 sps:$4 sm:$0xff]   ;;  %v3433_v3 = vld [vmem:[#allocation8 + $0x260] ss:$16 sps:$4 sm:$0xff]  }
  0x67   :  { %v3441_v4 = vld [vmem:[#allocation8 + $0x244] ss:$16 sps:$4 sm:$0xff]   ;;  %v3466_v5 = vld [vmem:[#allocation8 + $0x180] ss:$16 sps:$4 sm:$0xff]  }
  0x68   :  { %353 = vmatpush1.bf16.msra.mxu1 %v3010_v37  ;;  %v3467_v6 = vld [vmem:[#allocation8 + $0x164] ss:$16 sps:$4 sm:$0xff]   ;;  %v3439_v7 = vld [vmem:[#allocation8 + $0x240] ss:$16 sps:$4 sm:$0xff]   ;;  %v132_v37 = vlaneseq }
  0x69   :  { %391 = vmatprep.subr.bf16.mxu1 %v3021_v39  ;;  %2005 = vmatpush1.bf16.msra.mxu0 %v3430_v45  ;;  %v3447_v8 = vld [vmem:[#allocation8 + $0x224] ss:$16 sps:$4 sm:$0xff]   ;;  %v3472_v9 = vld [vmem:[#allocation8 + $0x160] ss:$16 sps:$4 sm:$0xff]  }
  0x6a   :  { %2006 = vmatprep.subr.bf16.mxu0 %v3431_v46  ;;  %v3473_v10 = vld [vmem:[#allocation8 + $0x144] ss:$16 sps:$4 sm:$0xff]   ;;  %v3445_v11 = vld [vmem:[#allocation8 + $0x220] ss:$16 sps:$4 sm:$0xff]   ;;  %v4145_v38 = vshrl.u32 %v132_v37, 7 }
  0x6b   :  { %3024 = vmatmul.mubr.msk.bf16.vlgmr.msra.gmra.mxu1 %vm252_vm0, %v4132_v17  ;;  %v3453_v12 = vld [vmem:[#allocation8 + $0x204] ss:$16 sps:$4 sm:$0xff]   ;;  %v3478_v13 = vld [vmem:[#allocation8 + $0x140] ss:$16 sps:$4 sm:$0xff]  }
  0x6c   :  { %392 = vmatpush1.bf16.msra.mxu1 %v3020_v43  ;;  %411 = vmatprep.mubr.bf16.mxu1 %v4061_v0  ;;  %v3435_v0 = vld [vmem:[#allocation8 + $0x264] ss:$16 sps:$4 sm:$0xff]   ;;  %v3451_v14 = vld [vmem:[#allocation8 + $0x200] ss:$16 sps:$4 sm:$0xff]   ;;  %v4148_v39 = vsub.s32 0, %v4145_v38  ;;  %v4153_v41 = vsub.s32 1, %v4145_v38 }
  0x6d   :  { %393 = vmatprep.subr.bf16.mxu1 %v3013_v44  ;;  %2007 = vmatpush1.bf16.msra.mxu0 %v3436_v49  ;;  %v3459_v15 = vld [vmem:[#allocation8 + $0x3e4] ss:$16 sps:$4 sm:$0xff]   ;;  %v3457_v16 = vld [vmem:[#allocation8 + $0x3e0] ss:$16 sps:$4 sm:$0xff]   ;;  %v142_v46 = vsub.s32 2, %v4145_v38  ;;  %v146_v49 = vsub.s32 3, %v4145_v38 }
  0x6e   :  { %2008 = vmatprep.subr.bf16.mxu0 %v3437_v50  ;;  %v3463_v18 = vld [vmem:[#allocation8 + $0x3c0] ss:$16 sps:$4 sm:$0xff]   ;;  %v3471_v19 = vld [vmem:[#allocation8 + $0x3a4] ss:$16 sps:$4 sm:$0xff]   ;;  %v135_v42 = vrot.slane %v4150_v40, %v4148_v39  ;;  %v139_v43 = vrot.slane %v4150_v40, %v4153_v41 }
  0x6f   :  { %v3469_v20 = vld [vmem:[#allocation8 + $0x3a0] ss:$16 sps:$4 sm:$0xff]   ;;  %v3477_v21 = vld [vmem:[#allocation8 + $0x384] ss:$16 sps:$4 sm:$0xff]  }
  0x70   :  { %394 = vmatpush1.bf16.msra.mxu1 %v3012_v47  ;;  %v3475_v22 = vld [vmem:[#allocation8 + $0x380] ss:$16 sps:$4 sm:$0xff]   ;;  %v3479_v23 = vld [vmem:[#allocation8 + $0x124] ss:$16 sps:$4 sm:$0xff]  }
  0x71   :  { %2035 = vmatprep.subr.bf16.mxu1 %v3411_v48  ;;  %2009 = vmatpush1.bf16.msra.mxu0 %v3442_v53  ;;  %v3483_v24 = vld [vmem:[#allocation8 + $0x364] ss:$16 sps:$4 sm:$0xff]   ;;  %v3484_v25 = vld [vmem:[#allocation8 + $0x120] ss:$16 sps:$4 sm:$0xff]   ;;  %v143_v53 = vrot.slane %v4150_v40, %v142_v46 }
  0x72   :  { %2010 = vmatprep.subr.bf16.mxu0 %v3443_v54  ;;  %v3481_v26 = vld [vmem:[#allocation8 + $0x360] ss:$16 sps:$4 sm:$0xff]   ;;  %v3485_v27 = vld [vmem:[#allocation8 + $0x104] ss:$16 sps:$4 sm:$0xff]  }
  0x73   :  { %3025 = vmatmul.mubr.msk.bf16.vlgmr.msra.gmra.mxu1 %vm252_vm0, %v4132_v17  ;;  %v3465_v17 = vld [vmem:[#allocation8 + $0x3c4] ss:$16 sps:$4 sm:$0xff]   ;;  %v3490_v29 = vld [vmem:[#allocation8 + $0x100] ss:$16 sps:$4 sm:$0xff]  }
  0x74   :  { %2036 = vmatpush1.bf16.msra.mxu1 %v3409_v51  ;;  %v3489_v28 = vld [vmem:[#allocation8 + $0x344] ss:$16 sps:$4 sm:$0xff]   ;;  %v3487_v31 = vld [vmem:[#allocation8 + $0x340] ss:$16 sps:$4 sm:$0xff]  }
  0x75   :  { %2037 = vmatprep.subr.bf16.mxu1 %v3417_v52  ;;  %2011 = vmatpush2.bf16.msra.mxu0 %v3448_v57  ;;  %v3496_v30 = vld [vmem:[#allocation8 + $0x4e4] ss:$16 sps:$4 sm:$0xff]   ;;  %v3491_v33 = vld [vmem:[#allocation8 + $0x320] ss:$16 sps:$4 sm:$0xff]   ;;  %v147_v57 = vrot.slane %v4150_v40, %v146_v49 }
  0x76   :  { %2012 = vmatprep.subr.bf16.mxu0 %v3449_v58  ;;  %v3493_v32 = vld [vmem:[#allocation8 + $0x324] ss:$16 sps:$4 sm:$0xff]   ;;  %v3497_v35 = vld [vmem:[#allocation8 + $0x300] ss:$16 sps:$4 sm:$0xff]  }
  0x77   :  { %v3499_v34 = vld [vmem:[#allocation8 + $0x304] ss:$16 sps:$4 sm:$0xff]  }
  0x78   :  { %2038 = vmatpush1.bf16.msra.mxu1 %v3415_v55  ;;  %v3508_v36 = vld [vmem:[#allocation8 + $0x6e4] ss:$16 sps:$4 sm:$0xff]  }
  0x79   :  { %2039 = vmatprep.subr.bf16.mxu1 %v3423_v56  ;;  %2013 = vmatpush2.bf16.msra.mxu0 %v3454_v61  ;;  %v3494_v56 = vld [vmem:[#allocation8 + $0x4e0] ss:$16 sps:$4 sm:$0xff]   ;;  %v3532_v37 = vld [vmem:[#allocation8 + $0x664] ss:$16 sps:$4 sm:$0xff]  }
  0x7a   :  { %2014 = vmatprep.subr.bf16.mxu0 %v3455_v62 }
  0x7c   :  { %2040 = vmatpush1.bf16.msra.mxu1 %v3421_v59 }
  0x7d   :  { %2041 = vmatprep.subr.bf16.mxu1 %v3429_v60  ;;  %2015 = vmatpush2.bf16.msra.mxu0 %v3460_v1  ;;  %v3502_v60 = vld [vmem:[#allocation8 + $0x4c4] ss:$16 sps:$4 sm:$0xff]   ;;  %v154_v1 = vsub.s32 5, %v4145_v38 }
  0x7e   :  { %2016 = vmatprep.subr.bf16.mxu0 %v3461_v2 }
  0x80   :  { %2042 = vmatpush1.bf16.msra.mxu1 %v3427_v63 }
  0x81   :  { %2043 = vmatprep.subr.bf16.mxu1 %v3435_v0  ;;  %2017 = vmatpush2.bf16.msra.mxu0 %v3466_v5  ;;  %v3500_v0 = vld [vmem:[#allocation8 + $0x4c0] ss:$16 sps:$4 sm:$0xff]  }
  0x82   :  { %2018 = vmatprep.subr.bf16.mxu0 %v3467_v6 }
  0x84   :  { %2044 = vmatpush1.bf16.msra.mxu1 %v3433_v3 }
  0x85   :  { %2045 = vmatprep.subr.bf16.mxu1 %v3441_v4  ;;  %2019 = vmatpush2.bf16.msra.mxu0 %v3472_v9  ;;  %v3505_v4 = vld [vmem:[#allocation8 + $0x4a4] ss:$16 sps:$4 sm:$0xff]   ;;  %v3506_v9 = vld [vmem:[#allocation8 + $0x6e0] ss:$16 sps:$4 sm:$0xff]  }
  0x86   :  { %2020 = vmatprep.subr.bf16.mxu0 %v3473_v10  ;;  %v155_v10 = vrot.slane %v4150_v40, %v154_v1  ;;  %v3556_v1 = vld [vmem:[#allocation8 + $0x7e4] ss:$16 sps:$4 sm:$0xff]  }
  0x88   :  { %2046 = vmatpush1.bf16.msra.mxu1 %v3439_v7 }
  0x89   :  { %2047 = vmatprep.subr.bf16.mxu1 %v3447_v8  ;;  %2021 = vmatpush2.bf16.msra.mxu0 %v3478_v13  ;;  %v3503_v8 = vld [vmem:[#allocation8 + $0x4a0] ss:$16 sps:$4 sm:$0xff]   ;;  %v3514_v13 = vld [vmem:[#allocation8 + $0x6c4] ss:$16 sps:$4 sm:$0xff]  }
  0x8a   :  { %2022 = vmatprep.subr.bf16.mxu0 %v3479_v23 }
  0x8c   :  { %2048 = vmatpush1.bf16.msra.mxu1 %v3445_v11 }
  0x8d   :  { %2049 = vmatprep.subr.bf16.mxu1 %v3453_v12  ;;  %2023 = vmatpush2.bf16.msra.mxu0 %v3484_v25  ;;  %v3511_v12 = vld [vmem:[#allocation8 + $0x484] ss:$16 sps:$4 sm:$0xff]   ;;  %v3515_v25 = vld [vmem:[#allocation8 + $0x460] ss:$16 sps:$4 sm:$0xff]  }
  0x8e   :  { %2024 = vmatprep.subr.bf16.mxu0 %v3485_v27 }
  0x90   :  { %2050 = vmatpush1.bf16.msra.mxu1 %v3451_v14 }
  0x91   :  { %2051 = vmatprep.subr.bf16.mxu1 %v3459_v15  ;;  %2025 = vmatpush2.bf16.msra.mxu0 %v3490_v29  ;;  %v3523_v29 = vld [vmem:[#allocation8 + $0x444] ss:$16 sps:$4 sm:$0xff]  }
  0x92   :  { %2076 = vmatprep.subr.bf16.mxu0 %v3496_v30  ;;  %v3526_v30 = vld [vmem:[#allocation8 + $0x684] ss:$16 sps:$4 sm:$0xff]  }
  0x94   :  { %2052 = vmatpush2.bf16.msra.mxu1 %v3457_v16  ;;  %v3509_v16 = vld [vmem:[#allocation8 + $0x480] ss:$16 sps:$4 sm:$0xff]  }
  0x95   :  { %2053 = vmatprep.subr.bf16.mxu1 %v3465_v17  ;;  %v3512_v17 = vld [vmem:[#allocation8 + $0x6c0] ss:$16 sps:$4 sm:$0xff]  }
  0x98   :  { %2054 = vmatpush2.bf16.msra.mxu1 %v3463_v18 }
  0x99   :  { %2055 = vmatprep.subr.bf16.mxu1 %v3471_v19  ;;  %v162_v19 = vsub.s32 7, %v4145_v38 }
  0x9c   :  { %2056 = vmatpush2.bf16.msra.mxu1 %v3469_v20  ;;  %v3517_v20 = vld [vmem:[#allocation8 + $0x464] ss:$16 sps:$4 sm:$0xff]  }
  0x9d   :  { %2057 = vmatprep.subr.bf16.mxu1 %v3477_v21  ;;  %v3520_v21 = vld [vmem:[#allocation8 + $0x6a4] ss:$16 sps:$4 sm:$0xff]  }
  0xa0   :  { %2058 = vmatpush2.bf16.msra.mxu1 %v3475_v22 }
  0xa1   :  { %2059 = vmatprep.subr.bf16.mxu1 %v3483_v24 }
  0xa4   :  { %2060 = vmatpush2.bf16.msra.mxu1 %v3481_v26  ;;  %v3518_v26 = vld [vmem:[#allocation8 + $0x6a0] ss:$16 sps:$4 sm:$0xff]  }
  0xa5   :  { %2061 = vmatprep.subr.bf16.mxu1 %v3489_v28  ;;  %v163_v28 = vrot.slane %v4150_v40, %v162_v19  ;;  %v3572_v19 = vld [vmem:[#allocation8 + $0x780] ss:$16 sps:$4 sm:$0xff]  }
  0xa8   :  { %2062 = vmatpush2.bf16.msra.mxu1 %v3487_v31 }
  0xa9   :  { %2063 = vmatprep.subr.bf16.mxu1 %v3493_v32 }
  0xac   :  { %2064 = vmatpush2.bf16.msra.mxu1 %v3491_v33  ;;  %v3521_v33 = vld [vmem:[#allocation8 + $0x440] ss:$16 sps:$4 sm:$0xff]  }
  0xad   :  { %2065 = vmatprep.subr.bf16.mxu1 %v3499_v34  ;;  %v3524_v34 = vld [vmem:[#allocation8 + $0x680] ss:$16 sps:$4 sm:$0xff]  }
  0xb0   :  { %2066 = vmatpush2.bf16.msra.mxu1 %v3497_v35 }
  0xb1   :  { %2117 = vmatprep.subr.bf16.mxu1 %v3508_v36  ;;  %v3529_v36 = vld [vmem:[#allocation8 + $0x424] ss:$16 sps:$4 sm:$0xff]  }
 0x11b   :  { %v290_v44 = vpop.f32.mrf.mxu1 }
 0x11c   :  { %v291_v45 = vadd.f32 %v290_v44, %v135_v42 }
 0x11d   :  { %v292_v47 = vpop.f32.mrf.mxu1 }
 0x11e   :  { %v293_v48 = vadd.f32 %v292_v47, %v139_v43  ;;  %v420_v50 = vmax.f32 %v291_v45, 0.0  ;;  %v3527_v45 = vld [vmem:[#allocation8 + $0x420] ss:$16 sps:$4 sm:$0xff]  }
 0x11f   :  { %v294_v51 = vpop.f32.mrf.mxu1  ;;  %v3530_v47 = vld [vmem:[#allocation8 + $0x660] ss:$16 sps:$4 sm:$0xff]  }
 0x120   :  { %v421_v52 = vmax.f32 %v293_v48, 0.0  ;;  %v4169_v58 = vpack.c.bf16 %v420_v50, %v420_v50  ;;  %v3535_v50 = vld [vmem:[#allocation8 + $0x404] ss:$16 sps:$4 sm:$0xff]  }
 0x121   :  { %v295_v54 = vpop.f32.mrf.mxu1  ;;  %v3538_v51 = vld [vmem:[#allocation8 + $0x644] ss:$16 sps:$4 sm:$0xff]  }
 0x122   :  { %v4164_v55 = vpack.c.bf16 %v421_v52, %v421_v52  ;;  %v3533_v52 = vld [vmem:[#allocation8 + $0x400] ss:$16 sps:$4 sm:$0xff]   ;;  %v3541_v54 = vld [vmem:[#allocation8 + $0x5e4] ss:$16 sps:$4 sm:$0xff]  }
 0x123   :  { %v331_v59 = vpop.f32.mrf.mxu1 }
 0x124   :  { %v332_v61 = vadd.f32 %v331_v59, %v143_v53  ;;  %2026 = vmatprep.mubr.bf16.mxu0 %v4164_v55  ;;  %v3536_v53 = vld [vmem:[#allocation8 + $0x640] ss:$16 sps:$4 sm:$0xff]  }
 0x125   :  { %v333_v62 = vpop.f32.mrf.mxu1  ;;  %2027 = vmatmul.mubr.bf16.vlgmr.msra.gmra.mxu0 %v4169_v58  ;;  %v3542_v59 = vld [vmem:[#allocation8 + $0x620] ss:$16 sps:$4 sm:$0xff]  }
 0x126   :  { %v334_v63 = vadd.f32 %v333_v62, %v147_v57  ;;  %2077 = vmatpush1.bf16.msra.mxu0 %v3494_v56  ;;  %v422_v2 = vmax.f32 %v332_v61, 0.0  ;;  %v3544_v56 = vld [vmem:[#allocation8 + $0x624] ss:$16 sps:$4 sm:$0xff]   ;;  %v3539_v57 = vld [vmem:[#allocation8 + $0x5e0] ss:$16 sps:$4 sm:$0xff]  }
 0x127   :  { %v335_v3 = vpop.f32.mrf.mxu1  ;;  %2078 = vmatprep.subr.bf16.mxu0 %v3502_v60  ;;  %v3547_v60 = vld [vmem:[#allocation8 + $0x5c4] ss:$16 sps:$4 sm:$0xff]   ;;  %v3545_v62 = vld [vmem:[#allocation8 + $0x5c0] ss:$16 sps:$4 sm:$0xff]  }
 0x128   :  { %v423_v5 = vmax.f32 %v334_v63, 0.0  ;;  %v4177_v11 = vpack.c.bf16 %v422_v2, %v422_v2  ;;  %v3550_v61 = vld [vmem:[#allocation8 + $0x604] ss:$16 sps:$4 sm:$0xff]   ;;  %v3548_v63 = vld [vmem:[#allocation8 + $0x600] ss:$16 sps:$4 sm:$0xff]  }
 0x129   :  { %v336_v6 = vpop.f32.mrf.mxu1  ;;  %v3551_v2 = vld [vmem:[#allocation8 + $0x5a0] ss:$16 sps:$4 sm:$0xff]  }
 0x12a   :  { %v4174_v7 = vpack.c.bf16 %v423_v5, %v423_v5  ;;  %2079 = vmatpush1.bf16.msra.mxu0 %v3500_v0  ;;  %v3553_v0 = vld [vmem:[#allocation8 + $0x5a4] ss:$16 sps:$4 sm:$0xff]   ;;  %v3554_v3 = vld [vmem:[#allocation8 + $0x7e0] ss:$16 sps:$4 sm:$0xff]  }
 0x12b   :  { %2080 = vmatprep.subr.bf16.mxu0 %v3505_v4  ;;  %v4179_v14 = vpop.f32.mrf.mxu1  ;;  %v3559_v4 = vld [vmem:[#allocation8 + $0x584] ss:$16 sps:$4 sm:$0xff]   ;;  %v3557_v6 = vld [vmem:[#allocation8 + $0x580] ss:$16 sps:$4 sm:$0xff]  }
 0x12c   :  { %2067 = vmatprep.mubr.bf16.mxu1 %v4174_v7  ;;  %v3562_v5 = vld [vmem:[#allocation8 + $0x7c4] ss:$16 sps:$4 sm:$0xff]  }
 0x12d   :  { %2068 = vmatmul.mubr.bf16.vlgmr.msra.gmra.mxu1 %v4177_v11  ;;  %v374_v15 = vpop.f32.mrf.mxu1 }
 0x12e   :  { %2081 = vmatpush1.bf16.msra.mxu0 %v3503_v8  ;;  %2118 = vmatpush1.bf16.msra.mxu1 %v3506_v9  ;;  %v375_v18 = vadd.f32 %v374_v15, %v155_v10  ;;  %v3560_v8 = vld [vmem:[#allocation8 + $0x7c0] ss:$16 sps:$4 sm:$0xff]   ;;  %v3565_v9 = vld [vmem:[#allocation8 + $0x564] ss:$16 sps:$4 sm:$0xff]   ;;  %v150_v15 = vsub.s32 4, %v4145_v38 }
 0x12f   :  { %2082 = vmatprep.subr.bf16.mxu0 %v3511_v12  ;;  %2119 = vmatprep.subr.bf16.mxu1 %v3514_v13  ;;  %v376_v22 = vpop.f32.mrf.mxu1  ;;  %v3568_v10 = vld [vmem:[#allocation8 + $0x7a4] ss:$16 sps:$4 sm:$0xff]   ;;  %v3563_v12 = vld [vmem:[#allocation8 + $0x560] ss:$16 sps:$4 sm:$0xff]  }
 0x130   :  { %v425_v23 = vmax.f32 %v375_v18, 0.0  ;;  %v3566_v13 = vld [vmem:[#allocation8 + $0x7a0] ss:$16 sps:$4 sm:$0xff]   ;;  %v3580_v22 = vld [vmem:[#allocation8 + $0x764] ss:$16 sps:$4 sm:$0xff]  }
 0x131   :  { %v377_v24 = vpop.f32.mrf.mxu1  ;;  %v3569_v18 = vld [vmem:[#allocation8 + $0x540] ss:$16 sps:$4 sm:$0xff]  }
 0x132   :  { %2083 = vmatpush1.bf16.msra.mxu0 %v3509_v16  ;;  %2120 = vmatpush1.bf16.msra.mxu1 %v3512_v17  ;;  %v4184_v27 = vpack.c.bf16 %v425_v23, %v425_v23  ;;  %v3571_v16 = vld [vmem:[#allocation8 + $0x544] ss:$16 sps:$4 sm:$0xff]   ;;  %v3575_v23 = vld [vmem:[#allocation8 + $0x520] ss:$16 sps:$4 sm:$0xff]  }
 0x133   :  { %2084 = vmatprep.subr.bf16.mxu0 %v3517_v20  ;;  %2121 = vmatprep.subr.bf16.mxu1 %v3520_v21  ;;  %v4187_v31 = vpop.f32.mrf.mxu1  ;;  %v3574_v17 = vld [vmem:[#allocation8 + $0x784] ss:$16 sps:$4 sm:$0xff]   ;;  %v151_v20 = vrot.slane %v4150_v40, %v150_v15  ;;  %v3578_v24 = vld [vmem:[#allocation8 + $0x760] ss:$16 sps:$4 sm:$0xff]   ;;  %v3640_v15 = vld [vmem:[#allocation8 + $0x22c] ss:$16 sps:$4 sm:$0xff]  }
 0x134   :  { %2108 = vmatprep.mubr.bf16.mxu0 %v4184_v27  ;;  %v3577_v21 = vld [vmem:[#allocation8 + $0x524] ss:$16 sps:$4 sm:$0xff]  }
 0x135   :  { %v415_v32 = vpop.f32.mrf.mxu1 }
 0x136   :  { %2085 = vmatpush1.bf16.msra.mxu0 %v3515_v25  ;;  %2122 = vmatpush1.bf16.msra.mxu1 %v3518_v26  ;;  %v416_v35 = vadd.f32 %v415_v32, %v163_v28  ;;  %v373_v25 = vadd.f32 %v4179_v14, %v151_v20  ;;  %v158_v26 = vsub.s32 6, %v4145_v38  ;;  %v3583_v28 = vld [vmem:[#allocation8 + $0x504] ss:$16 sps:$4 sm:$0xff]   ;;  %v3584_v32 = vld [vmem:[#allocation8 + $0x740] ss:$16 sps:$4 sm:$0xff]  }
 0x137   :  { %2086 = vmatprep.subr.bf16.mxu0 %v3523_v29  ;;  %2123 = vmatprep.subr.bf16.mxu1 %v3526_v30  ;;  %v417_v42 = vpop.f32.mrf.mxu1  ;;  %v3586_v29 = vld [vmem:[#allocation8 + $0x744] ss:$16 sps:$4 sm:$0xff]   ;;  %v3581_v30 = vld [vmem:[#allocation8 + $0x500] ss:$16 sps:$4 sm:$0xff]   ;;  %v3641_v20 = vld [vmem:[#allocation8 + $0x1c8] ss:$16 sps:$4 sm:$0xff]  }
 0x138   :  { %v427_v43 = vmax.f32 %v416_v35, 0.0  ;;  %v3589_v35 = vld [vmem:[#allocation8 + $0x724] ss:$16 sps:$4 sm:$0xff]   ;;  %v3587_v14 = vld [vmem:[#allocation8 + $0x720] ss:$16 sps:$4 sm:$0xff]  }
 0x139   :  { %v418_v44 = vpop.f32.mrf.mxu1 }
 0x13a   :  { %2087 = vmatpush1.bf16.msra.mxu0 %v3521_v33  ;;  %2124 = vmatpush1.bf16.msra.mxu1 %v3524_v34  ;;  %v4190_v48 = vpack.c.bf16 %v427_v43, %v427_v43  ;;  %v424_v33 = vmax.f32 %v373_v25, 0.0  ;;  %v159_v34 = vrot.slane %v4150_v40, %v158_v26  ;;  %v3595_v44 = vld [vmem:[#allocation8 + $0x704] ss:$16 sps:$4 sm:$0xff]   ;;  %v3593_v40 = vld [vmem:[#allocation8 + $0x700] ss:$16 sps:$4 sm:$0xff]  }
 0x13b   :  { %2088 = vmatprep.subr.bf16.mxu0 %v3529_v36  ;;  %2125 = vmatprep.subr.bf16.mxu1 %v3532_v37  ;;  %v3592_v36 = vld [vmem:[#allocation8 + $0xec] ss:$16 sps:$4 sm:$0xff]   ;;  %v3590_v37 = vld [vmem:[#allocation8 + $0xe8] ss:$16 sps:$4 sm:$0xff]  }
 0x13c   :  { %2149 = vmatprep.mubr.bf16.mxu1 %v4190_v48  ;;  %v4198_v42 = vpack.c.bf16 %v424_v33, %v424_v33  ;;  %v414_v43 = vadd.f32 %v4187_v31, %v159_v34  ;;  %v3599_v31 = vld [vmem:[#allocation8 + $0xa8] ss:$16 sps:$4 sm:$0xff]   ;;  %v3655_v26 = vld [vmem:[#allocation8 + $0x18c] ss:$16 sps:$4 sm:$0xff]  }
 0x13d   :  { %v3650_v25 = vld [vmem:[#allocation8 + $0x3e8] ss:$16 sps:$4 sm:$0xff]   ;;  %v3664_v33 = vld [vmem:[#allocation8 + $0x3ac] ss:$16 sps:$4 sm:$0xff]  }
 0x13e   :  { %2089 = vmatpush1.bf16.msra.mxu0 %v3527_v45  ;;  %2126 = vmatpush1.bf16.msra.mxu1 %v3530_v47  ;;  %v3598_v45 = vld [vmem:[#allocation8 + $0xcc] ss:$16 sps:$4 sm:$0xff]   ;;  %v3596_v47 = vld [vmem:[#allocation8 + $0xc8] ss:$16 sps:$4 sm:$0xff]  }
 0x13f   :  { %2090 = vmatprep.subr.bf16.mxu0 %v3535_v50  ;;  %2127 = vmatprep.subr.bf16.mxu1 %v3538_v51  ;;  %v426_v50 = vmax.f32 %v414_v43, 0.0  ;;  %v3601_v51 = vld [vmem:[#allocation8 + $0xac] ss:$16 sps:$4 sm:$0xff]   ;;  %v3659_v34 = vld [vmem:[#allocation8 + $0x168] ss:$16 sps:$4 sm:$0xff]  }
 0x140   :  { %v3668_v43 = vld [vmem:[#allocation8 + $0x388] ss:$16 sps:$4 sm:$0xff]  }
 0x142   :  { %2091 = vmatpush1.bf16.msra.mxu0 %v3533_v52  ;;  %2128 = vmatpush1.bf16.msra.mxu1 %v3536_v53  ;;  %v3604_v52 = vld [vmem:[#allocation8 + $0x2ec] ss:$16 sps:$4 sm:$0xff]   ;;  %v3602_v53 = vld [vmem:[#allocation8 + $0x2e8] ss:$16 sps:$4 sm:$0xff]  }
 0x143   :  { %2092 = vmatprep.subr.bf16.mxu0 %v3541_v54  ;;  %2129 = vmatprep.subr.bf16.mxu1 %v3544_v56  ;;  %v4203_v54 = vpack.c.bf16 %v426_v50, %v426_v50  ;;  %v3607_v56 = vld [vmem:[#allocation8 + $0x8c] ss:$16 sps:$4 sm:$0xff]  }
 0x144   :  { %v3679_v50 = vld [vmem:[#allocation8 + $0x10c] ss:$16 sps:$4 sm:$0xff]  }
 0x146   :  { %2093 = vmatpush2.bf16.msra.mxu0 %v3539_v57  ;;  %2130 = vmatpush1.bf16.msra.mxu1 %v3542_v59  ;;  %v3610_v57 = vld [vmem:[#allocation8 + $0x2cc] ss:$16 sps:$4 sm:$0xff]   ;;  %v3605_v59 = vld [vmem:[#allocation8 + $0x88] ss:$16 sps:$4 sm:$0xff]  }
 0x147   :  { %2094 = vmatprep.subr.bf16.mxu0 %v3547_v60  ;;  %2131 = vmatprep.subr.bf16.mxu1 %v3550_v61  ;;  %v3613_v60 = vld [vmem:[#allocation8 + $0x6c] ss:$16 sps:$4 sm:$0xff]  }
 0x148   :  { %v3616_v61 = vld [vmem:[#allocation8 + $0x2ac] ss:$16 sps:$4 sm:$0xff]  }
 0x14a   :  { %2095 = vmatpush2.bf16.msra.mxu0 %v3545_v62  ;;  %2132 = vmatpush1.bf16.msra.mxu1 %v3548_v63  ;;  %v3611_v62 = vld [vmem:[#allocation8 + $0x68] ss:$16 sps:$4 sm:$0xff]  }
 0x14b   :  { %2096 = vmatprep.subr.bf16.mxu0 %v3553_v0  ;;  %2133 = vmatprep.subr.bf16.mxu1 %v3556_v1  ;;  %v3614_v63 = vld [vmem:[#allocation8 + $0x2a8] ss:$16 sps:$4 sm:$0xff]   ;;  %v3619_v0 = vld [vmem:[#allocation8 + $0x4c] ss:$16 sps:$4 sm:$0xff]  }
 0x14c   :  { %v3622_v1 = vld [vmem:[#allocation8 + $0x28c] ss:$16 sps:$4 sm:$0xff]  }
 0x14e   :  { %2097 = vmatpush2.bf16.msra.mxu0 %v3551_v2  ;;  %2134 = vmatpush2.bf16.msra.mxu1 %v3554_v3  ;;  %v3617_v2 = vld [vmem:[#allocation8 + $0x48] ss:$16 sps:$4 sm:$0xff]  }
 0x14f   :  { %2098 = vmatprep.subr.bf16.mxu0 %v3559_v4  ;;  %2135 = vmatprep.subr.bf16.mxu1 %v3562_v5  ;;  %v3620_v3 = vld [vmem:[#allocation8 + $0x288] ss:$16 sps:$4 sm:$0xff]   ;;  %v3625_v4 = vld [vmem:[#allocation8 + $0x2c] ss:$16 sps:$4 sm:$0xff]  }
 0x150   :  { %v3623_v5 = vld [vmem:[#allocation8 + $0x28] ss:$16 sps:$4 sm:$0xff]  }
 0x152   :  { %2099 = vmatpush2.bf16.msra.mxu0 %v3557_v6  ;;  %2136 = vmatpush2.bf16.msra.mxu1 %v3560_v8  ;;  %v3626_v6 = vld [vmem:[#allocation8 + $0x268] ss:$16 sps:$4 sm:$0xff]   ;;  %v3631_v8 = vld [vmem:[#allocation8 + $0xc] ss:$16 sps:$4 sm:$0xff]  }
 0x153   :  { %2100 = vmatprep.subr.bf16.mxu0 %v3565_v9  ;;  %2137 = vmatprep.subr.bf16.mxu1 %v3568_v10  ;;  %v3634_v9 = vld [vmem:[#allocation8 + $0x24c] ss:$16 sps:$4 sm:$0xff]   ;;  %v3629_v10 = vld [vmem:[#allocation8 + $0x8] ss:$16 sps:$4 sm:$0xff]  }
 0x156   :  { %2101 = vmatpush2.bf16.msra.mxu0 %v3563_v12  ;;  %2138 = vmatpush2.bf16.msra.mxu1 %v3566_v13  ;;  %v3632_v12 = vld [vmem:[#allocation8 + $0x248] ss:$16 sps:$4 sm:$0xff]   ;;  %v3637_v13 = vld [vmem:[#allocation8 + $0x1ec] ss:$16 sps:$4 sm:$0xff]  }
 0x157   :  { %2102 = vmatprep.subr.bf16.mxu0 %v3571_v16  ;;  %2139 = vmatprep.subr.bf16.mxu1 %v3574_v17  ;;  %v3635_v16 = vld [vmem:[#allocation8 + $0x1e8] ss:$16 sps:$4 sm:$0xff]  }
 0x158   :  { %v3638_v17 = vld [vmem:[#allocation8 + $0x228] ss:$16 sps:$4 sm:$0xff]  }
 0x15a   :  { %2103 = vmatpush2.bf16.msra.mxu0 %v3569_v18  ;;  %2140 = vmatpush2.bf16.msra.mxu1 %v3572_v19  ;;  %v3643_v18 = vld [vmem:[#allocation8 + $0x1cc] ss:$16 sps:$4 sm:$0xff]  }
 0x15b   :  { %2104 = vmatprep.subr.bf16.mxu0 %v3577_v21  ;;  %2141 = vmatprep.subr.bf16.mxu1 %v3580_v22  ;;  %v3646_v19 = vld [vmem:[#allocation8 + $0x20c] ss:$16 sps:$4 sm:$0xff]   ;;  %v3644_v21 = vld [vmem:[#allocation8 + $0x208] ss:$16 sps:$4 sm:$0xff]  }
 0x15c   :  { %v3649_v22 = vld [vmem:[#allocation8 + $0x1ac] ss:$16 sps:$4 sm:$0xff]  }
 0x15e   :  { %2105 = vmatpush2.bf16.msra.mxu0 %v3575_v23  ;;  %2142 = vmatpush2.bf16.msra.mxu1 %v3578_v24  ;;  %v3652_v23 = vld [vmem:[#allocation8 + $0x3ec] ss:$16 sps:$4 sm:$0xff]   ;;  %v3647_v24 = vld [vmem:[#allocation8 + $0x1a8] ss:$16 sps:$4 sm:$0xff]  }
 0x15f   :  { %2106 = vmatprep.subr.bf16.mxu0 %v3583_v28  ;;  %2143 = vmatprep.subr.bf16.mxu1 %v3586_v29  ;;  %v3658_v28 = vld [vmem:[#allocation8 + $0x3cc] ss:$16 sps:$4 sm:$0xff]   ;;  %v3653_v29 = vld [vmem:[#allocation8 + $0x188] ss:$16 sps:$4 sm:$0xff]  }
 0x162   :  { %2107 = vmatpush2.bf16.msra.mxu0 %v3581_v30  ;;  %2144 = vmatpush2.bf16.msra.mxu1 %v3584_v32  ;;  %v3656_v30 = vld [vmem:[#allocation8 + $0x3c8] ss:$16 sps:$4 sm:$0xff]   ;;  %v3661_v32 = vld [vmem:[#allocation8 + $0x16c] ss:$16 sps:$4 sm:$0xff]  }
 0x163   :  { %2145 = vmatprep.subr.bf16.mxu1 %v3589_v35  ;;  %2158 = vmatprep.subr.bf16.mxu0 %v3592_v36  ;;  %v3662_v35 = vld [vmem:[#allocation8 + $0x3a8] ss:$16 sps:$4 sm:$0xff]   ;;  %v3667_v36 = vld [vmem:[#allocation8 + $0x14c] ss:$16 sps:$4 sm:$0xff]  }
 0x165   :  { %2109 = vmatmul.mubr.bf16.vlgmr.msra.gmra.mxu0 %v4198_v42 }
 0x166   :  { %2146 = vmatpush2.bf16.msra.mxu1 %v3587_v14  ;;  %2159 = vmatpush1.bf16.msra.mxu0 %v3590_v37  ;;  %v3670_v14 = vld [vmem:[#allocation8 + $0x38c] ss:$16 sps:$4 sm:$0xff]   ;;  %v3665_v37 = vld [vmem:[#allocation8 + $0x148] ss:$16 sps:$4 sm:$0xff]  }
 0x167   :  { %2190 = vmatprep.mubr.bf16.mxu0 %v4164_v55  ;;  %2147 = vmatprep.subr.bf16.mxu1 %v3595_v44  ;;  %v3608_v55 = vld [vmem:[#allocation8 + $0x2c8] ss:$16 sps:$4 sm:$0xff]   ;;  %v3673_v44 = vld [vmem:[#allocation8 + $0x12c] ss:$16 sps:$4 sm:$0xff]  }
 0x168   :  { %2160 = vmatprep.subr.bf16.mxu0 %v3598_v45  ;;  %v3676_v45 = vld [vmem:[#allocation8 + $0x36c] ss:$16 sps:$4 sm:$0xff]  }
 0x16a   :  { %2148 = vmatpush2.bf16.msra.mxu1 %v3593_v40  ;;  %2161 = vmatpush1.bf16.msra.mxu0 %v3596_v47  ;;  %v3671_v40 = vld [vmem:[#allocation8 + $0x128] ss:$16 sps:$4 sm:$0xff]  }
 0x16b   :  { %2162 = vmatprep.subr.bf16.mxu0 %v3601_v51  ;;  %2199 = vmatprep.subr.bf16.mxu1 %v3604_v52  ;;  %v3674_v47 = vld [vmem:[#allocation8 + $0x368] ss:$16 sps:$4 sm:$0xff]   ;;  %v3682_v51 = vld [vmem:[#allocation8 + $0x34c] ss:$16 sps:$4 sm:$0xff]  }
 0x16c   :  { %v3677_v52 = vld [vmem:[#allocation8 + $0x108] ss:$16 sps:$4 sm:$0xff]  }
 0x16d   :  { %2150 = vmatmul.mubr.bf16.vlgmr.msra.gmra.mxu1 %v4203_v54 }
 0x16e   :  { %2163 = vmatpush1.bf16.msra.mxu0 %v3599_v31  ;;  %2200 = vmatpush1.bf16.msra.mxu1 %v3602_v53  ;;  %v3680_v31 = vld [vmem:[#allocation8 + $0x348] ss:$16 sps:$4 sm:$0xff]   ;;  %v3685_v53 = vld [vmem:[#allocation8 + $0x32c] ss:$16 sps:$4 sm:$0xff]  }
 0x16f   :  { %2231 = vmatprep.mubr.bf16.mxu1 %v4174_v7  ;;  %2164 = vmatprep.subr.bf16.mxu0 %v3607_v56  ;;  %v3628_v7 = vld [vmem:[#allocation8 + $0x26c] ss:$16 sps:$4 sm:$0xff]  }
 0x170   :  { %2201 = vmatprep.subr.bf16.mxu1 %v3610_v57  ;;  %v3688_v56 = vld [vmem:[#allocation8 + $0x4ec] ss:$16 sps:$4 sm:$0xff]   ;;  %v3683_v57 = vld [vmem:[#allocation8 + $0x328] ss:$16 sps:$4 sm:$0xff]  }
 0x172   :  { %2165 = vmatpush1.bf16.msra.mxu0 %v3605_v59  ;;  %2202 = vmatpush1.bf16.msra.mxu1 %v3608_v55  ;;  %v3686_v59 = vld [vmem:[#allocation8 + $0x4e8] ss:$16 sps:$4 sm:$0xff]   ;;  %v3691_v55 = vld [vmem:[#allocation8 + $0x30c] ss:$16 sps:$4 sm:$0xff]  }
 0x173   :  { %2166 = vmatprep.subr.bf16.mxu0 %v3613_v60  ;;  %2203 = vmatprep.subr.bf16.mxu1 %v3616_v61  ;;  %v3694_v60 = vld [vmem:[#allocation8 + $0x4cc] ss:$16 sps:$4 sm:$0xff]   ;;  %v3689_v61 = vld [vmem:[#allocation8 + $0x308] ss:$16 sps:$4 sm:$0xff]  }
 0x176   :  { %2167 = vmatpush1.bf16.msra.mxu0 %v3611_v62  ;;  %2204 = vmatpush1.bf16.msra.mxu1 %v3614_v63  ;;  %v3692_v62 = vld [vmem:[#allocation8 + $0x4c8] ss:$16 sps:$4 sm:$0xff]   ;;  %v3697_v63 = vld [vmem:[#allocation8 + $0x4ac] ss:$16 sps:$4 sm:$0xff]  }
 0x177   :  { %2168 = vmatprep.subr.bf16.mxu0 %v3619_v0  ;;  %2205 = vmatprep.subr.bf16.mxu1 %v3622_v1  ;;  %v3700_v0 = vld [vmem:[#allocation8 + $0x6ec] ss:$16 sps:$4 sm:$0xff]   ;;  %v3695_v1 = vld [vmem:[#allocation8 + $0x4a8] ss:$16 sps:$4 sm:$0xff]  }
 0x17a   :  { %2169 = vmatpush1.bf16.msra.mxu0 %v3617_v2  ;;  %2206 = vmatpush1.bf16.msra.mxu1 %v3620_v3  ;;  %v3698_v2 = vld [vmem:[#allocation8 + $0x6e8] ss:$16 sps:$4 sm:$0xff]   ;;  %v3703_v3 = vld [vmem:[#allocation8 + $0x48c] ss:$16 sps:$4 sm:$0xff]  }
 0x17b   :  { %2170 = vmatprep.subr.bf16.mxu0 %v3625_v4  ;;  %2207 = vmatprep.subr.bf16.mxu1 %v3628_v7  ;;  %v3706_v4 = vld [vmem:[#allocation8 + $0x6cc] ss:$16 sps:$4 sm:$0xff]   ;;  %v3704_v7 = vld [vmem:[#allocation8 + $0x6c8] ss:$16 sps:$4 sm:$0xff]  }
 0x17e   :  { %2171 = vmatpush1.bf16.msra.mxu0 %v3623_v5  ;;  %2208 = vmatpush1.bf16.msra.mxu1 %v3626_v6  ;;  %v3712_v5 = vld [vmem:[#allocation8 + $0x6ac] ss:$16 sps:$4 sm:$0xff]   ;;  %v3707_v6 = vld [vmem:[#allocation8 + $0x468] ss:$16 sps:$4 sm:$0xff]  }
 0x17f   :  { %2172 = vmatprep.subr.bf16.mxu0 %v3631_v8  ;;  %2209 = vmatprep.subr.bf16.mxu1 %v3634_v9  ;;  %v3710_v8 = vld [vmem:[#allocation8 + $0x6a8] ss:$16 sps:$4 sm:$0xff]   ;;  %v3715_v9 = vld [vmem:[#allocation8 + $0x44c] ss:$16 sps:$4 sm:$0xff]  }
 0x182   :  { %2173 = vmatpush1.bf16.msra.mxu0 %v3629_v10  ;;  %2210 = vmatpush1.bf16.msra.mxu1 %v3632_v12  ;;  %v3718_v10 = vld [vmem:[#allocation8 + $0x68c] ss:$16 sps:$4 sm:$0xff]   ;;  %v3716_v12 = vld [vmem:[#allocation8 + $0x688] ss:$16 sps:$4 sm:$0xff]  }
 0x183   :  { %2174 = vmatprep.subr.bf16.mxu0 %v3637_v13  ;;  %2211 = vmatprep.subr.bf16.mxu1 %v3640_v15  ;;  %v3721_v13 = vld [vmem:[#allocation8 + $0x42c] ss:$16 sps:$4 sm:$0xff]   ;;  %v3719_v15 = vld [vmem:[#allocation8 + $0x428] ss:$16 sps:$4 sm:$0xff]  }
 0x186   :  { %2175 = vmatpush2.bf16.msra.mxu0 %v3635_v16  ;;  %2212 = vmatpush1.bf16.msra.mxu1 %v3638_v17  ;;  %v3722_v16 = vld [vmem:[#allocation8 + $0x668] ss:$16 sps:$4 sm:$0xff]   ;;  %v3727_v17 = vld [vmem:[#allocation8 + $0x40c] ss:$16 sps:$4 sm:$0xff]  }
 0x187   :  { %2176 = vmatprep.subr.bf16.mxu0 %v3643_v18  ;;  %2213 = vmatprep.subr.bf16.mxu1 %v3646_v19  ;;  %v3730_v18 = vld [vmem:[#allocation8 + $0x64c] ss:$16 sps:$4 sm:$0xff]   ;;  %v3725_v19 = vld [vmem:[#allocation8 + $0x408] ss:$16 sps:$4 sm:$0xff]  }
 0x18a   :  { %2177 = vmatpush2.bf16.msra.mxu0 %v3641_v20  ;;  %2214 = vmatpush1.bf16.msra.mxu1 %v3644_v21  ;;  %v3728_v20 = vld [vmem:[#allocation8 + $0x648] ss:$16 sps:$4 sm:$0xff]   ;;  %v3733_v21 = vld [vmem:[#allocation8 + $0x5ec] ss:$16 sps:$4 sm:$0xff]  }
 0x18b   :  { %2178 = vmatprep.subr.bf16.mxu0 %v3649_v22  ;;  %2215 = vmatprep.subr.bf16.mxu1 %v3652_v23  ;;  %v3736_v22 = vld [vmem:[#allocation8 + $0x62c] ss:$16 sps:$4 sm:$0xff]   ;;  %v3731_v23 = vld [vmem:[#allocation8 + $0x5e8] ss:$16 sps:$4 sm:$0xff]  }
 0x18e   :  { %2179 = vmatpush2.bf16.msra.mxu0 %v3647_v24  ;;  %2216 = vmatpush2.bf16.msra.mxu1 %v3650_v25  ;;  %v3734_v24 = vld [vmem:[#allocation8 + $0x628] ss:$16 sps:$4 sm:$0xff]   ;;  %v3739_v25 = vld [vmem:[#allocation8 + $0x5cc] ss:$16 sps:$4 sm:$0xff]  }
 0x18f   :  { %2180 = vmatprep.subr.bf16.mxu0 %v3655_v26  ;;  %2217 = vmatprep.subr.bf16.mxu1 %v3658_v28  ;;  %v3742_v26 = vld [vmem:[#allocation8 + $0x60c] ss:$16 sps:$4 sm:$0xff]   ;;  %v3737_v28 = vld [vmem:[#allocation8 + $0x5c8] ss:$16 sps:$4 sm:$0xff]  }
 0x192   :  { %2181 = vmatpush2.bf16.msra.mxu0 %v3653_v29  ;;  %2218 = vmatpush2.bf16.msra.mxu1 %v3656_v30  ;;  %v3740_v29 = vld [vmem:[#allocation8 + $0x608] ss:$16 sps:$4 sm:$0xff]   ;;  %v3745_v30 = vld [vmem:[#allocation8 + $0x5ac] ss:$16 sps:$4 sm:$0xff]  }
 0x193   :  { %2182 = vmatprep.subr.bf16.mxu0 %v3661_v32  ;;  %2219 = vmatprep.subr.bf16.mxu1 %v3664_v33  ;;  %v3748_v32 = vld [vmem:[#allocation8 + $0x7ec] ss:$16 sps:$4 sm:$0xff]   ;;  %v3743_v33 = vld [vmem:[#allocation8 + $0x5a8] ss:$16 sps:$4 sm:$0xff]  }
 0x196   :  { %2183 = vmatpush2.bf16.msra.mxu0 %v3659_v34  ;;  %2220 = vmatpush2.bf16.msra.mxu1 %v3662_v35  ;;  %v3746_v34 = vld [vmem:[#allocation8 + $0x7e8] ss:$16 sps:$4 sm:$0xff]   ;;  %v3751_v35 = vld [vmem:[#allocation8 + $0x58c] ss:$16 sps:$4 sm:$0xff]  }
 0x197   :  { %2184 = vmatprep.subr.bf16.mxu0 %v3667_v36  ;;  %2221 = vmatprep.subr.bf16.mxu1 %v3670_v14  ;;  %v3754_v36 = vld [vmem:[#allocation8 + $0x7cc] ss:$16 sps:$4 sm:$0xff]   ;;  %v3749_v14 = vld [vmem:[#allocation8 + $0x588] ss:$16 sps:$4 sm:$0xff]  }
 0x19a   :  { %2185 = vmatpush2.bf16.msra.mxu0 %v3665_v37  ;;  %2222 = vmatpush2.bf16.msra.mxu1 %v3668_v43  ;;  %v3752_v37 = vld [vmem:[#allocation8 + $0x7c8] ss:$16 sps:$4 sm:$0xff]   ;;  %v3757_v43 = vld [vmem:[#allocation8 + $0x56c] ss:$16 sps:$4 sm:$0xff]  }
 0x19b   :  { %2186 = vmatprep.subr.bf16.mxu0 %v3673_v44  ;;  %2223 = vmatprep.subr.bf16.mxu1 %v3676_v45  ;;  %v3760_v44 = vld [vmem:[#allocation8 + $0x7ac] ss:$16 sps:$4 sm:$0xff]   ;;  %v3755_v45 = vld [vmem:[#allocation8 + $0x568] ss:$16 sps:$4 sm:$0xff]  }
 0x19e   :  { %2187 = vmatpush2.bf16.msra.mxu0 %v3671_v40  ;;  %2224 = vmatpush2.bf16.msra.mxu1 %v3674_v47  ;;  %v3758_v40 = vld [vmem:[#allocation8 + $0x7a8] ss:$16 sps:$4 sm:$0xff]   ;;  %v3763_v47 = vld [vmem:[#allocation8 + $0x54c] ss:$16 sps:$4 sm:$0xff]  }
 0x19f   :  { %2188 = vmatprep.subr.bf16.mxu0 %v3679_v50  ;;  %2225 = vmatprep.subr.bf16.mxu1 %v3682_v51  ;;  %v3766_v50 = vld [vmem:[#allocation8 + $0x78c] ss:$16 sps:$4 sm:$0xff]   ;;  %v3761_v51 = vld [vmem:[#allocation8 + $0x548] ss:$16 sps:$4 sm:$0xff]  }
 0x1a2   :  { %2189 = vmatpush2.bf16.msra.mxu0 %v3677_v52  ;;  %2226 = vmatpush2.bf16.msra.mxu1 %v3680_v31  ;;  %v3764_v52 = vld [vmem:[#allocation8 + $0x788] ss:$16 sps:$4 sm:$0xff]   ;;  %v3769_v31 = vld [vmem:[#allocation8 + $0x52c] ss:$16 sps:$4 sm:$0xff]  }
 0x1a3   :  { %2227 = vmatprep.subr.bf16.mxu1 %v3685_v53  ;;  %2240 = vmatprep.subr.bf16.mxu0 %v3688_v56  ;;  %v3772_v53 = vld [vmem:[#allocation8 + $0x76c] ss:$16 sps:$4 sm:$0xff]   ;;  %v3767_v56 = vld [vmem:[#allocation8 + $0x528] ss:$16 sps:$4 sm:$0xff]  }
 0x1a5   :  { %2191 = vmatmul.mubr.bf16.vlgmr.msra.gmra.mxu0 %v4169_v58  ;;  %v3701_v58 = vld [vmem:[#allocation8 + $0x488] ss:$16 sps:$4 sm:$0xff]  }
 0x1a6   :  { %2228 = vmatpush2.bf16.msra.mxu1 %v3683_v57  ;;  %2241 = vmatpush1.bf16.msra.mxu0 %v3686_v59  ;;  %v3770_v57 = vld [vmem:[#allocation8 + $0x768] ss:$16 sps:$4 sm:$0xff]   ;;  %v3775_v59 = vld [vmem:[#allocation8 + $0x50c] ss:$16 sps:$4 sm:$0xff]  }
 0x1a7   :  { %2272 = vmatprep.mubr.bf16.mxu0 %v4184_v27  ;;  %2229 = vmatprep.subr.bf16.mxu1 %v3691_v55  ;;  %v3709_v27 = vld [vmem:[#allocation8 + $0x46c] ss:$16 sps:$4 sm:$0xff]  }
 0x1a8   :  { %2242 = vmatprep.subr.bf16.mxu0 %v3694_v60  ;;  %v3778_v55 = vld [vmem:[#allocation8 + $0x74c] ss:$16 sps:$4 sm:$0xff]   ;;  %v3773_v60 = vld [vmem:[#allocation8 + $0x508] ss:$16 sps:$4 sm:$0xff]  }
 0x1aa   :  { %2230 = vmatpush2.bf16.msra.mxu1 %v3689_v61  ;;  %2243 = vmatpush1.bf16.msra.mxu0 %v3692_v62  ;;  %v3776_v61 = vld [vmem:[#allocation8 + $0x748] ss:$16 sps:$4 sm:$0xff]   ;;  %v3781_v62 = vld [vmem:[#allocation8 + $0x72c] ss:$16 sps:$4 sm:$0xff]  }
 0x1ab   :  { %2244 = vmatprep.subr.bf16.mxu0 %v3697_v63  ;;  %2281 = vmatprep.subr.bf16.mxu1 %v3700_v0  ;;  %v3787_v63 = vld [vmem:[#allocation10 + $0x74] ss:$8 sps:$4 sm:$0xff]   ;;  %v3779_v0 = vld [vmem:[#allocation8 + $0x728] ss:$16 sps:$4 sm:$0xff]  }
 0x1ad   :  { %2232 = vmatmul.mubr.bf16.vlgmr.msra.gmra.mxu1 %v4177_v11  ;;  %v3713_v11 = vld [vmem:[#allocation8 + $0x448] ss:$16 sps:$4 sm:$0xff]  }
 0x1ae   :  { %2245 = vmatpush1.bf16.msra.mxu0 %v3695_v1  ;;  %2282 = vmatpush1.bf16.msra.mxu1 %v3698_v2  ;;  %v3785_v1 = vld [vmem:[#allocation10 + $0x70] ss:$8 sps:$4 sm:$0xff]   ;;  %v3784_v2 = vld [vmem:[#allocation8 + $0x70c] ss:$16 sps:$4 sm:$0xff]  }
 0x1af   :  { %2313 = vmatprep.mubr.bf16.mxu1 %v4190_v48  ;;  %2246 = vmatprep.subr.bf16.mxu0 %v3703_v3  ;;  %v3724_v48 = vld [vmem:[#allocation8 + $0x66c] ss:$16 sps:$4 sm:$0xff]  }
 0x1b0   :  { %2283 = vmatprep.subr.bf16.mxu1 %v3706_v4  ;;  %v3790_v3 = vld [vmem:[#allocation10 + $0x64] ss:$8 sps:$4 sm:$0xff]  }
 0x1b2   :  { %2247 = vmatpush1.bf16.msra.mxu0 %v3701_v58  ;;  %2284 = vmatpush1.bf16.msra.mxu1 %v3704_v7  ;;  %v3782_v58 = vld [vmem:[#allocation8 + $0x708] ss:$16 sps:$4 sm:$0xff]  }
 0x1b3   :  { %2248 = vmatprep.subr.bf16.mxu0 %v3709_v27  ;;  %2285 = vmatprep.subr.bf16.mxu1 %v3712_v5  ;;  %v3788_v7 = vld [vmem:[#allocation10 + $0x60] ss:$8 sps:$4 sm:$0xff]   ;;  %v3793_v5 = vld [vmem:[#allocation10 + $0x54] ss:$8 sps:$4 sm:$0xff]  }
 0x1b6   :  { %2249 = vmatpush1.bf16.msra.mxu0 %v3707_v6  ;;  %2286 = vmatpush1.bf16.msra.mxu1 %v3710_v8  ;;  %v3791_v8 = vld [vmem:[#allocation10 + $0x50] ss:$8 sps:$4 sm:$0xff]  }
 0x1b7   :  { %2250 = vmatprep.subr.bf16.mxu0 %v3715_v9  ;;  %2287 = vmatprep.subr.bf16.mxu1 %v3718_v10  ;;  %v3796_v10 = vld [vmem:[#allocation10 + $0x44] ss:$8 sps:$4 sm:$0xff]  }
 0x1ba   :  { %2251 = vmatpush1.bf16.msra.mxu0 %v3713_v11  ;;  %2288 = vmatpush1.bf16.msra.mxu1 %v3716_v12  ;;  %v3794_v11 = vld [vmem:[#allocation10 + $0x40] ss:$8 sps:$4 sm:$0xff]  }
 0x1bb   :  { %2252 = vmatprep.subr.bf16.mxu0 %v3721_v13  ;;  %2289 = vmatprep.subr.bf16.mxu1 %v3724_v48  ;;  %v3799_v13 = vld [vmem:[#allocation10 + $0x34] ss:$8 sps:$4 sm:$0xff]  }
 0x1be   :  { %2253 = vmatpush1.bf16.msra.mxu0 %v3719_v15  ;;  %2290 = vmatpush1.bf16.msra.mxu1 %v3722_v16  ;;  %v3797_v15 = vld [vmem:[#allocation10 + $0x30] ss:$8 sps:$4 sm:$0xff]  }
 0x1bf   :  { %2254 = vmatprep.subr.bf16.mxu0 %v3727_v17  ;;  %2291 = vmatprep.subr.bf16.mxu1 %v3730_v18  ;;  %v3802_v17 = vld [vmem:[#allocation10 + $0x24] ss:$8 sps:$4 sm:$0xff]   ;;  %v3833_v18 = vld [vmem:[#allocation10 + $0x170] ss:$8 sps:$4 sm:$0xff]  }
 0x1c2   :  { %2255 = vmatpush1.bf16.msra.mxu0 %v3725_v19  ;;  %2292 = vmatpush1.bf16.msra.mxu1 %v3728_v20  ;;  %v3835_v19 = vld [vmem:[#allocation10 + $0x174] ss:$8 sps:$4 sm:$0xff]   ;;  %v3838_v20 = vld [vmem:[#allocation10 + $0x164] ss:$8 sps:$4 sm:$0xff]  }
 0x1c3   :  { %2256 = vmatprep.subr.bf16.mxu0 %v3733_v21  ;;  %2293 = vmatprep.subr.bf16.mxu1 %v3736_v22  ;;  %v3836_v21 = vld [vmem:[#allocation10 + $0x160] ss:$8 sps:$4 sm:$0xff]   ;;  %v3805_v22 = vld [vmem:[#allocation10 + $0x14] ss:$8 sps:$4 sm:$0xff]  }
 0x1c6   :  { %2257 = vmatpush2.bf16.msra.mxu0 %v3731_v23  ;;  %2294 = vmatpush1.bf16.msra.mxu1 %v3734_v24  ;;  %v3841_v23 = vld [vmem:[#allocation10 + $0x154] ss:$8 sps:$4 sm:$0xff]   ;;  %v3803_v24 = vld [vmem:[#allocation10 + $0x10] ss:$8 sps:$4 sm:$0xff]  }
 0x1c7   :  { %2258 = vmatprep.subr.bf16.mxu0 %v3739_v25  ;;  %2295 = vmatprep.subr.bf16.mxu1 %v3742_v26  ;;  %v3839_v25 = vld [vmem:[#allocation10 + $0x150] ss:$8 sps:$4 sm:$0xff]   ;;  %v3808_v26 = vld [vmem:[#allocation10 + $0x4] ss:$8 sps:$4 sm:$0xff]  }
 0x1ca   :  { %2259 = vmatpush2.bf16.msra.mxu0 %v3737_v28  ;;  %2296 = vmatpush1.bf16.msra.mxu1 %v3740_v29  ;;  %v3844_v28 = vld [vmem:[#allocation10 + $0x144] ss:$8 sps:$4 sm:$0xff]   ;;  %v3806_v29 = vld [vmem:[#allocation10] ss:$8 sps:$4 sm:$0xff]  }
 0x1cb   :  { %2260 = vmatprep.subr.bf16.mxu0 %v3745_v30  ;;  %2297 = vmatprep.subr.bf16.mxu1 %v3748_v32  ;;  %v3842_v30 = vld [vmem:[#allocation10 + $0x140] ss:$8 sps:$4 sm:$0xff]   ;;  %v3811_v32 = vld [vmem:[#allocation10 + $0xf4] ss:$8 sps:$4 sm:$0xff]  }
 0x1ce   :  { %2261 = vmatpush2.bf16.msra.mxu0 %v3743_v33  ;;  %2298 = vmatpush2.bf16.msra.mxu1 %v3746_v34  ;;  %v3847_v33 = vld [vmem:[#allocation10 + $0x134] ss:$8 sps:$4 sm:$0xff]   ;;  %v3809_v34 = vld [vmem:[#allocation10 + $0xf0] ss:$8 sps:$4 sm:$0xff]  }
 0x1cf   :  { %2262 = vmatprep.subr.bf16.mxu0 %v3751_v35  ;;  %2299 = vmatprep.subr.bf16.mxu1 %v3754_v36  ;;  %v3845_v35 = vld [vmem:[#allocation10 + $0x130] ss:$8 sps:$4 sm:$0xff]   ;;  %v3814_v36 = vld [vmem:[#allocation10 + $0xe4] ss:$8 sps:$4 sm:$0xff]  }
 0x1d2   :  { %2263 = vmatpush2.bf16.msra.mxu0 %v3749_v14  ;;  %2300 = vmatpush2.bf16.msra.mxu1 %v3752_v37  ;;  %v3850_v14 = vld [vmem:[#allocation10 + $0x124] ss:$8 sps:$4 sm:$0xff]   ;;  %v3812_v37 = vld [vmem:[#allocation10 + $0xe0] ss:$8 sps:$4 sm:$0xff]  }
 0x1d3   :  { %2264 = vmatprep.subr.bf16.mxu0 %v3757_v43  ;;  %2301 = vmatprep.subr.bf16.mxu1 %v3760_v44  ;;  %v3848_v43 = vld [vmem:[#allocation10 + $0x120] ss:$8 sps:$4 sm:$0xff]   ;;  %v3817_v44 = vld [vmem:[#allocation10 + $0xd4] ss:$8 sps:$4 sm:$0xff]  }
 0x1d6   :  { %2265 = vmatpush2.bf16.msra.mxu0 %v3755_v45  ;;  %2302 = vmatpush2.bf16.msra.mxu1 %v3758_v40  ;;  %v3853_v45 = vld [vmem:[#allocation10 + $0x114] ss:$8 sps:$4 sm:$0xff]   ;;  %v3815_v40 = vld [vmem:[#allocation10 + $0xd0] ss:$8 sps:$4 sm:$0xff]  }
 0x1d7   :  { %2266 = vmatprep.subr.bf16.mxu0 %v3763_v47  ;;  %2303 = vmatprep.subr.bf16.mxu1 %v3766_v50  ;;  %v3851_v47 = vld [vmem:[#allocation10 + $0x110] ss:$8 sps:$4 sm:$0xff]   ;;  %v3820_v50 = vld [vmem:[#allocation10 + $0xc4] ss:$8 sps:$4 sm:$0xff]  }
 0x1da   :  { %2267 = vmatpush2.bf16.msra.mxu0 %v3761_v51  ;;  %2304 = vmatpush2.bf16.msra.mxu1 %v3764_v52  ;;  %v3856_v51 = vld [vmem:[#allocation10 + $0x104] ss:$8 sps:$4 sm:$0xff]   ;;  %v3818_v52 = vld [vmem:[#allocation10 + $0xc0] ss:$8 sps:$4 sm:$0xff]  }
 0x1db   :  { %2268 = vmatprep.subr.bf16.mxu0 %v3769_v31  ;;  %2305 = vmatprep.subr.bf16.mxu1 %v3772_v53  ;;  %v3854_v31 = vld [vmem:[#allocation10 + $0x100] ss:$8 sps:$4 sm:$0xff]   ;;  %v3823_v53 = vld [vmem:[#allocation10 + $0xb4] ss:$8 sps:$4 sm:$0xff]  }
 0x1de   :  { %2269 = vmatpush2.bf16.msra.mxu0 %v3767_v56  ;;  %2306 = vmatpush2.bf16.msra.mxu1 %v3770_v57  ;;  %v3859_v56 = vld [vmem:[#allocation10 + $0x1f4] ss:$8 sps:$4 sm:$0xff]   ;;  %v3821_v57 = vld [vmem:[#allocation10 + $0xb0] ss:$8 sps:$4 sm:$0xff]  }
 0x1df   :  { %2270 = vmatprep.subr.bf16.mxu0 %v3775_v59  ;;  %2307 = vmatprep.subr.bf16.mxu1 %v3778_v55  ;;  %v3857_v59 = vld [vmem:[#allocation10 + $0x1f0] ss:$8 sps:$4 sm:$0xff]   ;;  %v3826_v55 = vld [vmem:[#allocation10 + $0xa4] ss:$8 sps:$4 sm:$0xff]  }
 0x1e2   :  { %2271 = vmatpush2.bf16.msra.mxu0 %v3773_v60  ;;  %2308 = vmatpush2.bf16.msra.mxu1 %v3776_v61  ;;  %v3862_v60 = vld [vmem:[#allocation10 + $0x1e4] ss:$8 sps:$4 sm:$0xff]   ;;  %v3824_v61 = vld [vmem:[#allocation10 + $0xa0] ss:$8 sps:$4 sm:$0xff]  }
 0x1e3   :  { %2309 = vmatprep.subr.bf16.mxu1 %v3781_v62  ;;  %2726 = vmatprep.subr.bf16.mxu0 %v3787_v63  ;;  %v3860_v62 = vld [vmem:[#allocation10 + $0x1e0] ss:$8 sps:$4 sm:$0xff]   ;;  %v3829_v63 = vld [vmem:[#allocation10 + $0x94] ss:$8 sps:$4 sm:$0xff]  }
 0x1e5   :  { %2273 = vmatmul.mubr.bf16.vlgmr.msra.gmra.mxu0 %v4198_v42  ;;  %v4212_v4 = vpop.f32.mrf.mxu0 }
 0x1e6   :  { %2310 = vmatpush2.bf16.msra.mxu1 %v3779_v0  ;;  %2727 = vmatpush1.bf16.msra.mxu0 %v3785_v1  ;;  %v3865_v0 = vld [vmem:[#allocation10 + $0x1d4] ss:$8 sps:$4 sm:$0xff]   ;;  %v3827_v1 = vld [vmem:[#allocation10 + $0x90] ss:$8 sps:$4 sm:$0xff]  }
 0x1e7   :  { %v4214_v27 = vpop.f32.mrf.mxu0  ;;  %2311 = vmatprep.subr.bf16.mxu1 %v3784_v2  ;;  %2728 = vmatprep.subr.bf16.mxu0 %v3790_v3  ;;  %v3863_v2 = vld [vmem:[#allocation10 + $0x1d0] ss:$8 sps:$4 sm:$0xff]   ;;  %v3832_v3 = vld [vmem:[#allocation10 + $0x84] ss:$8 sps:$4 sm:$0xff]  }
 0x1e9   :  { %v2032_v6 = vpop.f32.mrf.mxu0 }
 0x1ea   :  { %2312 = vmatpush2.bf16.msra.mxu1 %v3782_v58  ;;  %2729 = vmatpush1.bf16.msra.mxu0 %v3788_v7  ;;  %v3868_v58 = vld [vmem:[#allocation10 + $0x1c4] ss:$8 sps:$4 sm:$0xff]   ;;  %v3830_v7 = vld [vmem:[#allocation10 + $0x80] ss:$8 sps:$4 sm:$0xff]   ;;  %v4224_v6 = vld [vmem:[%s4255_s4] sm:$0xf] }
 0x1eb   :  { %v2033_v9 = vpop.f32.mrf.mxu0  ;;  %2730 = vmatprep.subr.bf16.mxu0 %v3793_v5  ;;  %2767 = vmatprep.subr.bf16.mxu1 %v3835_v19  ;;  %v3866_v5 = vld [vmem:[#allocation10 + $0x1c0] ss:$8 sps:$4 sm:$0xff]   ;;  %v3874_v19 = vld [vmem:[#allocation10 + $0x1a4] ss:$8 sps:$4 sm:$0xff]  }
 0x1ed   :  { %2314 = vmatmul.mubr.bf16.vlgmr.msra.gmra.mxu1 %v4203_v54  ;;  %v4217_v42 = vpop.f32.mrf.mxu1  ;;  %v3800_v54 = vld [vmem:[#allocation10 + $0x20] ss:$8 sps:$4 sm:$0xff]  }
 0x1ee   :  { %2731 = vmatpush1.bf16.msra.mxu0 %v3791_v8  ;;  %2768 = vmatpush1.bf16.msra.mxu1 %v3833_v18  ;;  %v697_v8 = vrot.slane %v4224_v6, %v4148_v39 }
 0x1ef   :  { %v4219_v12 = vpop.f32.mrf.mxu1  ;;  %2732 = vmatprep.subr.bf16.mxu0 %v3796_v10  ;;  %2769 = vmatprep.subr.bf16.mxu1 %v3838_v20  ;;  %v701_v10 = vrot.slane %v4224_v6, %v4153_v41 }
 0x1f1   :  { %v2073_v48 = vpop.f32.mrf.mxu1 }
 0x1f2   :  { %2733 = vmatpush1.bf16.msra.mxu0 %v3794_v11  ;;  %2770 = vmatpush1.bf16.msra.mxu1 %v3836_v21  ;;  %v3871_v11 = vld [vmem:[#allocation10 + $0x1b4] ss:$8 sps:$4 sm:$0xff]   ;;  %v3869_v48 = vld [vmem:[#allocation10 + $0x1b0] ss:$8 sps:$4 sm:$0xff]  }
 0x1f3   :  { %v2074_v16 = vpop.f32.mrf.mxu1  ;;  %2734 = vmatprep.subr.bf16.mxu0 %v3799_v13  ;;  %2771 = vmatprep.subr.bf16.mxu1 %v3841_v23 }
 0x1f6   :  { %2735 = vmatpush1.bf16.msra.mxu0 %v3797_v15  ;;  %2772 = vmatpush1.bf16.msra.mxu1 %v3839_v25  ;;  %v2029_v15 = vadd.f32 %v4212_v4, %v697_v8 }
 0x1f7   :  { %2736 = vmatprep.subr.bf16.mxu0 %v3802_v17  ;;  %2773 = vmatprep.subr.bf16.mxu1 %v3844_v28  ;;  %v2031_v17 = vadd.f32 %v4214_v27, %v701_v10  ;;  %v3875_v28 = vld [vmem:[#allocation10 + $0x190] ss:$8 sps:$4 sm:$0xff]  }
 0x1f8   :  { %v2070_v18 = vadd.f32 %v4217_v42, %v2029_v15 }
 0x1f9   :  { %v2072_v21 = vadd.f32 %v4219_v12, %v2031_v17 }
 0x1fa   :  { %2737 = vmatpush1.bf16.msra.mxu0 %v3800_v54  ;;  %2774 = vmatpush1.bf16.msra.mxu1 %v3842_v30  ;;  %v3872_v54 = vld [vmem:[#allocation10 + $0x1a0] ss:$8 sps:$4 sm:$0xff]  }
 0x1fb   :  { %2738 = vmatprep.subr.bf16.mxu0 %v3805_v22  ;;  %2775 = vmatprep.subr.bf16.mxu1 %v3847_v33 }
 0x1fe   :  { %2739 = vmatpush1.bf16.msra.mxu0 %v3803_v24  ;;  %2776 = vmatpush1.bf16.msra.mxu1 %v3845_v35 }
 0x1ff   :  { %2740 = vmatprep.subr.bf16.mxu0 %v3808_v26  ;;  %2777 = vmatprep.subr.bf16.mxu1 %v3850_v14  ;;  %v3877_v26 = vld [vmem:[#allocation10 + $0x194] ss:$8 sps:$4 sm:$0xff]  }
 0x202   :  { %2741 = vmatpush1.bf16.msra.mxu0 %v3806_v29  ;;  %2778 = vmatpush1.bf16.msra.mxu1 %v3848_v43 }
 0x203   :  { %2742 = vmatprep.subr.bf16.mxu0 %v3811_v32  ;;  %2779 = vmatprep.subr.bf16.mxu1 %v3853_v45  ;;  %v3880_v32 = vld [vmem:[#allocation10 + $0x184] ss:$8 sps:$4 sm:$0xff]  }
 0x206   :  { %2743 = vmatpush2.bf16.msra.mxu0 %v3809_v34  ;;  %2780 = vmatpush1.bf16.msra.mxu1 %v3851_v47  ;;  %v3878_v34 = vld [vmem:[#allocation10 + $0x180] ss:$8 sps:$4 sm:$0xff]  }
 0x207   :  { %2744 = vmatprep.subr.bf16.mxu0 %v3814_v36  ;;  %2781 = vmatprep.subr.bf16.mxu1 %v3856_v51  ;;  %v3882_v51 = vld [vmem:[#allocation11 + $0x38] sm:$0xff]  }
 0x20a   :  { %2745 = vmatpush2.bf16.msra.mxu0 %v3812_v37  ;;  %2782 = vmatpush1.bf16.msra.mxu1 %v3854_v31  ;;  %v3884_v31 = vld [vmem:[#allocation11 + $0x30] sm:$0xff]  }
 0x20b   :  { %2746 = vmatprep.subr.bf16.mxu0 %v3817_v44  ;;  %2783 = vmatprep.subr.bf16.mxu1 %v3859_v56  ;;  %v3886_v56 = vld [vmem:[#allocation11 + $0x28] sm:$0xff]  }
 0x20e   :  { %2747 = vmatpush2.bf16.msra.mxu0 %v3815_v40  ;;  %2784 = vmatpush2.bf16.msra.mxu1 %v3857_v59  ;;  %v3888_v59 = vld [vmem:[#allocation11 + $0x20] sm:$0xff]  }
 0x20f   :  { %2748 = vmatprep.subr.bf16.mxu0 %v3820_v50  ;;  %2785 = vmatprep.subr.bf16.mxu1 %v3862_v60  ;;  %v3881_v50 = vld [vmem:[#allocation11 + $0x78] sm:$0xff]  }
 0x210   :  { %v3890_v60 = vld [vmem:[#allocation11 + $0x18] sm:$0xff]  }
 0x212   :  { %2749 = vmatpush2.bf16.msra.mxu0 %v3818_v52  ;;  %2786 = vmatpush2.bf16.msra.mxu1 %v3860_v62  ;;  %v3883_v52 = vld [vmem:[#allocation11 + $0x70] sm:$0xff]  }
 0x213   :  { %2750 = vmatprep.subr.bf16.mxu0 %v3823_v53  ;;  %2787 = vmatprep.subr.bf16.mxu1 %v3865_v0  ;;  %v3885_v53 = vld [vmem:[#allocation11 + $0x68] sm:$0xff]   ;;  %v3892_v62 = vld [vmem:[#allocation11 + $0x10] sm:$0xff]  }
 0x216   :  { %2751 = vmatpush2.bf16.msra.mxu0 %v3821_v57  ;;  %2788 = vmatpush2.bf16.msra.mxu1 %v3863_v2  ;;  %v3887_v57 = vld [vmem:[#allocation11 + $0x60] sm:$0xff]  }
 0x217   :  { %2752 = vmatprep.subr.bf16.mxu0 %v3826_v55  ;;  %2789 = vmatprep.subr.bf16.mxu1 %v3868_v58  ;;  %v3889_v55 = vld [vmem:[#allocation11 + $0x58] sm:$0xff]  }
 0x21a   :  { %2753 = vmatpush2.bf16.msra.mxu0 %v3824_v61  ;;  %2790 = vmatpush2.bf16.msra.mxu1 %v3866_v5  ;;  %v3891_v61 = vld [vmem:[#allocation11 + $0x50] sm:$0xff]  }
 0x21b   :  { %2754 = vmatprep.subr.bf16.mxu0 %v3829_v63  ;;  %2791 = vmatprep.subr.bf16.mxu1 %v3871_v11  ;;  %v705_v63 = vrot.slane %v4224_v6, %v142_v46 }
 0x21e   :  { %2755 = vmatpush2.bf16.msra.mxu0 %v3827_v1  ;;  %2792 = vmatpush2.bf16.msra.mxu1 %v3869_v48  ;;  %v709_v1 = vrot.slane %v4224_v6, %v146_v49  ;;  %v3893_v6 = vld [vmem:[#allocation11 + $0x48] sm:$0xff]  }
 0x21f   :  { %2756 = vmatprep.subr.bf16.mxu0 %v3832_v3  ;;  %2793 = vmatprep.subr.bf16.mxu1 %v3874_v19 }
 0x222   :  { %2757 = vmatpush2.bf16.msra.mxu0 %v3830_v7  ;;  %2794 = vmatpush2.bf16.msra.mxu1 %v3872_v54 }
 0x223   :  { %2795 = vmatprep.subr.bf16.mxu1 %v3877_v26  ;;  %3363 = vmatprep.subr.bf16.mxu0 %v3881_v50  ;;  %v2394_v26 = vld [vmem:[%s4257_s6] sm:$0x3] }
 0x225   :  { %v2110_v9 = vpop.f32.mrf.mxu0 }
 0x226   :  { %v2111_v22 = vadd.f32 %v2110_v9, %v2070_v18  ;;  %2796 = vmatpush2.bf16.msra.mxu1 %v3875_v28  ;;  %v2403_v28 = vrot.slane %v2394_v26, %v4153_v41 }
 0x227   :  { %v2112_v13 = vpop.f32.mrf.mxu0  ;;  %2797 = vmatprep.subr.bf16.mxu1 %v3880_v32 }
 0x228   :  { %v2113_v24 = vadd.f32 %v2112_v13, %v2072_v21  ;;  %v3894_v21 = vld [vmem:[#allocation11 + $0x8] sm:$0xff]  }
 0x229   :  { %v2114_v16 = vpop.f32.mrf.mxu0 }
 0x22a   :  { %2798 = vmatpush2.bf16.msra.mxu1 %v3878_v34 }
 0x22b   :  { %v2115_v20 = vpop.f32.mrf.mxu0 }
 0x22d   :  { %v2151_v23 = vpop.f32.mrf.mxu1 }
 0x22e   :  { %v2152_v25 = vadd.f32 %v2151_v23, %v2111_v22  ;;  %v3895_v23 = vld [vmem:[#allocation11 + $0x40] sm:$0xff]  }
 0x22f   :  { %v2153_v4 = vpop.f32.mrf.mxu1 }
 0x230   :  { %v2154_v29 = vadd.f32 %v2153_v4, %v2113_v24  ;;  %v2322_v30 = vmax.f32 %v2152_v25, 0.0  ;;  %v3896_v25 = vld [vmem:[#allocation11] sm:$0xff]   ;;  %v2399_v4 = vrot.slane %v2394_v26, %v4148_v39  ;;  %v3346_v39 = vld [vmem:[%s4259_s8] ss:$0 sm:$0xff] }
 0x231   :  { %v2155_v27 = vpop.f32.mrf.mxu1 }
 0x232   :  { %v2323_v42 = vmax.f32 %v2154_v29, 0.0  ;;  %v2326_v12 = vpack.c.bf16 %v2322_v30, %v2322_v30 }
 0x233   :  { %v2156_v33 = vpop.f32.mrf.mxu1 }
 0x234   :  { %v2327_v35 = vpack.c.bf16 %v2323_v42, %v2323_v42 }
 0x236   :  { %2758 = vmatprep.mubr.bf16.mxu0 %v2327_v35 }
 0x237   :  { %2759 = vmatmul.mubr.bf16.vlgmr.msra.gmra.mxu0 %v2326_v12 }
 0x238   :  { %3364 = vmatpush3.bf16.msra.mxu0 %v3882_v51 }
 0x239   :  { %3365 = vmatprep.subr.bf16.mxu0 %v3883_v52 }
 0x23c   :  { %3366 = vmatpush3.bf16.msra.mxu0 %v3884_v31 }
 0x23d   :  { %3367 = vmatprep.subr.bf16.mxu0 %v3885_v53 }
 0x240   :  { %3368 = vmatpush3.bf16.msra.mxu0 %v3886_v56 }
 0x241   :  { %3369 = vmatprep.subr.bf16.mxu0 %v3887_v57 }
 0x244   :  { %3370 = vmatpush3.bf16.msra.mxu0 %v3888_v59 }
 0x245   :  { %3371 = vmatprep.subr.bf16.mxu0 %v3889_v55 }
 0x248   :  { %3372 = vmatpush3.bf16.msra.mxu0 %v3890_v60 }
 0x249   :  { %3373 = vmatprep.subr.bf16.mxu0 %v3891_v61 }
 0x24c   :  { %3374 = vmatpush3.bf16.msra.mxu0 %v3892_v62 }
 0x24d   :  { %3375 = vmatprep.subr.bf16.mxu0 %v3893_v6 }
 0x250   :  { %3376 = vmatpush3.bf16.msra.mxu0 %v3894_v21 }
 0x251   :  { %3377 = vmatprep.subr.bf16.mxu0 %v3895_v23 }
 0x254   :  { %3378 = vmatpush3.bf16.msra.mxu0 %v3896_v25 }
 0x265   :  { %v2192_v36 = vpop.f32.mrf.mxu0 }
 0x266   :  { %v2193_v3 = vadd.f32 %v2192_v36, %v705_v63 }
 0x267   :  { %v2194_v14 = vpop.f32.mrf.mxu0 }
 0x268   :  { %v2195_v7 = vadd.f32 %v2194_v14, %v709_v1 }
 0x269   :  { %v2196_v37 = vpop.f32.mrf.mxu0 }
 0x26b   :  { %v2197_v43 = vpop.f32.mrf.mxu0 }
 0x26d   :  { %v2233_v44 = vpop.f32.mrf.mxu1 }
 0x26e   :  { %v2234_v5 = vadd.f32 %v2233_v44, %v2193_v3 }
 0x26f   :  { %v2235_v45 = vpop.f32.mrf.mxu1 }
 0x270   :  { %v2236_v9 = vadd.f32 %v2235_v45, %v2195_v7 }
 0x271   :  { %v2237_v40 = vpop.f32.mrf.mxu1 }
 0x273   :  { %v2238_v47 = vpop.f32.mrf.mxu1 }
 0x2a5   :  { %v2274_v0 = vpop.f32.mrf.mxu0 }
 0x2a6   :  { %v2275_v10 = vadd.f32 %v2274_v0, %v2234_v5 }
 0x2a7   :  { %v2276_v2 = vpop.f32.mrf.mxu0 }
 0x2a8   :  { %v2277_v13 = vadd.f32 %v2276_v2, %v2236_v9 }
 0x2a9   :  { %v2278_v58 = vpop.f32.mrf.mxu0 }
 0x2ab   :  { %v2279_v8 = vpop.f32.mrf.mxu0 }
 0x2ad   :  { %v2315_v11 = vpop.f32.mrf.mxu1 }
 0x2ae   :  { %v2316_v48 = vadd.f32 %v2315_v11, %v2275_v10 }
 0x2af   :  { %v2317_v15 = vpop.f32.mrf.mxu1 }
 0x2b0   :  { %v2318_v16 = vadd.f32 %v2317_v15, %v2277_v13  ;;  %v2324_v17 = vmax.f32 %v2316_v48, 0.0 }
 0x2b1   :  { %v2319_v46 = vpop.f32.mrf.mxu1 }
 0x2b2   :  { %v2325_v18 = vmax.f32 %v2318_v16, 0.0  ;;  %v2328_v20 = vpack.c.bf16 %v2324_v17, %v2324_v17 }
 0x2b3   :  { %v2320_v19 = vpop.f32.mrf.mxu1 }
 0x2b4   :  { %v2329_v38 = vpack.c.bf16 %v2325_v18, %v2325_v18 }
 0x2b6   :  { %2799 = vmatprep.mubr.bf16.mxu1 %v2329_v38 }
 0x2b7   :  { %2800 = vmatmul.mubr.bf16.vlgmr.msra.gmra.mxu1 %v2328_v20 }
 0x2f7   :  { %v2760_v49 = vpop.f32.mrf.mxu0 }
 0x2f8   :  { %v2761_v29 = vadd.f32 %v2760_v49, %v2399_v4 }
 0x2f9   :  { %v2762_v54 = vpop.f32.mrf.mxu0 }
 0x2fa   :  { %v2763_v27 = vadd.f32 %v2762_v54, %v2403_v28 }
 0x2fb   :  { %v2764_v22 = vpop.f32.mrf.mxu0 }
 0x2fd   :  { %v2765_v24 = vpop.f32.mrf.mxu0 }
 0x377   :  { %v2801_v30 = vpop.f32.mrf.mxu1 }
 0x378   :  { %v2802_v42 = vadd.f32 %v2801_v30, %v2761_v29 }
 0x379   :  { %v2803_v32 = vpop.f32.mrf.mxu1 }
 0x37a   :  { %v2804_v33 = vadd.f32 %v2803_v32, %v2763_v27  ;;  %v2808_v34 = vmax.f32 %v2802_v42, 0.0 }
 0x37b   :  { %v2805_v35 = vpop.f32.mrf.mxu1 }
 0x37c   :  { %v2809_v12 = vmax.f32 %v2804_v33, 0.0  ;;  %v2810_v37 = vpack.c.bf16 %v2808_v34, %v2808_v34 }
 0x37d   :  { %v2806_v36 = vpop.f32.mrf.mxu1 }
 0x37e   :  { %v2811_v14 = vpack.c.bf16 %v2809_v12, %v2809_v12 }
 0x380   :  { %2979 = vmatprep.mubr.bf16.mxu0 %v2811_v14 }
 0x381   :  { %2980 = vmatmul.mubr.bf16.vlgmr.msra.gmra.mxu0 %v2810_v37 }
 0x441   :  { %v3379_v43 = vpop.f32.mrf.mxu0 }
 0x443   :  { %v3380_v41 = vpop.f32.mrf.mxu0 }
 0x444   :  { %v3381_v44 = vadd.f32 %v3380_v41, %v3379_v43 }
 0x445   :  { %v3382_v45 = vpop.f32.mrf.mxu0 }
 0x446   :  { %v2982_v40 = vadd.f32 %v3381_v44, %v3346_v39 }
 0x447   :  { %v3383_v47 = vpop.f32.mrf.mxu0 }
 0x448   :  { %2987 = vst [vmem:[#allocation13] sm:$0xff] %v2982_v40 }
 0x449   :  { %4028 = shalt.err (!%p4025_p6)
}
 0x44a   :  { %2997 = dma.vmem_to_hbm [thread:$0]  %s2995_s25, 128, %s4260_s9, [#allocation4]  }
 0x44b   :  { %4045 = dma.done.wait [#allocation4], 128  }
 0x44c   :  { %4046 = vsyncadd [#allocation4], 4294967168 }
 0x44d   :  { %3001 = vsyncpa [#allocation3], 1 }
 0x44e   :  { %3002 = vsyncpa [#allocation6], 1 }
 0x44f   :  { %3003 = vsyncpa [#allocation9], 1 }
 0x450   :  { %3004 = vsyncpa [#allocation12], 1 }
 0x451   :  { %3005 = vsyncpa [#allocation4], 1 }

// kernel: _mtl_forward.1
= control target key start
LH: loop header
LB: loop body
LE: loop exit
PB: predicated region body
PF: predicated region fallthrough
CT: control target
= control target key end

     0   :  { %14 = vsyncpa [#allocation3], 0  ;;  %s4251_s0 = inlined_call_operand.hbm [shape: f32[8,32], index: 0, kind: input, shape index: {}]   ;;  %s4252_s1 = inlined_call_operand.hbm [shape: bf16[32,1024], index: 1, kind: input, shape index: {}]   ;;  %s4253_s2 = inlined_call_operand.hbm [shape: f32[1,1024], index: 2, kind: input, shape index: {}]   ;;  %s4254_s3 = inlined_call_operand.hbm [shape: bf16[1024,512], index: 3, kind: input, shape index: {}]   ;;  %s4255_s4 = inlined_call_operand.vmem [shape: f32[1,512], index: 4, kind: input, shape index: {}]   ;;  %s4256_s5 = inlined_call_operand.hbm [shape: bf16[512,256], index: 5, kind: input, shape index: {}]   ;;  %s4257_s6 = inlined_call_operand.vmem [shape: f32[1,256], index: 6, kind: input, shape index: {}]   ;;  %s4258_s7 = inlined_call_operand.hbm [shape: bf16[256,128], index: 7, kind: input, shape index: {}]   ;;  %s4259_s8 = inlined_call_operand.vmem [shape: f32[1,128], index: 8, kind: input, shape index: {}]   ;;  %s4260_s9 = inlined_call_operand.hbm [shape: f32[8,128], index: 9, kind: output, shape index: {}]  }
   0x1   :  { %15 = vsyncpa [#allocation6], 0 }
   0x2   :  { %16 = vsyncpa [#allocation9], 0 }
   0x3   :  { %17 = vsyncpa [#allocation12], 0 }
   0x4   :  { %18 = vsyncpa [#allocation4], 0  ;;  %s4047_s30 = smov [#allocation5]  }
   0x5   :  { %s34_s10 = sshll.u32 %s4047_s30, 4  ;;  %s35_s10 = int_to_ptr.vmem [resolvable:$true] %s34_s10 }
   0x6   :  { %s3905_s11 = scalar_lea.vmem %s35_s10, 2048  ;;  %p3910_p1 = scmp.lt.s32.totalorder %s35_s10, %s35_s10 }
   0x7   :  { %p3906_p0 = scmp.ne.s32.totalorder %s35_s10, %s3905_s11  ;;  %p3911_p2 = scmp.lt.s32.totalorder %s3905_s11, %s3905_s11 }
   0x9   :  { %p3912_p3 = por %p3911_p2, %p3910_p1 }
   0xb   :  { %p3913_p4 = pnand %p3912_p3, %p3906_p0 }
   0xd   :  { %3916 = shalt.err (!%p3913_p4)
}
   0xe   :  { %s4048_s12 = smov 512   ;;  %s4049_s13 = smov 32  }
   0xf   :  { %40 = dma.hbm_to_vmem [thread:$0]  %s4252_s1, 2048, %s35_s10, [#allocation6], %s4048_s12, %s4048_s12, %s4049_s13  }
  0x10   :  { %s4050_s16 = smov [#allocation8]  }
  0x11   :  { %s56_s17 = sshll.u32 %s4050_s16, 4  ;;  %s57_s17 = int_to_ptr.vmem [resolvable:$true] %s56_s17 }
  0x12   :  { %s3925_s18 = scalar_lea.vmem %s57_s17, 32768  ;;  %p3930_p6 = scmp.lt.s32.totalorder %s57_s17, %s57_s17 }
  0x13   :  { %p3926_p5 = scmp.ne.s32.totalorder %s57_s17, %s3925_s18  ;;  %p3931_p7 = scmp.lt.s32.totalorder %s3925_s18, %s3925_s18 }
  0x15   :  { %p3932_p8 = por %p3931_p7, %p3930_p6 }
  0x17   :  { %p3933_p9 = pnand %p3932_p8, %p3926_p5 }
  0x19   :  { %3936 = shalt.err (!%p3933_p9)
}
  0x1a   :  { %s4051_s19 = smov 256   ;;  %s4052_s20 = smov 16  }
  0x1b   :  { %62 = dma.hbm_to_vmem [thread:$0]  %s4254_s3, 32768, %s57_s17, [#allocation9], %s4051_s19, %s4051_s19, %s4052_s20  }
  0x1c   :  { %s4053_s23 = smov [#allocation2]   ;;  %s4054_s25 = smov [#allocation7]  }
  0x1d   :  { %s25_s24 = sshll.u32 %s4053_s23, 4  ;;  %s47_s1 = sshll.u32 %s4054_s25, 4  ;;  %s26_s24 = int_to_ptr.vmem [resolvable:$true] %s25_s24  ;;  %s48_s1 = int_to_ptr.vmem [resolvable:$true] %s47_s1 }
  0x1e   :  { %s3945_s26 = scalar_lea.vmem %s26_s24, 128  ;;  %p3950_p11 = scmp.lt.s32.totalorder %s26_s24, %s26_s24 }
  0x1f   :  { %p3946_p10 = scmp.ne.s32.totalorder %s26_s24, %s3945_s26  ;;  %p3951_p12 = scmp.lt.s32.totalorder %s3945_s26, %s3945_s26 }
  0x21   :  { %p3952_p13 = por %p3951_p12, %p3950_p11 }
  0x23   :  { %p3953_p0 = pnand %p3952_p13, %p3946_p10 }
  0x25   :  { %3956 = shalt.err (!%p3953_p0)
}
  0x26   :  { %28 = dma.hbm_to_vmem [thread:$0]  %s4251_s0, 128, %s26_s24, [#allocation3]  }
  0x27   :  { %s3965_s29 = scalar_lea.vmem %s48_s1, 128  ;;  %p3970_p2 = scmp.lt.s32.totalorder %s48_s1, %s48_s1 }
  0x28   :  { %p3966_p1 = scmp.ne.s32.totalorder %s48_s1, %s3965_s29  ;;  %p3971_p3 = scmp.lt.s32.totalorder %s3965_s29, %s3965_s29 }
  0x2a   :  { %p3972_p4 = por %p3971_p3, %p3970_p2 }
  0x2c   :  { %p3973_p5 = pnand %p3972_p4, %p3966_p1 }
  0x2e   :  { %3976 = shalt.err (!%p3973_p5)
}
  0x2f   :  { %50 = dma.hbm_to_vmem [thread:$0]  %s4253_s2, 128, %s48_s1, [#allocation6]  }
  0x30   :  { %s4055_s10 = smov [#allocation10]  }
  0x31   :  { %s70_s11 = sshll.u32 %s4055_s10, 4  ;;  %s71_s11 = int_to_ptr.vmem [resolvable:$true] %s70_s11 }
  0x32   :  { %s3985_s12 = scalar_lea.vmem %s71_s11, 8192  ;;  %p3990_p7 = scmp.lt.s32.totalorder %s71_s11, %s71_s11 }
  0x33   :  { %p3986_p6 = scmp.ne.s32.totalorder %s71_s11, %s3985_s12  ;;  %p3991_p8 = scmp.lt.s32.totalorder %s3985_s12, %s3985_s12 }
  0x35   :  { %p3992_p9 = por %p3991_p8, %p3990_p7 }
  0x37   :  { %p3993_p10 = pnand %p3992_p9, %p3986_p6 }
  0x39   :  { %3996 = shalt.err (!%p3993_p10)
}
  0x3a   :  { %s4056_s0 = smov 128   ;;  %s4057_s13 = smov 8  }
  0x3b   :  { %76 = dma.hbm_to_vmem [thread:$0]  %s4256_s5, 8192, %s71_s11, [#allocation9], %s4056_s0, %s4056_s0, %s4057_s13  }
  0x3c   :  { %s4058_s16 = smov [#allocation11]  }
  0x3d   :  { %s84_s17 = sshll.u32 %s4058_s16, 4  ;;  %s85_s17 = int_to_ptr.vmem [resolvable:$true] %s84_s17 }
  0x3e   :  { %s4005_s2 = scalar_lea.vmem %s85_s17, 2048  ;;  %p4010_p12 = scmp.lt.s32.totalorder %s85_s17, %s85_s17 }
  0x3f   :  { %p4006_p11 = scmp.ne.s32.totalorder %s85_s17, %s4005_s2  ;;  %p4011_p13 = scmp.lt.s32.totalorder %s4005_s2, %s4005_s2 }
  0x41   :  { %p4012_p0 = por %p4011_p13, %p4010_p12 }
  0x43   :  { %p4013_p1 = pnand %p4012_p0, %p4006_p11 }
  0x45   :  { %4016 = shalt.err (!%p4013_p1)
}
  0x46   :  { %s4059_s18 = smov 64   ;;  %s4060_s19 = smov 4  }
  0x47   :  { %90 = dma.hbm_to_vmem [thread:$0]  %s4258_s7, 2048, %s85_s17, [#allocation12], %s4059_s18, %s4059_s18, %s4060_s19  }
  0x48   :  { %4037 = dma.done.wait [#allocation3], 128  }
  0x49   :  { %4038 = vsyncadd [#allocation3], 4294967168 }
  0x4a   :  { %4039 = dma.done.wait [#allocation6], 2176  }
  0x4b   :  { %4040 = vsyncadd [#allocation6], 4294965120 }
  0x4c   :  { %4041 = dma.done.wait [#allocation9], 40960  }
  0x4d   :  { %4042 = vsyncadd [#allocation9], 4294926336 }
  0x4e   :  { %4043 = dma.done.wait [#allocation12], 2048  }
  0x4f   :  { %4044 = vsyncadd [#allocation12], 4294965248  ;;  %v4061_v0 = vmov 0   ;;  %v122_v1 = vld [vmem:[#allocation5 + $0x40] sm:$0xff]  ;;  %v123_v8 = vld [vmem:[#allocation5 + $0x48] sm:$0xff]  ;;  %vm252_vm0 = vcmask 261120  }
  0x50   :  { %288 = vmatprep.mubr.bf16.mxu1 %v4061_v0  ;;  %v126_v2 = vld [vmem:[#allocation5 + $0x60] sm:$0xff]  ;;  %v127_v9 = vld [vmem:[#allocation5 + $0x68] sm:$0xff]  ;;  %v112_v11 = vld [vmem:[#allocation2] sm:$0xff]  ;;  %s4062_s24 = smov [#allocation13]  }
  0x51   :  { %v114_v3 = vld [vmem:[#allocation5] sm:$0xff]  ;;  %v3015_v4 = vcombine.high %v122_v1, %v126_v2  ;;  %v3014_v5 = vcombine.low %v122_v1, %v126_v2  ;;  %v3017_v12 = vcombine.high %v123_v8, %v127_v9  ;;  %v115_v13 = vld [vmem:[#allocation5 + $0x8] sm:$0xff]  ;;  %v4132_v17 = vpack.c.bf16 %v112_v11, %v112_v11  ;;  %v124_v22 = vld [vmem:[#allocation5 + $0x50] sm:$0xff]  ;;  %s2994_s25 = sshll.u32 %s4062_s24, 4  ;;  %s2995_s25 = int_to_ptr.vmem [resolvable:$true] %s2994_s25 }
  0x52   :  { %v118_v6 = vld [vmem:[#allocation5 + $0x20] sm:$0xff]  ;;  %v119_v14 = vld [vmem:[#allocation5 + $0x28] sm:$0xff]  ;;  %v3016_v19 = vcombine.low %v123_v8, %v127_v9  ;;  %v128_v23 = vld [vmem:[#allocation5 + $0x70] sm:$0xff]  ;;  %s4017_s1 = scalar_lea.vmem %s2995_s25, 128  ;;  %p4022_p3 = scmp.lt.s32.totalorder %s2995_s25, %s2995_s25 }
  0x53   :  { %v3007_v7 = vcombine.high %v114_v3, %v118_v6  ;;  %268 = vmatprep.subr.bf16.mxu1 %v3015_v4  ;;  %v3006_v10 = vcombine.low %v114_v3, %v118_v6  ;;  %v3401_v15 = vld [vmem:[#allocation8 + $0xe4] ss:$16 sps:$4 sm:$0xff]   ;;  %v3403_v16 = vld [vmem:[#allocation8 + $0xe0] ss:$16 sps:$4 sm:$0xff]   ;;  %v3009_v20 = vcombine.high %v115_v13, %v119_v14  ;;  %v3008_v25 = vcombine.low %v115_v13, %v119_v14  ;;  %v116_v26 = vld [vmem:[#allocation5 + $0x10] sm:$0xff]  ;;  %p4018_p2 = scmp.ne.s32.totalorder %s2995_s25, %s4017_s1  ;;  %p4023_p4 = scmp.lt.s32.totalorder %s4017_s1, %s4017_s1 }
  0x54   :  { %269 = vmatpush1.bf16.msra.mxu1 %v3014_v5  ;;  %v3404_v18 = vld [vmem:[#allocation8 + $0xc4] ss:$16 sps:$4 sm:$0xff]   ;;  %1994 = vmatprep.subr.bf16.mxu0 %v3401_v15  ;;  %v3406_v21 = vld [vmem:[#allocation8 + $0xc0] ss:$16 sps:$4 sm:$0xff]   ;;  %v3019_v27 = vcombine.high %v124_v22, %v128_v23  ;;  %v120_v28 = vld [vmem:[#allocation5 + $0x30] sm:$0xff]  ;;  %v3018_v31 = vcombine.low %v124_v22, %v128_v23 }
  0x55   :  { %270 = vmatprep.subr.bf16.mxu1 %v3007_v7  ;;  %1995 = vmatpush1.bf16.msra.mxu0 %v3403_v16  ;;  %v3407_v24 = vld [vmem:[#allocation8 + $0xa4] ss:$16 sps:$4 sm:$0xff]   ;;  %v3412_v29 = vld [vmem:[#allocation8 + $0xa0] ss:$16 sps:$4 sm:$0xff]   ;;  %v3011_v32 = vcombine.high %v116_v26, %v120_v28  ;;  %v3010_v37 = vcombine.low %v116_v26, %v120_v28  ;;  %p4024_p5 = por %p4023_p4, %p4022_p3 }
  0x56   :  { %1996 = vmatprep.subr.bf16.mxu0 %v3404_v18  ;;  %v3413_v30 = vld [vmem:[#allocation8 + $0x84] ss:$16 sps:$4 sm:$0xff]   ;;  %v3418_v33 = vld [vmem:[#allocation8 + $0x80] ss:$16 sps:$4 sm:$0xff]  }
  0x57   :  { %v125_v34 = vld [vmem:[#allocation5 + $0x58] sm:$0xff]  ;;  %p4025_p6 = pnand %p4024_p5, %p4018_p2 }
  0x58   :  { %271 = vmatpush1.bf16.msra.mxu1 %v3006_v10  ;;  %v129_v35 = vld [vmem:[#allocation5 + $0x78] sm:$0xff] }
  0x59   :  { %309 = vmatprep.subr.bf16.mxu1 %v3017_v12  ;;  %1997 = vmatpush1.bf16.msra.mxu0 %v3406_v21  ;;  %v3419_v36 = vld [vmem:[#allocation8 + $0x64] ss:$16 sps:$4 sm:$0xff]   ;;  %v3021_v39 = vcombine.high %v125_v34, %v129_v35  ;;  %v3424_v41 = vld [vmem:[#allocation8 + $0x60] ss:$16 sps:$4 sm:$0xff]   ;;  %v3020_v43 = vcombine.low %v125_v34, %v129_v35 }
  0x5a   :  { %1998 = vmatprep.subr.bf16.mxu0 %v3407_v24  ;;  %v117_v38 = vld [vmem:[#allocation5 + $0x18] sm:$0xff] }
  0x5b   :  { %3022 = vmatmul.mubr.msk.bf16.vlgmr.msra.gmra.mxu1 %vm252_vm0, %v4132_v17  ;;  %v121_v40 = vld [vmem:[#allocation5 + $0x38] sm:$0xff] }
  0x5c   :  { %310 = vmatpush1.bf16.msra.mxu1 %v3016_v19  ;;  %329 = vmatprep.mubr.bf16.mxu1 %v4061_v0  ;;  %v3425_v42 = vld [vmem:[#allocation8 + $0x44] ss:$16 sps:$4 sm:$0xff]   ;;  %v3013_v44 = vcombine.high %v117_v38, %v121_v40  ;;  %v3430_v45 = vld [vmem:[#allocation8 + $0x40] ss:$16 sps:$4 sm:$0xff]   ;;  %v3012_v47 = vcombine.low %v117_v38, %v121_v40  ;;  %v4150_v40 = vld [vmem:[#allocation7] sm:$0xff] }
  0x5d   :  { %311 = vmatprep.subr.bf16.mxu1 %v3009_v20  ;;  %1999 = vmatpush1.bf16.msra.mxu0 %v3412_v29  ;;  %v3431_v46 = vld [vmem:[#allocation8 + $0x24] ss:$16 sps:$4 sm:$0xff]   ;;  %v3436_v49 = vld [vmem:[#allocation8 + $0x20] ss:$16 sps:$4 sm:$0xff]  }
  0x5e   :  { %2000 = vmatprep.subr.bf16.mxu0 %v3413_v30  ;;  %v3411_v48 = vld [vmem:[#allocation8 + $0x2e4] ss:$16 sps:$4 sm:$0xff]   ;;  %v3409_v51 = vld [vmem:[#allocation8 + $0x2e0] ss:$16 sps:$4 sm:$0xff]  }
  0x5f   :  { %v3437_v50 = vld [vmem:[#allocation8 + $0x4] ss:$16 sps:$4 sm:$0xff]   ;;  %v3442_v53 = vld [vmem:[#allocation8] ss:$16 sps:$4 sm:$0xff]  }
  0x60   :  { %312 = vmatpush1.bf16.msra.mxu1 %v3008_v25  ;;  %v3417_v52 = vld [vmem:[#allocation8 + $0x2c4] ss:$16 sps:$4 sm:$0xff]   ;;  %v3415_v55 = vld [vmem:[#allocation8 + $0x2c0] ss:$16 sps:$4 sm:$0xff]  }
  0x61   :  { %350 = vmatprep.subr.bf16.mxu1 %v3019_v27  ;;  %2001 = vmatpush1.bf16.msra.mxu0 %v3418_v33  ;;  %v3443_v54 = vld [vmem:[#allocation8 + $0x1e4] ss:$16 sps:$4 sm:$0xff]   ;;  %v3448_v57 = vld [vmem:[#allocation8 + $0x1e0] ss:$16 sps:$4 sm:$0xff]  }
  0x62   :  { %2002 = vmatprep.subr.bf16.mxu0 %v3419_v36  ;;  %v3423_v56 = vld [vmem:[#allocation8 + $0x2a4] ss:$16 sps:$4 sm:$0xff]   ;;  %v3421_v59 = vld [vmem:[#allocation8 + $0x2a0] ss:$16 sps:$4 sm:$0xff]  }
  0x63   :  { %3023 = vmatmul.mubr.msk.bf16.vlgmr.msra.gmra.mxu1 %vm252_vm0, %v4132_v17  ;;  %v3449_v58 = vld [vmem:[#allocation8 + $0x1c4] ss:$16 sps:$4 sm:$0xff]   ;;  %v3454_v61 = vld [vmem:[#allocation8 + $0x1c0] ss:$16 sps:$4 sm:$0xff]  }
  0x64   :  { %351 = vmatpush1.bf16.msra.mxu1 %v3018_v31  ;;  %370 = vmatprep.mubr.bf16.mxu1 %v4061_v0  ;;  %v3429_v60 = vld [vmem:[#allocation8 + $0x284] ss:$16 sps:$4 sm:$0xff]   ;;  %v3427_v63 = vld [vmem:[#allocation8 + $0x280] ss:$16 sps:$4 sm:$0xff]  }
  0x65   :  { %352 = vmatprep.subr.bf16.mxu1 %v3011_v32  ;;  %2003 = vmatpush1.bf16.msra.mxu0 %v3424_v41  ;;  %v3455_v62 = vld [vmem:[#allocation8 + $0x1a4] ss:$16 sps:$4 sm:$0xff]   ;;  %v3460_v1 = vld [vmem:[#allocation8 + $0x1a0] ss:$16 sps:$4 sm:$0xff]  }
  0x66   :  { %2004 = vmatprep.subr.bf16.mxu0 %v3425_v42  ;;  %v3461_v2 = vld [vmem:[#allocation8 + $0x184] ss:$16 sps:$4 sm:$0xff]   ;;  %v3433_v3 = vld [vmem:[#allocation8 + $0x260] ss:$16 sps:$4 sm:$0xff]  }
  0x67   :  { %v3441_v4 = vld [vmem:[#allocation8 + $0x244] ss:$16 sps:$4 sm:$0xff]   ;;  %v3466_v5 = vld [vmem:[#allocation8 + $0x180] ss:$16 sps:$4 sm:$0xff]  }
  0x68   :  { %353 = vmatpush1.bf16.msra.mxu1 %v3010_v37  ;;  %v3467_v6 = vld [vmem:[#allocation8 + $0x164] ss:$16 sps:$4 sm:$0xff]   ;;  %v3439_v7 = vld [vmem:[#allocation8 + $0x240] ss:$16 sps:$4 sm:$0xff]   ;;  %v132_v37 = vlaneseq }
  0x69   :  { %391 = vmatprep.subr.bf16.mxu1 %v3021_v39  ;;  %2005 = vmatpush1.bf16.msra.mxu0 %v3430_v45  ;;  %v3447_v8 = vld [vmem:[#allocation8 + $0x224] ss:$16 sps:$4 sm:$0xff]   ;;  %v3472_v9 = vld [vmem:[#allocation8 + $0x160] ss:$16 sps:$4 sm:$0xff]  }
  0x6a   :  { %2006 = vmatprep.subr.bf16.mxu0 %v3431_v46  ;;  %v3473_v10 = vld [vmem:[#allocation8 + $0x144] ss:$16 sps:$4 sm:$0xff]   ;;  %v3445_v11 = vld [vmem:[#allocation8 + $0x220] ss:$16 sps:$4 sm:$0xff]   ;;  %v4145_v38 = vshrl.u32 %v132_v37, 7 }
  0x6b   :  { %3024 = vmatmul.mubr.msk.bf16.vlgmr.msra.gmra.mxu1 %vm252_vm0, %v4132_v17  ;;  %v3453_v12 = vld [vmem:[#allocation8 + $0x204] ss:$16 sps:$4 sm:$0xff]   ;;  %v3478_v13 = vld [vmem:[#allocation8 + $0x140] ss:$16 sps:$4 sm:$0xff]  }
  0x6c   :  { %392 = vmatpush1.bf16.msra.mxu1 %v3020_v43  ;;  %411 = vmatprep.mubr.bf16.mxu1 %v4061_v0  ;;  %v3435_v0 = vld [vmem:[#allocation8 + $0x264] ss:$16 sps:$4 sm:$0xff]   ;;  %v3451_v14 = vld [vmem:[#allocation8 + $0x200] ss:$16 sps:$4 sm:$0xff]   ;;  %v4148_v39 = vsub.s32 0, %v4145_v38  ;;  %v4153_v41 = vsub.s32 1, %v4145_v38 }
  0x6d   :  { %393 = vmatprep.subr.bf16.mxu1 %v3013_v44  ;;  %2007 = vmatpush1.bf16.msra.mxu0 %v3436_v49  ;;  %v3459_v15 = vld [vmem:[#allocation8 + $0x3e4] ss:$16 sps:$4 sm:$0xff]   ;;  %v3457_v16 = vld [vmem:[#allocation8 + $0x3e0] ss:$16 sps:$4 sm:$0xff]   ;;  %v142_v46 = vsub.s32 2, %v4145_v38  ;;  %v146_v49 = vsub.s32 3, %v4145_v38 }
  0x6e   :  { %2008 = vmatprep.subr.bf16.mxu0 %v3437_v50  ;;  %v3463_v18 = vld [vmem:[#allocation8 + $0x3c0] ss:$16 sps:$4 sm:$0xff]   ;;  %v3471_v19 = vld [vmem:[#allocation8 + $0x3a4] ss:$16 sps:$4 sm:$0xff]   ;;  %v135_v42 = vrot.slane %v4150_v40, %v4148_v39  ;;  %v139_v43 = vrot.slane %v4150_v40, %v4153_v41 }
  0x6f   :  { %v3469_v20 = vld [vmem:[#allocation8 + $0x3a0] ss:$16 sps:$4 sm:$0xff]   ;;  %v3477_v21 = vld [vmem:[#allocation8 + $0x384] ss:$16 sps:$4 sm:$0xff]  }
  0x70   :  { %394 = vmatpush1.bf16.msra.mxu1 %v3012_v47  ;;  %v3475_v22 = vld [vmem:[#allocation8 + $0x380] ss:$16 sps:$4 sm:$0xff]   ;;  %v3479_v23 = vld [vmem:[#allocation8 + $0x124] ss:$16 sps:$4 sm:$0xff]  }
  0x71   :  { %2035 = vmatprep.subr.bf16.mxu1 %v3411_v48  ;;  %2009 = vmatpush1.bf16.msra.mxu0 %v3442_v53  ;;  %v3483_v24 = vld [vmem:[#allocation8 + $0x364] ss:$16 sps:$4 sm:$0xff]   ;;  %v3484_v25 = vld [vmem:[#allocation8 + $0x120] ss:$16 sps:$4 sm:$0xff]   ;;  %v143_v53 = vrot.slane %v4150_v40, %v142_v46 }
  0x72   :  { %2010 = vmatprep.subr.bf16.mxu0 %v3443_v54  ;;  %v3481_v26 = vld [vmem:[#allocation8 + $0x360] ss:$16 sps:$4 sm:$0xff]   ;;  %v3485_v27 = vld [vmem:[#allocation8 + $0x104] ss:$16 sps:$4 sm:$0xff]  }
  0x73   :  { %3025 = vmatmul.mubr.msk.bf16.vlgmr.msra.gmra.mxu1 %vm252_vm0, %v4132_v17  ;;  %v3465_v17 = vld [vmem:[#allocation8 + $0x3c4] ss:$16 sps:$4 sm:$0xff]   ;;  %v3490_v29 = vld [vmem:[#allocation8 + $0x100] ss:$16 sps:$4 sm:$0xff]  }
  0x74   :  { %2036 = vmatpush1.bf16.msra.mxu1 %v3409_v51  ;;  %v3489_v28 = vld [vmem:[#allocation8 + $0x344] ss:$16 sps:$4 sm:$0xff]   ;;  %v3487_v31 = vld [vmem:[#allocation8 + $0x340] ss:$16 sps:$4 sm:$0xff]  }
  0x75   :  { %2037 = vmatprep.subr.bf16.mxu1 %v3417_v52  ;;  %2011 = vmatpush2.bf16.msra.mxu0 %v3448_v57  ;;  %v3496_v30 = vld [vmem:[#allocation8 + $0x4e4] ss:$16 sps:$4 sm:$0xff]   ;;  %v3491_v33 = vld [vmem:[#allocation8 + $0x320] ss:$16 sps:$4 sm:$0xff]   ;;  %v147_v57 = vrot.slane %v4150_v40, %v146_v49 }
  0x76   :  { %2012 = vmatprep.subr.bf16.mxu0 %v3449_v58  ;;  %v3493_v32 = vld [vmem:[#allocation8 + $0x324] ss:$16 sps:$4 sm:$0xff]   ;;  %v3497_v35 = vld [vmem:[#allocation8 + $0x300] ss:$16 sps:$4 sm:$0xff]  }
  0x77   :  { %v3499_v34 = vld [vmem:[#allocation8 + $0x304] ss:$16 sps:$4 sm:$0xff]  }
  0x78   :  { %2038 = vmatpush1.bf16.msra.mxu1 %v3415_v55  ;;  %v3508_v36 = vld [vmem:[#allocation8 + $0x6e4] ss:$16 sps:$4 sm:$0xff]  }
  0x79   :  { %2039 = vmatprep.subr.bf16.mxu1 %v3423_v56  ;;  %2013 = vmatpush2.bf16.msra.mxu0 %v3454_v61  ;;  %v3494_v56 = vld [vmem:[#allocation8 + $0x4e0] ss:$16 sps:$4 sm:$0xff]   ;;  %v3532_v37 = vld [vmem:[#allocation8 + $0x664] ss:$16 sps:$4 sm:$0xff]  }
  0x7a   :  { %2014 = vmatprep.subr.bf16.mxu0 %v3455_v62 }
  0x7c   :  { %2040 = vmatpush1.bf16.msra.mxu1 %v3421_v59 }
  0x7d   :  { %2041 = vmatprep.subr.bf16.mxu1 %v3429_v60  ;;  %2015 = vmatpush2.bf16.msra.mxu0 %v3460_v1  ;;  %v3502_v60 = vld [vmem:[#allocation8 + $0x4c4] ss:$16 sps:$4 sm:$0xff]   ;;  %v154_v1 = vsub.s32 5, %v4145_v38 }
  0x7e   :  { %2016 = vmatprep.subr.bf16.mxu0 %v3461_v2 }
  0x80   :  { %2042 = vmatpush1.bf16.msra.mxu1 %v3427_v63 }
  0x81   :  { %2043 = vmatprep.subr.bf16.mxu1 %v3435_v0  ;;  %2017 = vmatpush2.bf16.msra.mxu0 %v3466_v5  ;;  %v3500_v0 = vld [vmem:[#allocation8 + $0x4c0] ss:$16 sps:$4 sm:$0xff]  }
  0x82   :  { %2018 = vmatprep.subr.bf16.mxu0 %v3467_v6 }
  0x84   :  { %2044 = vmatpush1.bf16.msra.mxu1 %v3433_v3 }
  0x85   :  { %2045 = vmatprep.subr.bf16.mxu1 %v3441_v4  ;;  %2019 = vmatpush2.bf16.msra.mxu0 %v3472_v9  ;;  %v3505_v4 = vld [vmem:[#allocation8 + $0x4a4] ss:$16 sps:$4 sm:$0xff]   ;;  %v3506_v9 = vld [vmem:[#allocation8 + $0x6e0] ss:$16 sps:$4 sm:$0xff]  }
  0x86   :  { %2020 = vmatprep.subr.bf16.mxu0 %v3473_v10  ;;  %v155_v10 = vrot.slane %v4150_v40, %v154_v1  ;;  %v3556_v1 = vld [vmem:[#allocation8 + $0x7e4] ss:$16 sps:$4 sm:$0xff]  }
  0x88   :  { %2046 = vmatpush1.bf16.msra.mxu1 %v3439_v7 }
  0x89   :  { %2047 = vmatprep.subr.bf16.mxu1 %v3447_v8  ;;  %2021 = vmatpush2.bf16.msra.mxu0 %v3478_v13  ;;  %v3503_v8 = vld [vmem:[#allocation8 + $0x4a0] ss:$16 sps:$4 sm:$0xff]   ;;  %v3514_v13 = vld [vmem:[#allocation8 + $0x6c4] ss:$16 sps:$4 sm:$0xff]  }
  0x8a   :  { %2022 = vmatprep.subr.bf16.mxu0 %v3479_v23 }
  0x8c   :  { %2048 = vmatpush1.bf16.msra.mxu1 %v3445_v11 }
  0x8d   :  { %2049 = vmatprep.subr.bf16.mxu1 %v3453_v12  ;;  %2023 = vmatpush2.bf16.msra.mxu0 %v3484_v25  ;;  %v3511_v12 = vld [vmem:[#allocation8 + $0x484] ss:$16 sps:$4 sm:$0xff]   ;;  %v3515_v25 = vld [vmem:[#allocation8 + $0x460] ss:$16 sps:$4 sm:$0xff]  }
  0x8e   :  { %2024 = vmatprep.subr.bf16.mxu0 %v3485_v27 }
  0x90   :  { %2050 = vmatpush1.bf16.msra.mxu1 %v3451_v14 }
  0x91   :  { %2051 = vmatprep.subr.bf16.mxu1 %v3459_v15  ;;  %2025 = vmatpush2.bf16.msra.mxu0 %v3490_v29  ;;  %v3523_v29 = vld [vmem:[#allocation8 + $0x444] ss:$16 sps:$4 sm:$0xff]  }
  0x92   :  { %2076 = vmatprep.subr.bf16.mxu0 %v3496_v30  ;;  %v3526_v30 = vld [vmem:[#allocation8 + $0x684] ss:$16 sps:$4 sm:$0xff]  }
  0x94   :  { %2052 = vmatpush2.bf16.msra.mxu1 %v3457_v16  ;;  %v3509_v16 = vld [vmem:[#allocation8 + $0x480] ss:$16 sps:$4 sm:$0xff]  }
  0x95   :  { %2053 = vmatprep.subr.bf16.mxu1 %v3465_v17  ;;  %v3512_v17 = vld [vmem:[#allocation8 + $0x6c0] ss:$16 sps:$4 sm:$0xff]  }
  0x98   :  { %2054 = vmatpush2.bf16.msra.mxu1 %v3463_v18 }
  0x99   :  { %2055 = vmatprep.subr.bf16.mxu1 %v3471_v19  ;;  %v162_v19 = vsub.s32 7, %v4145_v38 }
  0x9c   :  { %2056 = vmatpush2.bf16.msra.mxu1 %v3469_v20  ;;  %v3517_v20 = vld [vmem:[#allocation8 + $0x464] ss:$16 sps:$4 sm:$0xff]  }
  0x9d   :  { %2057 = vmatprep.subr.bf16.mxu1 %v3477_v21  ;;  %v3520_v21 = vld [vmem:[#allocation8 + $0x6a4] ss:$16 sps:$4 sm:$0xff]  }
  0xa0   :  { %2058 = vmatpush2.bf16.msra.mxu1 %v3475_v22 }
  0xa1   :  { %2059 = vmatprep.subr.bf16.mxu1 %v3483_v24 }
  0xa4   :  { %2060 = vmatpush2.bf16.msra.mxu1 %v3481_v26  ;;  %v3518_v26 = vld [vmem:[#allocation8 + $0x6a0] ss:$16 sps:$4 sm:$0xff]  }
  0xa5   :  { %2061 = vmatprep.subr.bf16.mxu1 %v3489_v28  ;;  %v163_v28 = vrot.slane %v4150_v40, %v162_v19  ;;  %v3572_v19 = vld [vmem:[#allocation8 + $0x780] ss:$16 sps:$4 sm:$0xff]  }
  0xa8   :  { %2062 = vmatpush2.bf16.msra.mxu1 %v3487_v31 }
  0xa9   :  { %2063 = vmatprep.subr.bf16.mxu1 %v3493_v32 }
  0xac   :  { %2064 = vmatpush2.bf16.msra.mxu1 %v3491_v33  ;;  %v3521_v33 = vld [vmem:[#allocation8 + $0x440] ss:$16 sps:$4 sm:$0xff]  }
  0xad   :  { %2065 = vmatprep.subr.bf16.mxu1 %v3499_v34  ;;  %v3524_v34 = vld [vmem:[#allocation8 + $0x680] ss:$16 sps:$4 sm:$0xff]  }
  0xb0   :  { %2066 = vmatpush2.bf16.msra.mxu1 %v3497_v35 }
  0xb1   :  { %2117 = vmatprep.subr.bf16.mxu1 %v3508_v36  ;;  %v3529_v36 = vld [vmem:[#allocation8 + $0x424] ss:$16 sps:$4 sm:$0xff]  }
 0x11b   :  { %v290_v44 = vpop.f32.mrf.mxu1 }
 0x11c   :  { %v291_v45 = vadd.f32 %v290_v44, %v135_v42 }
 0x11d   :  { %v292_v47 = vpop.f32.mrf.mxu1 }
 0x11e   :  { %v293_v48 = vadd.f32 %v292_v47, %v139_v43  ;;  %v420_v50 = vmax.f32 %v291_v45, 0.0  ;;  %v3527_v45 = vld [vmem:[#allocation8 + $0x420] ss:$16 sps:$4 sm:$0xff]  }
 0x11f   :  { %v294_v51 = vpop.f32.mrf.mxu1  ;;  %v3530_v47 = vld [vmem:[#allocation8 + $0x660] ss:$16 sps:$4 sm:$0xff]  }
 0x120   :  { %v421_v52 = vmax.f32 %v293_v48, 0.0  ;;  %v4169_v58 = vpack.c.bf16 %v420_v50, %v420_v50  ;;  %v3535_v50 = vld [vmem:[#allocation8 + $0x404] ss:$16 sps:$4 sm:$0xff]  }
 0x121   :  { %v295_v54 = vpop.f32.mrf.mxu1  ;;  %v3538_v51 = vld [vmem:[#allocation8 + $0x644] ss:$16 sps:$4 sm:$0xff]  }
 0x122   :  { %v4164_v55 = vpack.c.bf16 %v421_v52, %v421_v52  ;;  %v3533_v52 = vld [vmem:[#allocation8 + $0x400] ss:$16 sps:$4 sm:$0xff]   ;;  %v3541_v54 = vld [vmem:[#allocation8 + $0x5e4] ss:$16 sps:$4 sm:$0xff]  }
 0x123   :  { %v331_v59 = vpop.f32.mrf.mxu1 }
 0x124   :  { %v332_v61 = vadd.f32 %v331_v59, %v143_v53  ;;  %2026 = vmatprep.mubr.bf16.mxu0 %v4164_v55  ;;  %v3536_v53 = vld [vmem:[#allocation8 + $0x640] ss:$16 sps:$4 sm:$0xff]  }
 0x125   :  { %v333_v62 = vpop.f32.mrf.mxu1  ;;  %2027 = vmatmul.mubr.bf16.vlgmr.msra.gmra.mxu0 %v4169_v58  ;;  %v3542_v59 = vld [vmem:[#allocation8 + $0x620] ss:$16 sps:$4 sm:$0xff]  }
 0x126   :  { %v334_v63 = vadd.f32 %v333_v62, %v147_v57  ;;  %2077 = vmatpush1.bf16.msra.mxu0 %v3494_v56  ;;  %v422_v2 = vmax.f32 %v332_v61, 0.0  ;;  %v3544_v56 = vld [vmem:[#allocation8 + $0x624] ss:$16 sps:$4 sm:$0xff]   ;;  %v3539_v57 = vld [vmem:[#allocation8 + $0x5e0] ss:$16 sps:$4 sm:$0xff]  }
 0x127   :  { %v335_v3 = vpop.f32.mrf.mxu1  ;;  %2078 = vmatprep.subr.bf16.mxu0 %v3502_v60  ;;  %v3547_v60 = vld [vmem:[#allocation8 + $0x5c4] ss:$16 sps:$4 sm:$0xff]   ;;  %v3545_v62 = vld [vmem:[#allocation8 + $0x5c0] ss:$16 sps:$4 sm:$0xff]  }
 0x128   :  { %v423_v5 = vmax.f32 %v334_v63, 0.0  ;;  %v4177_v11 = vpack.c.bf16 %v422_v2, %v422_v2  ;;  %v3550_v61 = vld [vmem:[#allocation8 + $0x604] ss:$16 sps:$4 sm:$0xff]   ;;  %v3548_v63 = vld [vmem:[#allocation8 + $0x600] ss:$16 sps:$4 sm:$0xff]  }
 0x129   :  { %v336_v6 = vpop.f32.mrf.mxu1  ;;  %v3551_v2 = vld [vmem:[#allocation8 + $0x5a0] ss:$16 sps:$4 sm:$0xff]  }
 0x12a   :  { %v4174_v7 = vpack.c.bf16 %v423_v5, %v423_v5  ;;  %2079 = vmatpush1.bf16.msra.mxu0 %v3500_v0  ;;  %v3553_v0 = vld [vmem:[#allocation8 + $0x5a4] ss:$16 sps:$4 sm:$0xff]   ;;  %v3554_v3 = vld [vmem:[#allocation8 + $0x7e0] ss:$16 sps:$4 sm:$0xff]  }
 0x12b   :  { %2080 = vmatprep.subr.bf16.mxu0 %v3505_v4  ;;  %v4179_v14 = vpop.f32.mrf.mxu1  ;;  %v3559_v4 = vld [vmem:[#allocation8 + $0x584] ss:$16 sps:$4 sm:$0xff]   ;;  %v3557_v6 = vld [vmem:[#allocation8 + $0x580] ss:$16 sps:$4 sm:$0xff]  }
 0x12c   :  { %2067 = vmatprep.mubr.bf16.mxu1 %v4174_v7  ;;  %v3562_v5 = vld [vmem:[#allocation8 + $0x7c4] ss:$16 sps:$4 sm:$0xff]  }
 0x12d   :  { %2068 = vmatmul.mubr.bf16.vlgmr.msra.gmra.mxu1 %v4177_v11  ;;  %v374_v15 = vpop.f32.mrf.mxu1 }
 0x12e   :  { %2081 = vmatpush1.bf16.msra.mxu0 %v3503_v8  ;;  %2118 = vmatpush1.bf16.msra.mxu1 %v3506_v9  ;;  %v375_v18 = vadd.f32 %v374_v15, %v155_v10  ;;  %v3560_v8 = vld [vmem:[#allocation8 + $0x7c0] ss:$16 sps:$4 sm:$0xff]   ;;  %v3565_v9 = vld [vmem:[#allocation8 + $0x564] ss:$16 sps:$4 sm:$0xff]   ;;  %v150_v15 = vsub.s32 4, %v4145_v38 }
 0x12f   :  { %2082 = vmatprep.subr.bf16.mxu0 %v3511_v12  ;;  %2119 = vmatprep.subr.bf16.mxu1 %v3514_v13  ;;  %v376_v22 = vpop.f32.mrf.mxu1  ;;  %v3568_v10 = vld [vmem:[#allocation8 + $0x7a4] ss:$16 sps:$4 sm:$0xff]   ;;  %v3563_v12 = vld [vmem:[#allocation8 + $0x560] ss:$16 sps:$4 sm:$0xff]  }
 0x130   :  { %v425_v23 = vmax.f32 %v375_v18, 0.0  ;;  %v3566_v13 = vld [vmem:[#allocation8 + $0x7a0] ss:$16 sps:$4 sm:$0xff]   ;;  %v3580_v22 = vld [vmem:[#allocation8 + $0x764] ss:$16 sps:$4 sm:$0xff]  }
 0x131   :  { %v377_v24 = vpop.f32.mrf.mxu1  ;;  %v3569_v18 = vld [vmem:[#allocation8 + $0x540] ss:$16 sps:$4 sm:$0xff]  }
 0x132   :  { %2083 = vmatpush1.bf16.msra.mxu0 %v3509_v16  ;;  %2120 = vmatpush1.bf16.msra.mxu1 %v3512_v17  ;;  %v4184_v27 = vpack.c.bf16 %v425_v23, %v425_v23  ;;  %v3571_v16 = vld [vmem:[#allocation8 + $0x544] ss:$16 sps:$4 sm:$0xff]   ;;  %v3575_v23 = vld [vmem:[#allocation8 + $0x520] ss:$16 sps:$4 sm:$0xff]  }
 0x133   :  { %2084 = vmatprep.subr.bf16.mxu0 %v3517_v20  ;;  %2121 = vmatprep.subr.bf16.mxu1 %v3520_v21  ;;  %v4187_v31 = vpop.f32.mrf.mxu1  ;;  %v3574_v17 = vld [vmem:[#allocation8 + $0x784] ss:$16 sps:$4 sm:$0xff]   ;;  %v151_v20 = vrot.slane %v4150_v40, %v150_v15  ;;  %v3578_v24 = vld [vmem:[#allocation8 + $0x760] ss:$16 sps:$4 sm:$0xff]   ;;  %v3640_v15 = vld [vmem:[#allocation8 + $0x22c] ss:$16 sps:$4 sm:$0xff]  }
 0x134   :  { %2108 = vmatprep.mubr.bf16.mxu0 %v4184_v27  ;;  %v3577_v21 = vld [vmem:[#allocation8 + $0x524] ss:$16 sps:$4 sm:$0xff]  }
 0x135   :  { %v415_v32 = vpop.f32.mrf.mxu1 }
 0x136   :  { %2085 = vmatpush1.bf16.msra.mxu0 %v3515_v25  ;;  %2122 = vmatpush1.bf16.msra.mxu1 %v3518_v26  ;;  %v416_v35 = vadd.f32 %v415_v32, %v163_v28  ;;  %v373_v25 = vadd.f32 %v4179_v14, %v151_v20  ;;  %v158_v26 = vsub.s32 6, %v4145_v38  ;;  %v3583_v28 = vld [vmem:[#allocation8 + $0x504] ss:$16 sps:$4 sm:$0xff]   ;;  %v3584_v32 = vld [vmem:[#allocation8 + $0x740] ss:$16 sps:$4 sm:$0xff]  }
 0x137   :  { %2086 = vmatprep.subr.bf16.mxu0 %v3523_v29  ;;  %2123 = vmatprep.subr.bf16.mxu1 %v3526_v30  ;;  %v417_v42 = vpop.f32.mrf.mxu1  ;;  %v3586_v29 = vld [vmem:[#allocation8 + $0x744] ss:$16 sps:$4 sm:$0xff]   ;;  %v3581_v30 = vld [vmem:[#allocation8 + $0x500] ss:$16 sps:$4 sm:$0xff]   ;;  %v3641_v20 = vld [vmem:[#allocation8 + $0x1c8] ss:$16 sps:$4 sm:$0xff]  }
 0x138   :  { %v427_v43 = vmax.f32 %v416_v35, 0.0  ;;  %v3589_v35 = vld [vmem:[#allocation8 + $0x724] ss:$16 sps:$4 sm:$0xff]   ;;  %v3587_v14 = vld [vmem:[#allocation8 + $0x720] ss:$16 sps:$4 sm:$0xff]  }
 0x139   :  { %v418_v44 = vpop.f32.mrf.mxu1 }
 0x13a   :  { %2087 = vmatpush1.bf16.msra.mxu0 %v3521_v33  ;;  %2124 = vmatpush1.bf16.msra.mxu1 %v3524_v34  ;;  %v4190_v48 = vpack.c.bf16 %v427_v43, %v427_v43  ;;  %v424_v33 = vmax.f32 %v373_v25, 0.0  ;;  %v159_v34 = vrot.slane %v4150_v40, %v158_v26  ;;  %v3595_v44 = vld [vmem:[#allocation8 + $0x704] ss:$16 sps:$4 sm:$0xff]   ;;  %v3593_v40 = vld [vmem:[#allocation8 + $0x700] ss:$16 sps:$4 sm:$0xff]  }
 0x13b   :  { %2088 = vmatprep.subr.bf16.mxu0 %v3529_v36  ;;  %2125 = vmatprep.subr.bf16.mxu1 %v3532_v37  ;;  %v3592_v36 = vld [vmem:[#allocation8 + $0xec] ss:$16 sps:$4 sm:$0xff]   ;;  %v3590_v37 = vld [vmem:[#allocation8 + $0xe8] ss:$16 sps:$4 sm:$0xff]  }
 0x13c   :  { %2149 = vmatprep.mubr.bf16.mxu1 %v4190_v48  ;;  %v4198_v42 = vpack.c.bf16 %v424_v33, %v424_v33  ;;  %v414_v43 = vadd.f32 %v4187_v31, %v159_v34  ;;  %v3599_v31 = vld [vmem:[#allocation8 + $0xa8] ss:$16 sps:$4 sm:$0xff]   ;;  %v3655_v26 = vld [vmem:[#allocation8 + $0x18c] ss:$16 sps:$4 sm:$0xff]  }
 0x13d   :  { %v3650_v25 = vld [vmem:[#allocation8 + $0x3e8] ss:$16 sps:$4 sm:$0xff]   ;;  %v3664_v33 = vld [vmem:[#allocation8 + $0x3ac] ss:$16 sps:$4 sm:$0xff]  }
 0x13e   :  { %2089 = vmatpush1.bf16.msra.mxu0 %v3527_v45  ;;  %2126 = vmatpush1.bf16.msra.mxu1 %v3530_v47  ;;  %v3598_v45 = vld [vmem:[#allocation8 + $0xcc] ss:$16 sps:$4 sm:$0xff]   ;;  %v3596_v47 = vld [vmem:[#allocation8 + $0xc8] ss:$16 sps:$4 sm:$0xff]  }
 0x13f   :  { %2090 = vmatprep.subr.bf16.mxu0 %v3535_v50  ;;  %2127 = vmatprep.subr.bf16.mxu1 %v3538_v51  ;;  %v426_v50 = vmax.f32 %v414_v43, 0.0  ;;  %v3601_v51 = vld [vmem:[#allocation8 + $0xac] ss:$16 sps:$4 sm:$0xff]   ;;  %v3659_v34 = vld [vmem:[#allocation8 + $0x168] ss:$16 sps:$4 sm:$0xff]  }
 0x140   :  { %v3668_v43 = vld [vmem:[#allocation8 + $0x388] ss:$16 sps:$4 sm:$0xff]  }
 0x142   :  { %2091 = vmatpush1.bf16.msra.mxu0 %v3533_v52  ;;  %2128 = vmatpush1.bf16.msra.mxu1 %v3536_v53  ;;  %v3604_v52 = vld [vmem:[#allocation8 + $0x2ec] ss:$16 sps:$4 sm:$0xff]   ;;  %v3602_v53 = vld [vmem:[#allocation8 + $0x2e8] ss:$16 sps:$4 sm:$0xff]  }
 0x143   :  { %2092 = vmatprep.subr.bf16.mxu0 %v3541_v54  ;;  %2129 = vmatprep.subr.bf16.mxu1 %v3544_v56  ;;  %v4203_v54 = vpack.c.bf16 %v426_v50, %v426_v50  ;;  %v3607_v56 = vld [vmem:[#allocation8 + $0x8c] ss:$16 sps:$4 sm:$0xff]  }
 0x144   :  { %v3679_v50 = vld [vmem:[#allocation8 + $0x10c] ss:$16 sps:$4 sm:$0xff]  }
 0x146   :  { %2093 = vmatpush2.bf16.msra.mxu0 %v3539_v57  ;;  %2130 = vmatpush1.bf16.msra.mxu1 %v3542_v59  ;;  %v3610_v57 = vld [vmem:[#allocation8 + $0x2cc] ss:$16 sps:$4 sm:$0xff]   ;;  %v3605_v59 = vld [vmem:[#allocation8 + $0x88] ss:$16 sps:$4 sm:$0xff]  }
 0x147   :  { %2094 = vmatprep.subr.bf16.mxu0 %v3547_v60  ;;  %2131 = vmatprep.subr.bf16.mxu1 %v3550_v61  ;;  %v3613_v60 = vld [vmem:[#allocation8 + $0x6c] ss:$16 sps:$4 sm:$0xff]  }
 0x148   :  { %v3616_v61 = vld [vmem:[#allocation8 + $0x2ac] ss:$16 sps:$4 sm:$0xff]  }
 0x14a   :  { %2095 = vmatpush2.bf16.msra.mxu0 %v3545_v62  ;;  %2132 = vmatpush1.bf16.msra.mxu1 %v3548_v63  ;;  %v3611_v62 = vld [vmem:[#allocation8 + $0x68] ss:$16 sps:$4 sm:$0xff]  }
 0x14b   :  { %2096 = vmatprep.subr.bf16.mxu0 %v3553_v0  ;;  %2133 = vmatprep.subr.bf16.mxu1 %v3556_v1  ;;  %v3614_v63 = vld [vmem:[#allocation8 + $0x2a8] ss:$16 sps:$4 sm:$0xff]   ;;  %v3619_v0 = vld [vmem:[#allocation8 + $0x4c] ss:$16 sps:$4 sm:$0xff]  }
 0x14c   :  { %v3622_v1 = vld [vmem:[#allocation8 + $0x28c] ss:$16 sps:$4 sm:$0xff]  }
 0x14e   :  { %2097 = vmatpush2.bf16.msra.mxu0 %v3551_v2  ;;  %2134 = vmatpush2.bf16.msra.mxu1 %v3554_v3  ;;  %v3617_v2 = vld [vmem:[#allocation8 + $0x48] ss:$16 sps:$4 sm:$0xff]  }
 0x14f   :  { %2098 = vmatprep.subr.bf16.mxu0 %v3559_v4  ;;  %2135 = vmatprep.subr.bf16.mxu1 %v3562_v5  ;;  %v3620_v3 = vld [vmem:[#allocation8 + $0x288] ss:$16 sps:$4 sm:$0xff]   ;;  %v3625_v4 = vld [vmem:[#allocation8 + $0x2c] ss:$16 sps:$4 sm:$0xff]  }
 0x150   :  { %v3623_v5 = vld [vmem:[#allocation8 + $0x28] ss:$16 sps:$4 sm:$0xff]  }
 0x152   :  { %2099 = vmatpush2.bf16.msra.mxu0 %v3557_v6  ;;  %2136 = vmatpush2.bf16.msra.mxu1 %v3560_v8  ;;  %v3626_v6 = vld [vmem:[#allocation8 + $0x268] ss:$16 sps:$4 sm:$0xff]   ;;  %v3631_v8 = vld [vmem:[#allocation8 + $0xc] ss:$16 sps:$4 sm:$0xff]  }
 0x153   :  { %2100 = vmatprep.subr.bf16.mxu0 %v3565_v9  ;;  %2137 = vmatprep.subr.bf16.mxu1 %v3568_v10  ;;  %v3634_v9 = vld [vmem:[#allocation8 + $0x24c] ss:$16 sps:$4 sm:$0xff]   ;;  %v3629_v10 = vld [vmem:[#allocation8 + $0x8] ss:$16 sps:$4 sm:$0xff]  }
 0x156   :  { %2101 = vmatpush2.bf16.msra.mxu0 %v3563_v12  ;;  %2138 = vmatpush2.bf16.msra.mxu1 %v3566_v13  ;;  %v3632_v12 = vld [vmem:[#allocation8 + $0x248] ss:$16 sps:$4 sm:$0xff]   ;;  %v3637_v13 = vld [vmem:[#allocation8 + $0x1ec] ss:$16 sps:$4 sm:$0xff]  }
 0x157   :  { %2102 = vmatprep.subr.bf16.mxu0 %v3571_v16  ;;  %2139 = vmatprep.subr.bf16.mxu1 %v3574_v17  ;;  %v3635_v16 = vld [vmem:[#allocation8 + $0x1e8] ss:$16 sps:$4 sm:$0xff]  }
 0x158   :  { %v3638_v17 = vld [vmem:[#allocation8 + $0x228] ss:$16 sps:$4 sm:$0xff]  }
 0x15a   :  { %2103 = vmatpush2.bf16.msra.mxu0 %v3569_v18  ;;  %2140 = vmatpush2.bf16.msra.mxu1 %v3572_v19  ;;  %v3643_v18 = vld [vmem:[#allocation8 + $0x1cc] ss:$16 sps:$4 sm:$0xff]  }
 0x15b   :  { %2104 = vmatprep.subr.bf16.mxu0 %v3577_v21  ;;  %2141 = vmatprep.subr.bf16.mxu1 %v3580_v22  ;;  %v3646_v19 = vld [vmem:[#allocation8 + $0x20c] ss:$16 sps:$4 sm:$0xff]   ;;  %v3644_v21 = vld [vmem:[#allocation8 + $0x208] ss:$16 sps:$4 sm:$0xff]  }
 0x15c   :  { %v3649_v22 = vld [vmem:[#allocation8 + $0x1ac] ss:$16 sps:$4 sm:$0xff]  }
 0x15e   :  { %2105 = vmatpush2.bf16.msra.mxu0 %v3575_v23  ;;  %2142 = vmatpush2.bf16.msra.mxu1 %v3578_v24  ;;  %v3652_v23 = vld [vmem:[#allocation8 + $0x3ec] ss:$16 sps:$4 sm:$0xff]   ;;  %v3647_v24 = vld [vmem:[#allocation8 + $0x1a8] ss:$16 sps:$4 sm:$0xff]  }
 0x15f   :  { %2106 = vmatprep.subr.bf16.mxu0 %v3583_v28  ;;  %2143 = vmatprep.subr.bf16.mxu1 %v3586_v29  ;;  %v3658_v28 = vld [vmem:[#allocation8 + $0x3cc] ss:$16 sps:$4 sm:$0xff]   ;;  %v3653_v29 = vld [vmem:[#allocation8 + $0x188] ss:$16 sps:$4 sm:$0xff]  }
 0x162   :  { %2107 = vmatpush2.bf16.msra.mxu0 %v3581_v30  ;;  %2144 = vmatpush2.bf16.msra.mxu1 %v3584_v32  ;;  %v3656_v30 = vld [vmem:[#allocation8 + $0x3c8] ss:$16 sps:$4 sm:$0xff]   ;;  %v3661_v32 = vld [vmem:[#allocation8 + $0x16c] ss:$16 sps:$4 sm:$0xff]  }
 0x163   :  { %2145 = vmatprep.subr.bf16.mxu1 %v3589_v35  ;;  %2158 = vmatprep.subr.bf16.mxu0 %v3592_v36  ;;  %v3662_v35 = vld [vmem:[#allocation8 + $0x3a8] ss:$16 sps:$4 sm:$0xff]   ;;  %v3667_v36 = vld [vmem:[#allocation8 + $0x14c] ss:$16 sps:$4 sm:$0xff]  }
 0x165   :  { %2109 = vmatmul.mubr.bf16.vlgmr.msra.gmra.mxu0 %v4198_v42 }
 0x166   :  { %2146 = vmatpush2.bf16.msra.mxu1 %v3587_v14  ;;  %2159 = vmatpush1.bf16.msra.mxu0 %v3590_v37  ;;  %v3670_v14 = vld [vmem:[#allocation8 + $0x38c] ss:$16 sps:$4 sm:$0xff]   ;;  %v3665_v37 = vld [vmem:[#allocation8 + $0x148] ss:$16 sps:$4 sm:$0xff]  }
 0x167   :  { %2190 = vmatprep.mubr.bf16.mxu0 %v4164_v55  ;;  %2147 = vmatprep.subr.bf16.mxu1 %v3595_v44  ;;  %v3608_v55 = vld [vmem:[#allocation8 + $0x2c8] ss:$16 sps:$4 sm:$0xff]   ;;  %v3673_v44 = vld [vmem:[#allocation8 + $0x12c] ss:$16 sps:$4 sm:$0xff]  }
 0x168   :  { %2160 = vmatprep.subr.bf16.mxu0 %v3598_v45  ;;  %v3676_v45 = vld [vmem:[#allocation8 + $0x36c] ss:$16 sps:$4 sm:$0xff]  }
 0x16a   :  { %2148 = vmatpush2.bf16.msra.mxu1 %v3593_v40  ;;  %2161 = vmatpush1.bf16.msra.mxu0 %v3596_v47  ;;  %v3671_v40 = vld [vmem:[#allocation8 + $0x128] ss:$16 sps:$4 sm:$0xff]  }
 0x16b   :  { %2162 = vmatprep.subr.bf16.mxu0 %v3601_v51  ;;  %2199 = vmatprep.subr.bf16.mxu1 %v3604_v52  ;;  %v3674_v47 = vld [vmem:[#allocation8 + $0x368] ss:$16 sps:$4 sm:$0xff]   ;;  %v3682_v51 = vld [vmem:[#allocation8 + $0x34c] ss:$16 sps:$4 sm:$0xff]  }
 0x16c   :  { %v3677_v52 = vld [vmem:[#allocation8 + $0x108] ss:$16 sps:$4 sm:$0xff]  }
 0x16d   :  { %2150 = vmatmul.mubr.bf16.vlgmr.msra.gmra.mxu1 %v4203_v54 }
 0x16e   :  { %2163 = vmatpush1.bf16.msra.mxu0 %v3599_v31  ;;  %2200 = vmatpush1.bf16.msra.mxu1 %v3602_v53  ;;  %v3680_v31 = vld [vmem:[#allocation8 + $0x348] ss:$16 sps:$4 sm:$0xff]   ;;  %v3685_v53 = vld [vmem:[#allocation8 + $0x32c] ss:$16 sps:$4 sm:$0xff]  }
 0x16f   :  { %2231 = vmatprep.mubr.bf16.mxu1 %v4174_v7  ;;  %2164 = vmatprep.subr.bf16.mxu0 %v3607_v56  ;;  %v3628_v7 = vld [vmem:[#allocation8 + $0x26c] ss:$16 sps:$4 sm:$0xff]  }
 0x170   :  { %2201 = vmatprep.subr.bf16.mxu1 %v3610_v57  ;;  %v3688_v56 = vld [vmem:[#allocation8 + $0x4ec] ss:$16 sps:$4 sm:$0xff]   ;;  %v3683_v57 = vld [vmem:[#allocation8 + $0x328] ss:$16 sps:$4 sm:$0xff]  }
 0x172   :  { %2165 = vmatpush1.bf16.msra.mxu0 %v3605_v59  ;;  %2202 = vmatpush1.bf16.msra.mxu1 %v3608_v55  ;;  %v3686_v59 = vld [vmem:[#allocation8 + $0x4e8] ss:$16 sps:$4 sm:$0xff]   ;;  %v3691_v55 = vld [vmem:[#allocation8 + $0x30c] ss:$16 sps:$4 sm:$0xff]  }
 0x173   :  { %2166 = vmatprep.subr.bf16.mxu0 %v3613_v60  ;;  %2203 = vmatprep.subr.bf16.mxu1 %v3616_v61  ;;  %v3694_v60 = vld [vmem:[#allocation8 + $0x4cc] ss:$16 sps:$4 sm:$0xff]   ;;  %v3689_v61 = vld [vmem:[#allocation8 + $0x308] ss:$16 sps:$4 sm:$0xff]  }
 0x176   :  { %2167 = vmatpush1.bf16.msra.mxu0 %v3611_v62  ;;  %2204 = vmatpush1.bf16.msra.mxu1 %v3614_v63  ;;  %v3692_v62 = vld [vmem:[#allocation8 + $0x4c8] ss:$16 sps:$4 sm:$0xff]   ;;  %v3697_v63 = vld [vmem:[#allocation8 + $0x4ac] ss:$16 sps:$4 sm:$0xff]  }
 0x177   :  { %2168 = vmatprep.subr.bf16.mxu0 %v3619_v0  ;;  %2205 = vmatprep.subr.bf16.mxu1 %v3622_v1  ;;  %v3700_v0 = vld [vmem:[#allocation8 + $0x6ec] ss:$16 sps:$4 sm:$0xff]   ;;  %v3695_v1 = vld [vmem:[#allocation8 + $0x4a8] ss:$16 sps:$4 sm:$0xff]  }
 0x17a   :  { %2169 = vmatpush1.bf16.msra.mxu0 %v3617_v2  ;;  %2206 = vmatpush1.bf16.msra.mxu1 %v3620_v3  ;;  %v3698_v2 = vld [vmem:[#allocation8 + $0x6e8] ss:$16 sps:$4 sm:$0xff]   ;;  %v3703_v3 = vld [vmem:[#allocation8 + $0x48c] ss:$16 sps:$4 sm:$0xff]  }
 0x17b   :  { %2170 = vmatprep.subr.bf16.mxu0 %v3625_v4  ;;  %2207 = vmatprep.subr.bf16.mxu1 %v3628_v7  ;;  %v3706_v4 = vld [vmem:[#allocation8 + $0x6cc] ss:$16 sps:$4 sm:$0xff]   ;;  %v3704_v7 = vld [vmem:[#allocation8 + $0x6c8] ss:$16 sps:$4 sm:$0xff]  }
 0x17e   :  { %2171 = vmatpush1.bf16.msra.mxu0 %v3623_v5  ;;  %2208 = vmatpush1.bf16.msra.mxu1 %v3626_v6  ;;  %v3712_v5 = vld [vmem:[#allocation8 + $0x6ac] ss:$16 sps:$4 sm:$0xff]   ;;  %v3707_v6 = vld [vmem:[#allocation8 + $0x468] ss:$16 sps:$4 sm:$0xff]  }
 0x17f   :  { %2172 = vmatprep.subr.bf16.mxu0 %v3631_v8  ;;  %2209 = vmatprep.subr.bf16.mxu1 %v3634_v9  ;;  %v3710_v8 = vld [vmem:[#allocation8 + $0x6a8] ss:$16 sps:$4 sm:$0xff]   ;;  %v3715_v9 = vld [vmem:[#allocation8 + $0x44c] ss:$16 sps:$4 sm:$0xff]  }
 0x182   :  { %2173 = vmatpush1.bf16.msra.mxu0 %v3629_v10  ;;  %2210 = vmatpush1.bf16.msra.mxu1 %v3632_v12  ;;  %v3718_v10 = vld [vmem:[#allocation8 + $0x68c] ss:$16 sps:$4 sm:$0xff]   ;;  %v3716_v12 = vld [vmem:[#allocation8 + $0x688] ss:$16 sps:$4 sm:$0xff]  }
 0x183   :  { %2174 = vmatprep.subr.bf16.mxu0 %v3637_v13  ;;  %2211 = vmatprep.subr.bf16.mxu1 %v3640_v15  ;;  %v3721_v13 = vld [vmem:[#allocation8 + $0x42c] ss:$16 sps:$4 sm:$0xff]   ;;  %v3719_v15 = vld [vmem:[#allocation8 + $0x428] ss:$16 sps:$4 sm:$0xff]  }
 0x186   :  { %2175 = vmatpush2.bf16.msra.mxu0 %v3635_v16  ;;  %2212 = vmatpush1.bf16.msra.mxu1 %v3638_v17  ;;  %v3722_v16 = vld [vmem:[#allocation8 + $0x668] ss:$16 sps:$4 sm:$0xff]   ;;  %v3727_v17 = vld [vmem:[#allocation8 + $0x40c] ss:$16 sps:$4 sm:$0xff]  }
 0x187   :  { %2176 = vmatprep.subr.bf16.mxu0 %v3643_v18  ;;  %2213 = vmatprep.subr.bf16.mxu1 %v3646_v19  ;;  %v3730_v18 = vld [vmem:[#allocation8 + $0x64c] ss:$16 sps:$4 sm:$0xff]   ;;  %v3725_v19 = vld [vmem:[#allocation8 + $0x408] ss:$16 sps:$4 sm:$0xff]  }
 0x18a   :  { %2177 = vmatpush2.bf16.msra.mxu0 %v3641_v20  ;;  %2214 = vmatpush1.bf16.msra.mxu1 %v3644_v21  ;;  %v3728_v20 = vld [vmem:[#allocation8 + $0x648] ss:$16 sps:$4 sm:$0xff]   ;;  %v3733_v21 = vld [vmem:[#allocation8 + $0x5ec] ss:$16 sps:$4 sm:$0xff]  }
 0x18b   :  { %2178 = vmatprep.subr.bf16.mxu0 %v3649_v22  ;;  %2215 = vmatprep.subr.bf16.mxu1 %v3652_v23  ;;  %v3736_v22 = vld [vmem:[#allocation8 + $0x62c] ss:$16 sps:$4 sm:$0xff]   ;;  %v3731_v23 = vld [vmem:[#allocation8 + $0x5e8] ss:$16 sps:$4 sm:$0xff]  }
 0x18e   :  { %2179 = vmatpush2.bf16.msra.mxu0 %v3647_v24  ;;  %2216 = vmatpush2.bf16.msra.mxu1 %v3650_v25  ;;  %v3734_v24 = vld [vmem:[#allocation8 + $0x628] ss:$16 sps:$4 sm:$0xff]   ;;  %v3739_v25 = vld [vmem:[#allocation8 + $0x5cc] ss:$16 sps:$4 sm:$0xff]  }
 0x18f   :  { %2180 = vmatprep.subr.bf16.mxu0 %v3655_v26  ;;  %2217 = vmatprep.subr.bf16.mxu1 %v3658_v28  ;;  %v3742_v26 = vld [vmem:[#allocation8 + $0x60c] ss:$16 sps:$4 sm:$0xff]   ;;  %v3737_v28 = vld [vmem:[#allocation8 + $0x5c8] ss:$16 sps:$4 sm:$0xff]  }
 0x192   :  { %2181 = vmatpush2.bf16.msra.mxu0 %v3653_v29  ;;  %2218 = vmatpush2.bf16.msra.mxu1 %v3656_v30  ;;  %v3740_v29 = vld [vmem:[#allocation8 + $0x608] ss:$16 sps:$4 sm:$0xff]   ;;  %v3745_v30 = vld [vmem:[#allocation8 + $0x5ac] ss:$16 sps:$4 sm:$0xff]  }
 0x193   :  { %2182 = vmatprep.subr.bf16.mxu0 %v3661_v32  ;;  %2219 = vmatprep.subr.bf16.mxu1 %v3664_v33  ;;  %v3748_v32 = vld [vmem:[#allocation8 + $0x7ec] ss:$16 sps:$4 sm:$0xff]   ;;  %v3743_v33 = vld [vmem:[#allocation8 + $0x5a8] ss:$16 sps:$4 sm:$0xff]  }
 0x196   :  { %2183 = vmatpush2.bf16.msra.mxu0 %v3659_v34  ;;  %2220 = vmatpush2.bf16.msra.mxu1 %v3662_v35  ;;  %v3746_v34 = vld [vmem:[#allocation8 + $0x7e8] ss:$16 sps:$4 sm:$0xff]   ;;  %v3751_v35 = vld [vmem:[#allocation8 + $0x58c] ss:$16 sps:$4 sm:$0xff]  }
 0x197   :  { %2184 = vmatprep.subr.bf16.mxu0 %v3667_v36  ;;  %2221 = vmatprep.subr.bf16.mxu1 %v3670_v14  ;;  %v3754_v36 = vld [vmem:[#allocation8 + $0x7cc] ss:$16 sps:$4 sm:$0xff]   ;;  %v3749_v14 = vld [vmem:[#allocation8 + $0x588] ss:$16 sps:$4 sm:$0xff]  }
 0x19a   :  { %2185 = vmatpush2.bf16.msra.mxu0 %v3665_v37  ;;  %2222 = vmatpush2.bf16.msra.mxu1 %v3668_v43  ;;  %v3752_v37 = vld [vmem:[#allocation8 + $0x7c8] ss:$16 sps:$4 sm:$0xff]   ;;  %v3757_v43 = vld [vmem:[#allocation8 + $0x56c] ss:$16 sps:$4 sm:$0xff]  }
 0x19b   :  { %2186 = vmatprep.subr.bf16.mxu0 %v3673_v44  ;;  %2223 = vmatprep.subr.bf16.mxu1 %v3676_v45  ;;  %v3760_v44 = vld [vmem:[#allocation8 + $0x7ac] ss:$16 sps:$4 sm:$0xff]   ;;  %v3755_v45 = vld [vmem:[#allocation8 + $0x568] ss:$16 sps:$4 sm:$0xff]  }
 0x19e   :  { %2187 = vmatpush2.bf16.msra.mxu0 %v3671_v40  ;;  %2224 = vmatpush2.bf16.msra.mxu1 %v3674_v47  ;;  %v3758_v40 = vld [vmem:[#allocation8 + $0x7a8] ss:$16 sps:$4 sm:$0xff]   ;;  %v3763_v47 = vld [vmem:[#allocation8 + $0x54c] ss:$16 sps:$4 sm:$0xff]  }
 0x19f   :  { %2188 = vmatprep.subr.bf16.mxu0 %v3679_v50  ;;  %2225 = vmatprep.subr.bf16.mxu1 %v3682_v51  ;;  %v3766_v50 = vld [vmem:[#allocation8 + $0x78c] ss:$16 sps:$4 sm:$0xff]   ;;  %v3761_v51 = vld [vmem:[#allocation8 + $0x548] ss:$16 sps:$4 sm:$0xff]  }
 0x1a2   :  { %2189 = vmatpush2.bf16.msra.mxu0 %v3677_v52  ;;  %2226 = vmatpush2.bf16.msra.mxu1 %v3680_v31  ;;  %v3764_v52 = vld [vmem:[#allocation8 + $0x788] ss:$16 sps:$4 sm:$0xff]   ;;  %v3769_v31 = vld [vmem:[#allocation8 + $0x52c] ss:$16 sps:$4 sm:$0xff]  }
 0x1a3   :  { %2227 = vmatprep.subr.bf16.mxu1 %v3685_v53  ;;  %2240 = vmatprep.subr.bf16.mxu0 %v3688_v56  ;;  %v3772_v53 = vld [vmem:[#allocation8 + $0x76c] ss:$16 sps:$4 sm:$0xff]   ;;  %v3767_v56 = vld [vmem:[#allocation8 + $0x528] ss:$16 sps:$4 sm:$0xff]  }
 0x1a5   :  { %2191 = vmatmul.mubr.bf16.vlgmr.msra.gmra.mxu0 %v4169_v58  ;;  %v3701_v58 = vld [vmem:[#allocation8 + $0x488] ss:$16 sps:$4 sm:$0xff]  }
 0x1a6   :  { %2228 = vmatpush2.bf16.msra.mxu1 %v3683_v57  ;;  %2241 = vmatpush1.bf16.msra.mxu0 %v3686_v59  ;;  %v3770_v57 = vld [vmem:[#allocation8 + $0x768] ss:$16 sps:$4 sm:$0xff]   ;;  %v3775_v59 = vld [vmem:[#allocation8 + $0x50c] ss:$16 sps:$4 sm:$0xff]  }
 0x1a7   :  { %2272 = vmatprep.mubr.bf16.mxu0 %v4184_v27  ;;  %2229 = vmatprep.subr.bf16.mxu1 %v3691_v55  ;;  %v3709_v27 = vld [vmem:[#allocation8 + $0x46c] ss:$16 sps:$4 sm:$0xff]  }
 0x1a8   :  { %2242 = vmatprep.subr.bf16.mxu0 %v3694_v60  ;;  %v3778_v55 = vld [vmem:[#allocation8 + $0x74c] ss:$16 sps:$4 sm:$0xff]   ;;  %v3773_v60 = vld [vmem:[#allocation8 + $0x508] ss:$16 sps:$4 sm:$0xff]  }
 0x1aa   :  { %2230 = vmatpush2.bf16.msra.mxu1 %v3689_v61  ;;  %2243 = vmatpush1.bf16.msra.mxu0 %v3692_v62  ;;  %v3776_v61 = vld [vmem:[#allocation8 + $0x748] ss:$16 sps:$4 sm:$0xff]   ;;  %v3781_v62 = vld [vmem:[#allocation8 + $0x72c] ss:$16 sps:$4 sm:$0xff]  }
 0x1ab   :  { %2244 = vmatprep.subr.bf16.mxu0 %v3697_v63  ;;  %2281 = vmatprep.subr.bf16.mxu1 %v3700_v0  ;;  %v3787_v63 = vld [vmem:[#allocation10 + $0x74] ss:$8 sps:$4 sm:$0xff]   ;;  %v3779_v0 = vld [vmem:[#allocation8 + $0x728] ss:$16 sps:$4 sm:$0xff]  }
 0x1ad   :  { %2232 = vmatmul.mubr.bf16.vlgmr.msra.gmra.mxu1 %v4177_v11  ;;  %v3713_v11 = vld [vmem:[#allocation8 + $0x448] ss:$16 sps:$4 sm:$0xff]  }
 0x1ae   :  { %2245 = vmatpush1.bf16.msra.mxu0 %v3695_v1  ;;  %2282 = vmatpush1.bf16.msra.mxu1 %v3698_v2  ;;  %v3785_v1 = vld [vmem:[#allocation10 + $0x70] ss:$8 sps:$4 sm:$0xff]   ;;  %v3784_v2 = vld [vmem:[#allocation8 + $0x70c] ss:$16 sps:$4 sm:$0xff]  }
 0x1af   :  { %2313 = vmatprep.mubr.bf16.mxu1 %v4190_v48  ;;  %2246 = vmatprep.subr.bf16.mxu0 %v3703_v3  ;;  %v3724_v48 = vld [vmem:[#allocation8 + $0x66c] ss:$16 sps:$4 sm:$0xff]  }
 0x1b0   :  { %2283 = vmatprep.subr.bf16.mxu1 %v3706_v4  ;;  %v3790_v3 = vld [vmem:[#allocation10 + $0x64] ss:$8 sps:$4 sm:$0xff]  }
 0x1b2   :  { %2247 = vmatpush1.bf16.msra.mxu0 %v3701_v58  ;;  %2284 = vmatpush1.bf16.msra.mxu1 %v3704_v7  ;;  %v3782_v58 = vld [vmem:[#allocation8 + $0x708] ss:$16 sps:$4 sm:$0xff]  }
 0x1b3   :  { %2248 = vmatprep.subr.bf16.mxu0 %v3709_v27  ;;  %2285 = vmatprep.subr.bf16.mxu1 %v3712_v5  ;;  %v3788_v7 = vld [vmem:[#allocation10 + $0x60] ss:$8 sps:$4 sm:$0xff]   ;;  %v3793_v5 = vld [vmem:[#allocation10 + $0x54] ss:$8 sps:$4 sm:$0xff]  }
 0x1b6   :  { %2249 = vmatpush1.bf16.msra.mxu0 %v3707_v6  ;;  %2286 = vmatpush1.bf16.msra.mxu1 %v3710_v8  ;;  %v3791_v8 = vld [vmem:[#allocation10 + $0x50] ss:$8 sps:$4 sm:$0xff]  }
 0x1b7   :  { %2250 = vmatprep.subr.bf16.mxu0 %v3715_v9  ;;  %2287 = vmatprep.subr.bf16.mxu1 %v3718_v10  ;;  %v3796_v10 = vld [vmem:[#allocation10 + $0x44] ss:$8 sps:$4 sm:$0xff]  }
 0x1ba   :  { %2251 = vmatpush1.bf16.msra.mxu0 %v3713_v11  ;;  %2288 = vmatpush1.bf16.msra.mxu1 %v3716_v12  ;;  %v3794_v11 = vld [vmem:[#allocation10 + $0x40] ss:$8 sps:$4 sm:$0xff]  }
 0x1bb   :  { %2252 = vmatprep.subr.bf16.mxu0 %v3721_v13  ;;  %2289 = vmatprep.subr.bf16.mxu1 %v3724_v48  ;;  %v3799_v13 = vld [vmem:[#allocation10 + $0x34] ss:$8 sps:$4 sm:$0xff]  }
 0x1be   :  { %2253 = vmatpush1.bf16.msra.mxu0 %v3719_v15  ;;  %2290 = vmatpush1.bf16.msra.mxu1 %v3722_v16  ;;  %v3797_v15 = vld [vmem:[#allocation10 + $0x30] ss:$8 sps:$4 sm:$0xff]  }
 0x1bf   :  { %2254 = vmatprep.subr.bf16.mxu0 %v3727_v17  ;;  %2291 = vmatprep.subr.bf16.mxu1 %v3730_v18  ;;  %v3802_v17 = vld [vmem:[#allocation10 + $0x24] ss:$8 sps:$4 sm:$0xff]   ;;  %v3833_v18 = vld [vmem:[#allocation10 + $0x170] ss:$8 sps:$4 sm:$0xff]  }
 0x1c2   :  { %2255 = vmatpush1.bf16.msra.mxu0 %v3725_v19  ;;  %2292 = vmatpush1.bf16.msra.mxu1 %v3728_v20  ;;  %v3835_v19 = vld [vmem:[#allocation10 + $0x174] ss:$8 sps:$4 sm:$0xff]   ;;  %v3838_v20 = vld [vmem:[#allocation10 + $0x164] ss:$8 sps:$4 sm:$0xff]  }
 0x1c3   :  { %2256 = vmatprep.subr.bf16.mxu0 %v3733_v21  ;;  %2293 = vmatprep.subr.bf16.mxu1 %v3736_v22  ;;  %v3836_v21 = vld [vmem:[#allocation10 + $0x160] ss:$8 sps:$4 sm:$0xff]   ;;  %v3805_v22 = vld [vmem:[#allocation10 + $0x14] ss:$8 sps:$4 sm:$0xff]  }
 0x1c6   :  { %2257 = vmatpush2.bf16.msra.mxu0 %v3731_v23  ;;  %2294 = vmatpush1.bf16.msra.mxu1 %v3734_v24  ;;  %v3841_v23 = vld [vmem:[#allocation10 + $0x154] ss:$8 sps:$4 sm:$0xff]   ;;  %v3803_v24 = vld [vmem:[#allocation10 + $0x10] ss:$8 sps:$4 sm:$0xff]  }
 0x1c7   :  { %2258 = vmatprep.subr.bf16.mxu0 %v3739_v25  ;;  %2295 = vmatprep.subr.bf16.mxu1 %v3742_v26  ;;  %v3839_v25 = vld [vmem:[#allocation10 + $0x150] ss:$8 sps:$4 sm:$0xff]   ;;  %v3808_v26 = vld [vmem:[#allocation10 + $0x4] ss:$8 sps:$4 sm:$0xff]  }
 0x1ca   :  { %2259 = vmatpush2.bf16.msra.mxu0 %v3737_v28  ;;  %2296 = vmatpush1.bf16.msra.mxu1 %v3740_v29  ;;  %v3844_v28 = vld [vmem:[#allocation10 + $0x144] ss:$8 sps:$4 sm:$0xff]   ;;  %v3806_v29 = vld [vmem:[#allocation10] ss:$8 sps:$4 sm:$0xff]  }
 0x1cb   :  { %2260 = vmatprep.subr.bf16.mxu0 %v3745_v30  ;;  %2297 = vmatprep.subr.bf16.mxu1 %v3748_v32  ;;  %v3842_v30 = vld [vmem:[#allocation10 + $0x140] ss:$8 sps:$4 sm:$0xff]   ;;  %v3811_v32 = vld [vmem:[#allocation10 + $0xf4] ss:$8 sps:$4 sm:$0xff]  }
 0x1ce   :  { %2261 = vmatpush2.bf16.msra.mxu0 %v3743_v33  ;;  %2298 = vmatpush2.bf16.msra.mxu1 %v3746_v34  ;;  %v3847_v33 = vld [vmem:[#allocation10 + $0x134] ss:$8 sps:$4 sm:$0xff]   ;;  %v3809_v34 = vld [vmem:[#allocation10 + $0xf0] ss:$8 sps:$4 sm:$0xff]  }
 0x1cf   :  { %2262 = vmatprep.subr.bf16.mxu0 %v3751_v35  ;;  %2299 = vmatprep.subr.bf16.mxu1 %v3754_v36  ;;  %v3845_v35 = vld [vmem:[#allocation10 + $0x130] ss:$8 sps:$4 sm:$0xff]   ;;  %v3814_v36 = vld [vmem:[#allocation10 + $0xe4] ss:$8 sps:$4 sm:$0xff]  }
 0x1d2   :  { %2263 = vmatpush2.bf16.msra.mxu0 %v3749_v14  ;;  %2300 = vmatpush2.bf16.msra.mxu1 %v3752_v37  ;;  %v3850_v14 = vld [vmem:[#allocation10 + $0x124] ss:$8 sps:$4 sm:$0xff]   ;;  %v3812_v37 = vld [vmem:[#allocation10 + $0xe0] ss:$8 sps:$4 sm:$0xff]  }
 0x1d3   :  { %2264 = vmatprep.subr.bf16.mxu0 %v3757_v43  ;;  %2301 = vmatprep.subr.bf16.mxu1 %v3760_v44  ;;  %v3848_v43 = vld [vmem:[#allocation10 + $0x120] ss:$8 sps:$4 sm:$0xff]   ;;  %v3817_v44 = vld [vmem:[#allocation10 + $0xd4] ss:$8 sps:$4 sm:$0xff]  }
 0x1d6   :  { %2265 = vmatpush2.bf16.msra.mxu0 %v3755_v45  ;;  %2302 = vmatpush2.bf16.msra.mxu1 %v3758_v40  ;;  %v3853_v45 = vld [vmem:[#allocation10 + $0x114] ss:$8 sps:$4 sm:$0xff]   ;;  %v3815_v40 = vld [vmem:[#allocation10 + $0xd0] ss:$8 sps:$4 sm:$0xff]  }
 0x1d7   :  { %2266 = vmatprep.subr.bf16.mxu0 %v3763_v47  ;;  %2303 = vmatprep.subr.bf16.mxu1 %v3766_v50  ;;  %v3851_v47 = vld [vmem:[#allocation10 + $0x110] ss:$8 sps:$4 sm:$0xff]   ;;  %v3820_v50 = vld [vmem:[#allocation10 + $0xc4] ss:$8 sps:$4 sm:$0xff]  }
 0x1da   :  { %2267 = vmatpush2.bf16.msra.mxu0 %v3761_v51  ;;  %2304 = vmatpush2.bf16.msra.mxu1 %v3764_v52  ;;  %v3856_v51 = vld [vmem:[#allocation10 + $0x104] ss:$8 sps:$4 sm:$0xff]   ;;  %v3818_v52 = vld [vmem:[#allocation10 + $0xc0] ss:$8 sps:$4 sm:$0xff]  }
 0x1db   :  { %2268 = vmatprep.subr.bf16.mxu0 %v3769_v31  ;;  %2305 = vmatprep.subr.bf16.mxu1 %v3772_v53  ;;  %v3854_v31 = vld [vmem:[#allocation10 + $0x100] ss:$8 sps:$4 sm:$0xff]   ;;  %v3823_v53 = vld [vmem:[#allocation10 + $0xb4] ss:$8 sps:$4 sm:$0xff]  }
 0x1de   :  { %2269 = vmatpush2.bf16.msra.mxu0 %v3767_v56  ;;  %2306 = vmatpush2.bf16.msra.mxu1 %v3770_v57  ;;  %v3859_v56 = vld [vmem:[#allocation10 + $0x1f4] ss:$8 sps:$4 sm:$0xff]   ;;  %v3821_v57 = vld [vmem:[#allocation10 + $0xb0] ss:$8 sps:$4 sm:$0xff]  }
 0x1df   :  { %2270 = vmatprep.subr.bf16.mxu0 %v3775_v59  ;;  %2307 = vmatprep.subr.bf16.mxu1 %v3778_v55  ;;  %v3857_v59 = vld [vmem:[#allocation10 + $0x1f0] ss:$8 sps:$4 sm:$0xff]   ;;  %v3826_v55 = vld [vmem:[#allocation10 + $0xa4] ss:$8 sps:$4 sm:$0xff]  }
 0x1e2   :  { %2271 = vmatpush2.bf16.msra.mxu0 %v3773_v60  ;;  %2308 = vmatpush2.bf16.msra.mxu1 %v3776_v61  ;;  %v3862_v60 = vld [vmem:[#allocation10 + $0x1e4] ss:$8 sps:$4 sm:$0xff]   ;;  %v3824_v61 = vld [vmem:[#allocation10 + $0xa0] ss:$8 sps:$4 sm:$0xff]  }
 0x1e3   :  { %2309 = vmatprep.subr.bf16.mxu1 %v3781_v62  ;;  %2726 = vmatprep.subr.bf16.mxu0 %v3787_v63  ;;  %v3860_v62 = vld [vmem:[#allocation10 + $0x1e0] ss:$8 sps:$4 sm:$0xff]   ;;  %v3829_v63 = vld [vmem:[#allocation10 + $0x94] ss:$8 sps:$4 sm:$0xff]  }
 0x1e5   :  { %2273 = vmatmul.mubr.bf16.vlgmr.msra.gmra.mxu0 %v4198_v42  ;;  %v4212_v4 = vpop.f32.mrf.mxu0 }
 0x1e6   :  { %2310 = vmatpush2.bf16.msra.mxu1 %v3779_v0  ;;  %2727 = vmatpush1.bf16.msra.mxu0 %v3785_v1  ;;  %v3865_v0 = vld [vmem:[#allocation10 + $0x1d4] ss:$8 sps:$4 sm:$0xff]   ;;  %v3827_v1 = vld [vmem:[#allocation10 + $0x90] ss:$8 sps:$4 sm:$0xff]  }
 0x1e7   :  { %v4214_v27 = vpop.f32.mrf.mxu0  ;;  %2311 = vmatprep.subr.bf16.mxu1 %v3784_v2  ;;  %2728 = vmatprep.subr.bf16.mxu0 %v3790_v3  ;;  %v3863_v2 = vld [vmem:[#allocation10 + $0x1d0] ss:$8 sps:$4 sm:$0xff]   ;;  %v3832_v3 = vld [vmem:[#allocation10 + $0x84] ss:$8 sps:$4 sm:$0xff]  }
 0x1e9   :  { %v2032_v6 = vpop.f32.mrf.mxu0 }
 0x1ea   :  { %2312 = vmatpush2.bf16.msra.mxu1 %v3782_v58  ;;  %2729 = vmatpush1.bf16.msra.mxu0 %v3788_v7  ;;  %v3868_v58 = vld [vmem:[#allocation10 + $0x1c4] ss:$8 sps:$4 sm:$0xff]   ;;  %v3830_v7 = vld [vmem:[#allocation10 + $0x80] ss:$8 sps:$4 sm:$0xff]   ;;  %v4224_v6 = vld [vmem:[%s4255_s4] sm:$0xf] }
 0x1eb   :  { %v2033_v9 = vpop.f32.mrf.mxu0  ;;  %2730 = vmatprep.subr.bf16.mxu0 %v3793_v5  ;;  %2767 = vmatprep.subr.bf16.mxu1 %v3835_v19  ;;  %v3866_v5 = vld [vmem:[#allocation10 + $0x1c0] ss:$8 sps:$4 sm:$0xff]   ;;  %v3874_v19 = vld [vmem:[#allocation10 + $0x1a4] ss:$8 sps:$4 sm:$0xff]  }
 0x1ed   :  { %2314 = vmatmul.mubr.bf16.vlgmr.msra.gmra.mxu1 %v4203_v54  ;;  %v4217_v42 = vpop.f32.mrf.mxu1  ;;  %v3800_v54 = vld [vmem:[#allocation10 + $0x20] ss:$8 sps:$4 sm:$0xff]  }
 0x1ee   :  { %2731 = vmatpush1.bf16.msra.mxu0 %v3791_v8  ;;  %2768 = vmatpush1.bf16.msra.mxu1 %v3833_v18  ;;  %v697_v8 = vrot.slane %v4224_v6, %v4148_v39 }
 0x1ef   :  { %v4219_v12 = vpop.f32.mrf.mxu1  ;;  %2732 = vmatprep.subr.bf16.mxu0 %v3796_v10  ;;  %2769 = vmatprep.subr.bf16.mxu1 %v3838_v20  ;;  %v701_v10 = vrot.slane %v4224_v6, %v4153_v41 }
 0x1f1   :  { %v2073_v48 = vpop.f32.mrf.mxu1 }
 0x1f2   :  { %2733 = vmatpush1.bf16.msra.mxu0 %v3794_v11  ;;  %2770 = vmatpush1.bf16.msra.mxu1 %v3836_v21  ;;  %v3871_v11 = vld [vmem:[#allocation10 + $0x1b4] ss:$8 sps:$4 sm:$0xff]   ;;  %v3869_v48 = vld [vmem:[#allocation10 + $0x1b0] ss:$8 sps:$4 sm:$0xff]  }
 0x1f3   :  { %v2074_v16 = vpop.f32.mrf.mxu1  ;;  %2734 = vmatprep.subr.bf16.mxu0 %v3799_v13  ;;  %2771 = vmatprep.subr.bf16.mxu1 %v3841_v23 }
 0x1f6   :  { %2735 = vmatpush1.bf16.msra.mxu0 %v3797_v15  ;;  %2772 = vmatpush1.bf16.msra.mxu1 %v3839_v25  ;;  %v2029_v15 = vadd.f32 %v4212_v4, %v697_v8 }
 0x1f7   :  { %2736 = vmatprep.subr.bf16.mxu0 %v3802_v17  ;;  %2773 = vmatprep.subr.bf16.mxu1 %v3844_v28  ;;  %v2031_v17 = vadd.f32 %v4214_v27, %v701_v10  ;;  %v3875_v28 = vld [vmem:[#allocation10 + $0x190] ss:$8 sps:$4 sm:$0xff]  }
 0x1f8   :  { %v2070_v18 = vadd.f32 %v4217_v42, %v2029_v15 }
 0x1f9   :  { %v2072_v21 = vadd.f32 %v4219_v12, %v2031_v17 }
 0x1fa   :  { %2737 = vmatpush1.bf16.msra.mxu0 %v3800_v54  ;;  %2774 = vmatpush1.bf16.msra.mxu1 %v3842_v30  ;;  %v3872_v54 = vld [vmem:[#allocation10 + $0x1a0] ss:$8 sps:$4 sm:$0xff]  }
 0x1fb   :  { %2738 = vmatprep.subr.bf16.mxu0 %v3805_v22  ;;  %2775 = vmatprep.subr.bf16.mxu1 %v3847_v33 }
 0x1fe   :  { %2739 = vmatpush1.bf16.msra.mxu0 %v3803_v24  ;;  %2776 = vmatpush1.bf16.msra.mxu1 %v3845_v35 }
 0x1ff   :  { %2740 = vmatprep.subr.bf16.mxu0 %v3808_v26  ;;  %2777 = vmatprep.subr.bf16.mxu1 %v3850_v14  ;;  %v3877_v26 = vld [vmem:[#allocation10 + $0x194] ss:$8 sps:$4 sm:$0xff]  }
 0x202   :  { %2741 = vmatpush1.bf16.msra.mxu0 %v3806_v29  ;;  %2778 = vmatpush1.bf16.msra.mxu1 %v3848_v43 }
 0x203   :  { %2742 = vmatprep.subr.bf16.mxu0 %v3811_v32  ;;  %2779 = vmatprep.subr.bf16.mxu1 %v3853_v45  ;;  %v3880_v32 = vld [vmem:[#allocation10 + $0x184] ss:$8 sps:$4 sm:$0xff]  }
 0x206   :  { %2743 = vmatpush2.bf16.msra.mxu0 %v3809_v34  ;;  %2780 = vmatpush1.bf16.msra.mxu1 %v3851_v47  ;;  %v3878_v34 = vld [vmem:[#allocation10 + $0x180] ss:$8 sps:$4 sm:$0xff]  }
 0x207   :  { %2744 = vmatprep.subr.bf16.mxu0 %v3814_v36  ;;  %2781 = vmatprep.subr.bf16.mxu1 %v3856_v51  ;;  %v3882_v51 = vld [vmem:[#allocation11 + $0x38] sm:$0xff]  }
 0x20a   :  { %2745 = vmatpush2.bf16.msra.mxu0 %v3812_v37  ;;  %2782 = vmatpush1.bf16.msra.mxu1 %v3854_v31  ;;  %v3884_v31 = vld [vmem:[#allocation11 + $0x30] sm:$0xff]  }
 0x20b   :  { %2746 = vmatprep.subr.bf16.mxu0 %v3817_v44  ;;  %2783 = vmatprep.subr.bf16.mxu1 %v3859_v56  ;;  %v3886_v56 = vld [vmem:[#allocation11 + $0x28] sm:$0xff]  }
 0x20e   :  { %2747 = vmatpush2.bf16.msra.mxu0 %v3815_v40  ;;  %2784 = vmatpush2.bf16.msra.mxu1 %v3857_v59  ;;  %v3888_v59 = vld [vmem:[#allocation11 + $0x20] sm:$0xff]  }
 0x20f   :  { %2748 = vmatprep.subr.bf16.mxu0 %v3820_v50  ;;  %2785 = vmatprep.subr.bf16.mxu1 %v3862_v60  ;;  %v3881_v50 = vld [vmem:[#allocation11 + $0x78] sm:$0xff]  }
 0x210   :  { %v3890_v60 = vld [vmem:[#allocation11 + $0x18] sm:$0xff]  }
 0x212   :  { %2749 = vmatpush2.bf16.msra.mxu0 %v3818_v52  ;;  %2786 = vmatpush2.bf16.msra.mxu1 %v3860_v62  ;;  %v3883_v52 = vld [vmem:[#allocation11 + $0x70] sm:$0xff]  }
 0x213   :  { %2750 = vmatprep.subr.bf16.mxu0 %v3823_v53  ;;  %2787 = vmatprep.subr.bf16.mxu1 %v3865_v0  ;;  %v3885_v53 = vld [vmem:[#allocation11 + $0x68] sm:$0xff]   ;;  %v3892_v62 = vld [vmem:[#allocation11 + $0x10] sm:$0xff]  }
 0x216   :  { %2751 = vmatpush2.bf16.msra.mxu0 %v3821_v57  ;;  %2788 = vmatpush2.bf16.msra.mxu1 %v3863_v2  ;;  %v3887_v57 = vld [vmem:[#allocation11 + $0x60] sm:$0xff]  }
 0x217   :  { %2752 = vmatprep.subr.bf16.mxu0 %v3826_v55  ;;  %2789 = vmatprep.subr.bf16.mxu1 %v3868_v58  ;;  %v3889_v55 = vld [vmem:[#allocation11 + $0x58] sm:$0xff]  }
 0x21a   :  { %2753 = vmatpush2.bf16.msra.mxu0 %v3824_v61  ;;  %2790 = vmatpush2.bf16.msra.mxu1 %v3866_v5  ;;  %v3891_v61 = vld [vmem:[#allocation11 + $0x50] sm:$0xff]  }
 0x21b   :  { %2754 = vmatprep.subr.bf16.mxu0 %v3829_v63  ;;  %2791 = vmatprep.subr.bf16.mxu1 %v3871_v11  ;;  %v705_v63 = vrot.slane %v4224_v6, %v142_v46 }
 0x21e   :  { %2755 = vmatpush2.bf16.msra.mxu0 %v3827_v1  ;;  %2792 = vmatpush2.bf16.msra.mxu1 %v3869_v48  ;;  %v709_v1 = vrot.slane %v4224_v6, %v146_v49  ;;  %v3893_v6 = vld [vmem:[#allocation11 + $0x48] sm:$0xff]  }
 0x21f   :  { %2756 = vmatprep.subr.bf16.mxu0 %v3832_v3  ;;  %2793 = vmatprep.subr.bf16.mxu1 %v3874_v19 }
 0x222   :  { %2757 = vmatpush2.bf16.msra.mxu0 %v3830_v7  ;;  %2794 = vmatpush2.bf16.msra.mxu1 %v3872_v54 }
 0x223   :  { %2795 = vmatprep.subr.bf16.mxu1 %v3877_v26  ;;  %3363 = vmatprep.subr.bf16.mxu0 %v3881_v50  ;;  %v2394_v26 = vld [vmem:[%s4257_s6] sm:$0x3] }
 0x225   :  { %v2110_v9 = vpop.f32.mrf.mxu0 }
 0x226   :  { %v2111_v22 = vadd.f32 %v2110_v9, %v2070_v18  ;;  %2796 = vmatpush2.bf16.msra.mxu1 %v3875_v28  ;;  %v2403_v28 = vrot.slane %v2394_v26, %v4153_v41 }
 0x227   :  { %v2112_v13 = vpop.f32.mrf.mxu0  ;;  %2797 = vmatprep.subr.bf16.mxu1 %v3880_v32 }
 0x228   :  { %v2113_v24 = vadd.f32 %v2112_v13, %v2072_v21  ;;  %v3894_v21 = vld [vmem:[#allocation11 + $0x8] sm:$0xff]  }
 0x229   :  { %v2114_v16 = vpop.f32.mrf.mxu0 }
 0x22a   :  { %2798 = vmatpush2.bf16.msra.mxu1 %v3878_v34 }
 0x22b   :  { %v2115_v20 = vpop.f32.mrf.mxu0 }
 0x22d   :  { %v2151_v23 = vpop.f32.mrf.mxu1 }
 0x22e   :  { %v2152_v25 = vadd.f32 %v2151_v23, %v2111_v22  ;;  %v3895_v23 = vld [vmem:[#allocation11 + $0x40] sm:$0xff]  }
 0x22f   :  { %v2153_v4 = vpop.f32.mrf.mxu1 }
 0x230   :  { %v2154_v29 = vadd.f32 %v2153_v4, %v2113_v24  ;;  %v2322_v30 = vmax.f32 %v2152_v25, 0.0  ;;  %v3896_v25 = vld [vmem:[#allocation11] sm:$0xff]   ;;  %v2399_v4 = vrot.slane %v2394_v26, %v4148_v39  ;;  %v3346_v39 = vld [vmem:[%s4259_s8] ss:$0 sm:$0xff] }
 0x231   :  { %v2155_v27 = vpop.f32.mrf.mxu1 }
 0x232   :  { %v2323_v42 = vmax.f32 %v2154_v29, 0.0  ;;  %v2326_v12 = vpack.c.bf16 %v2322_v30, %v2322_v30 }
 0x233   :  { %v2156_v33 = vpop.f32.mrf.mxu1 }
 0x234   :  { %v2327_v35 = vpack.c.bf16 %v2323_v42, %v2323_v42 }
 0x236   :  { %2758 = vmatprep.mubr.bf16.mxu0 %v2327_v35 }
 0x237   :  { %2759 = vmatmul.mubr.bf16.vlgmr.msra.gmra.mxu0 %v2326_v12 }
 0x238   :  { %3364 = vmatpush3.bf16.msra.mxu0 %v3882_v51 }
 0x239   :  { %3365 = vmatprep.subr.bf16.mxu0 %v3883_v52 }
 0x23c   :  { %3366 = vmatpush3.bf16.msra.mxu0 %v3884_v31 }
 0x23d   :  { %3367 = vmatprep.subr.bf16.mxu0 %v3885_v53 }
 0x240   :  { %3368 = vmatpush3.bf16.msra.mxu0 %v3886_v56 }
 0x241   :  { %3369 = vmatprep.subr.bf16.mxu0 %v3887_v57 }
 0x244   :  { %3370 = vmatpush3.bf16.msra.mxu0 %v3888_v59 }
 0x245   :  { %3371 = vmatprep.subr.bf16.mxu0 %v3889_v55 }
 0x248   :  { %3372 = vmatpush3.bf16.msra.mxu0 %v3890_v60 }
 0x249   :  { %3373 = vmatprep.subr.bf16.mxu0 %v3891_v61 }
 0x24c   :  { %3374 = vmatpush3.bf16.msra.mxu0 %v3892_v62 }
 0x24d   :  { %3375 = vmatprep.subr.bf16.mxu0 %v3893_v6 }
 0x250   :  { %3376 = vmatpush3.bf16.msra.mxu0 %v3894_v21 }
 0x251   :  { %3377 = vmatprep.subr.bf16.mxu0 %v3895_v23 }
 0x254   :  { %3378 = vmatpush3.bf16.msra.mxu0 %v3896_v25 }
 0x265   :  { %v2192_v36 = vpop.f32.mrf.mxu0 }
 0x266   :  { %v2193_v3 = vadd.f32 %v2192_v36, %v705_v63 }
 0x267   :  { %v2194_v14 = vpop.f32.mrf.mxu0 }
 0x268   :  { %v2195_v7 = vadd.f32 %v2194_v14, %v709_v1 }
 0x269   :  { %v2196_v37 = vpop.f32.mrf.mxu0 }
 0x26b   :  { %v2197_v43 = vpop.f32.mrf.mxu0 }
 0x26d   :  { %v2233_v44 = vpop.f32.mrf.mxu1 }
 0x26e   :  { %v2234_v5 = vadd.f32 %v2233_v44, %v2193_v3 }
 0x26f   :  { %v2235_v45 = vpop.f32.mrf.mxu1 }
 0x270   :  { %v2236_v9 = vadd.f32 %v2235_v45, %v2195_v7 }
 0x271   :  { %v2237_v40 = vpop.f32.mrf.mxu1 }
 0x273   :  { %v2238_v47 = vpop.f32.mrf.mxu1 }
 0x2a5   :  { %v2274_v0 = vpop.f32.mrf.mxu0 }
 0x2a6   :  { %v2275_v10 = vadd.f32 %v2274_v0, %v2234_v5 }
 0x2a7   :  { %v2276_v2 = vpop.f32.mrf.mxu0 }
 0x2a8   :  { %v2277_v13 = vadd.f32 %v2276_v2, %v2236_v9 }
 0x2a9   :  { %v2278_v58 = vpop.f32.mrf.mxu0 }
 0x2ab   :  { %v2279_v8 = vpop.f32.mrf.mxu0 }
 0x2ad   :  { %v2315_v11 = vpop.f32.mrf.mxu1 }
 0x2ae   :  { %v2316_v48 = vadd.f32 %v2315_v11, %v2275_v10 }
 0x2af   :  { %v2317_v15 = vpop.f32.mrf.mxu1 }
 0x2b0   :  { %v2318_v16 = vadd.f32 %v2317_v15, %v2277_v13  ;;  %v2324_v17 = vmax.f32 %v2316_v48, 0.0 }
 0x2b1   :  { %v2319_v46 = vpop.f32.mrf.mxu1 }
 0x2b2   :  { %v2325_v18 = vmax.f32 %v2318_v16, 0.0  ;;  %v2328_v20 = vpack.c.bf16 %v2324_v17, %v2324_v17 }
 0x2b3   :  { %v2320_v19 = vpop.f32.mrf.mxu1 }
 0x2b4   :  { %v2329_v38 = vpack.c.bf16 %v2325_v18, %v2325_v18 }
 0x2b6   :  { %2799 = vmatprep.mubr.bf16.mxu1 %v2329_v38 }
 0x2b7   :  { %2800 = vmatmul.mubr.bf16.vlgmr.msra.gmra.mxu1 %v2328_v20 }
 0x2f7   :  { %v2760_v49 = vpop.f32.mrf.mxu0 }
 0x2f8   :  { %v2761_v29 = vadd.f32 %v2760_v49, %v2399_v4 }
 0x2f9   :  { %v2762_v54 = vpop.f32.mrf.mxu0 }
 0x2fa   :  { %v2763_v27 = vadd.f32 %v2762_v54, %v2403_v28 }
 0x2fb   :  { %v2764_v22 = vpop.f32.mrf.mxu0 }
 0x2fd   :  { %v2765_v24 = vpop.f32.mrf.mxu0 }
 0x377   :  { %v2801_v30 = vpop.f32.mrf.mxu1 }
 0x378   :  { %v2802_v42 = vadd.f32 %v2801_v30, %v2761_v29 }
 0x379   :  { %v2803_v32 = vpop.f32.mrf.mxu1 }
 0x37a   :  { %v2804_v33 = vadd.f32 %v2803_v32, %v2763_v27  ;;  %v2808_v34 = vmax.f32 %v2802_v42, 0.0 }
 0x37b   :  { %v2805_v35 = vpop.f32.mrf.mxu1 }
 0x37c   :  { %v2809_v12 = vmax.f32 %v2804_v33, 0.0  ;;  %v2810_v37 = vpack.c.bf16 %v2808_v34, %v2808_v34 }
 0x37d   :  { %v2806_v36 = vpop.f32.mrf.mxu1 }
 0x37e   :  { %v2811_v14 = vpack.c.bf16 %v2809_v12, %v2809_v12 }
 0x380   :  { %2979 = vmatprep.mubr.bf16.mxu0 %v2811_v14 }
 0x381   :  { %2980 = vmatmul.mubr.bf16.vlgmr.msra.gmra.mxu0 %v2810_v37 }
 0x441   :  { %v3379_v43 = vpop.f32.mrf.mxu0 }
 0x443   :  { %v3380_v41 = vpop.f32.mrf.mxu0 }
 0x444   :  { %v3381_v44 = vadd.f32 %v3380_v41, %v3379_v43 }
 0x445   :  { %v3382_v45 = vpop.f32.mrf.mxu0 }
 0x446   :  { %v2982_v40 = vadd.f32 %v3381_v44, %v3346_v39 }
 0x447   :  { %v3383_v47 = vpop.f32.mrf.mxu0 }
 0x448   :  { %2987 = vst [vmem:[#allocation13] sm:$0xff] %v2982_v40 }
 0x449   :  { %4028 = shalt.err (!%p4025_p6)
}
 0x44a   :  { %2997 = dma.vmem_to_hbm [thread:$0]  %s2995_s25, 128, %s4260_s9, [#allocation4]  }
 0x44b   :  { %4045 = dma.done.wait [#allocation4], 128  }
 0x44c   :  { %4046 = vsyncadd [#allocation4], 4294967168 }
 0x44d   :  { %3001 = vsyncpa [#allocation3], 1 }
 0x44e   :  { %3002 = vsyncpa [#allocation6], 1 }
 0x44f   :  { %3003 = vsyncpa [#allocation9], 1 }
 0x450   :  { %3004 = vsyncpa [#allocation12], 1 }
 0x451   :  { %3005 = vsyncpa [#allocation4], 1 }

</bundles_post_ra>
